<compile_context>
chip_gen: v6e
topology: v6e:2x2x1
jax: 0.10.0
libtpu: 0.0.40
codegen_flags: <defaults>
</compile_context>

<pallas_src>
import jax
import jax.numpy as jnp
import numpy as np
from jax.experimental import pallas as pl
from jax.experimental.pallas import tpu as pltpu

BN_EPS = 1e-5
LANE = 128


# ------------------------------ fused Pallas kernel ------------------------------ #

def _middle_flow_kernel(x_ref, dw_ref, pw_ref, bias_ref, o_ref, buf_ref):
    """All 3 MiddleFlow stages for one image block, entirely in VMEM.

    x_ref    : (1, H, W, C)  bf16   original input (also the residual)
    dw_ref   : (S, 9, C)     f32    depthwise taps, tap-major (t = 3*ky + kx)
    pw_ref   : (S, C, C)     bf16   pointwise weights with BN scale folded in
    bias_ref : (S, 1, C)     f32    folded BN bias
    o_ref    : (1, H, W, C)  f32    output block
    buf_ref  : (H+2, W+2, C) f32    padded inter-stage activation scratch
    """
    _, h, w, c = x_ref.shape
    n_stages = dw_ref.shape[0]

    # Zero the padded buffer once per image; every stage rewrites only the (h, w)
    # interior, so the 1-pixel halo stays zero for all stages.  ReLU(0) == 0, so
    # "zero halo then ReLU" == "pad(ReLU(x))" as in the reference module.
    buf_ref[...] = jnp.zeros(buf_ref.shape, buf_ref.dtype)
    buf_ref[pl.ds(1, h), pl.ds(1, w), :] = jnp.maximum(x_ref[0].astype(jnp.float32), 0.0)

    for s in range(n_stages):
        # ---- depthwise 3x3 (VPU, 9 shifted multiply-accumulates) ------------------
        # 3 kx-shifted bands straight from the scratch ref (one sublane-shifted load
        # per kx instead of 9 relayout slice copies); the ky offsets below are
        # leading-dim slices of those bands and are layout-free.
        bands = [buf_ref[:, pl.ds(kx, w), :] for kx in range(3)]       # each (h+2, w, c)
        dws = dw_ref[s]                                                # (9, c) f32
        acc = jnp.zeros((h, w, c), jnp.float32)
        for ky in range(3):
            for kx in range(3):
                t = 3 * ky + kx
                tap = dws[t:t + 1, :].reshape(1, 1, c)
                acc = acc + bands[kx][ky:ky + h] * tap

        # ---- pointwise 1x1 (MXU) with BN scale folded into the bf16 weights -------
        y = jnp.dot(acc.reshape(h * w, c).astype(jnp.bfloat16), pw_ref[s],
                    preferred_element_type=jnp.float32)
        y = (y + bias_ref[s]).reshape(h, w, c)

        if s < n_stages - 1:
            # Fused ReLU epilogue: the next stage reads pre-activated data; halo
            # stays zero so the implicit conv padding is still correct.
            buf_ref[pl.ds(1, h), pl.ds(1, w), :] = jnp.maximum(y, 0.0)
        else:
            # Residual add with the original (pre-ReLU) input; single HBM write.
            o_ref[0] = (y + x_ref[0].astype(jnp.float32)).astype(o_ref.dtype)


def _middle_flow_fused(x_nhwc, dw, pw, bias, out_dtype):
    n, h, w, c = x_nhwc.shape
    s = dw.shape[0]
    return pl.pallas_call(
        _middle_flow_kernel,
        out_shape=jax.ShapeDtypeStruct((n, h, w, c), out_dtype),
        grid=(n,),
        in_specs=[
            pl.BlockSpec((1, h, w, c), lambda i: (i, 0, 0, 0)),    # activation / residual
            # Weight specs are grid-invariant (constant index_map).  Their default
            # double buffers are tiny even at C=768 (<3 MB total), so default
            # buffering is kept for maximum compile portability.
            pl.BlockSpec((s, 9, c), lambda i: (0, 0, 0)),          # depthwise taps
            pl.BlockSpec((s, c, c), lambda i: (0, 0, 0)),          # BN-folded pointwise
            pl.BlockSpec((s, 1, c), lambda i: (0, 0, 0)),          # folded BN bias
        ],
        out_specs=pl.BlockSpec((1, h, w, c), lambda i: (i, 0, 0, 0)),
        scratch_shapes=[pltpu.VMEM((h + 2, w + 2, c), jnp.float32)],
        compiler_params=pltpu.CompilerParams(dimension_semantics=("parallel",)),
    )(x_nhwc, dw, pw, bias)


# --------------------------------- JAX glue -------------------------------------- #

def fold_middle_flow_params(params, lane=LANE):
    """Fold BN into the pointwise weights, pad channels lane-dense, stack per stage.

    Hoisted out of the per-call forward path: call once, reuse the folded arrays.
    Note: for the real channel counts (512, 728->768) the 128-rounding already lands
    on multiples of 256, which keeps the v6e/v7x 256-wide MXU fully fed.
    """
    c = params[0]["dw"].shape[0]
    c_pad = max(lane, ((c + lane - 1) // lane) * lane)
    dw_l, pw_l, b_l = [], [], []
    for st in params:
        scale = st["bn_g"] / jnp.sqrt(st["bn_v"] + BN_EPS)                  # (C,)
        bias = st["bn_b"] - st["bn_m"] * scale                              # (C,)
        dw = jnp.transpose(st["dw"][:, 0], (1, 2, 0)).reshape(9, c)         # (C,1,3,3)->(9,C)
        pw = jnp.transpose(st["pw"][:, :, 0, 0], (1, 0)) * scale[None, :]   # (Cin,Cout)*scale
        pad = c_pad - c
        dw_l.append(jnp.pad(dw, ((0, 0), (0, pad))))
        pw_l.append(jnp.pad(pw, ((0, pad), (0, pad))))
        b_l.append(jnp.pad(bias, ((0, pad),)).reshape(1, c_pad))
    return {
        "dw": jnp.stack(dw_l).astype(jnp.float32),        # (S, 9, Cp)
        "pw": jnp.stack(pw_l).astype(jnp.bfloat16),       # (S, Cp, Cp)
        "bias": jnp.stack(b_l).astype(jnp.float32),       # (S, 1, Cp)
    }


def middle_flow_forward(folded, x_nchw):
    n, c, h, w = x_nchw.shape
    c_pad = folded["pw"].shape[-1]
    x = jnp.transpose(x_nchw, (0, 2, 3, 1))                           # NCHW -> NHWC
    x = jnp.pad(x, ((0, 0), (0, 0), (0, 0), (0, c_pad - c)))          # lane-dense channels
    x = x.astype(jnp.bfloat16)                                        # halve input/residual DMA
    out = _middle_flow_fused(x, folded["dw"], folded["pw"], folded["bias"],
                             out_dtype=x_nchw.dtype)
    out = out[..., :c]                                                # drop channel padding
    return jnp.transpose(out, (0, 3, 1, 2))                          # NHWC -> NCHW


# ------------------------------- parameter init ----------------------------------- #

def init_middle_flow(key, channels, n_stages=3):
    params = []
    for k in jax.random.split(key, n_stages):
        k1, k2, k3, k4, k5, k6 = jax.random.split(k, 6)
        params.append({
            "dw": 0.3 * jax.random.normal(k1, (channels, 1, 3, 3), jnp.float32),
            "pw": (1.0 / np.sqrt(channels)) *
                  jax.random.normal(k2, (channels, channels, 1, 1), jnp.float32),
            "bn_g": 1.0 + 0.1 * jax.random.normal(k3, (channels,), jnp.float32),
            "bn_b": 0.1 * jax.random.normal(k4, (channels,), jnp.float32),
            "bn_m": 0.05 * jax.random.normal(k5, (channels,), jnp.float32),
            "bn_v": 1.0 + 0.1 * jax.random.uniform(k6, (channels,), jnp.float32),
        })
    return params


# ------------------------------ pure-JAX reference -------------------------------- #

def _ref_bn(x, g, b, m, v):
    g, b, m, v = (a[None, :, None, None] for a in (g, b, m, v))
    return (x - m) / jnp.sqrt(v + BN_EPS) * g + b


def reference_forward(params, x):
    c = x.shape[1]
    out = x
    for stage in params:
        out = jnp.maximum(out, 0.0)
        out = jax.lax.conv_general_dilated(
            out, stage["dw"], (1, 1), [(1, 1), (1, 1)],
            dimension_numbers=("NCHW", "OIHW", "NCHW"),
            feature_group_count=c)
        out = jax.lax.conv_general_dilated(
            out, stage["pw"], (1, 1), [(0, 0), (0, 0)],
            dimension_numbers=("NCHW", "OIHW", "NCHW"))
        out = _ref_bn(out, stage["bn_g"], stage["bn_b"], stage["bn_m"], stage["bn_v"])
    return out + x


# ------------------------------------ main ----------------------------------------- #

if __name__ == "__main__":
    key = jax.random.PRNGKey(0)
    k_x, k_p = jax.random.split(key)

    # Small test shapes consistent with the module (channels < 128 exercises the
    # lane-padding path; the real MiddleFlow uses channels=512 which is already
    # lane-dense and a multiple of 256 for the v6e/v7x MXU).
    N, C, H, W = 2, 64, 16, 16
    x = jax.random.normal(k_x, (N, C, H, W), jnp.float32)
    params = init_middle_flow(k_p, C)

    folded = fold_middle_flow_params(params)        # BN fold hoisted out of the hot path
    fwd = jax.jit(middle_flow_forward)
    out = jax.block_until_ready(fwd(folded, x))

    ref = jax.block_until_ready(reference_forward(params, x))
    # bf16 MXU operands + bf16 input/residual vs. full-f32 reference (inter-stage
    # activations now stay f32 in VMEM, so accuracy is better than the per-stage version).
    np.testing.assert_allclose(np.asarray(out), np.asarray(ref), atol=5e-2, rtol=5e-2)

    print("KERNEL_OK")
</pallas_src>

<mosaic_0001>
module attributes {stable_mosaic.version = 11 : i64} {
  func.func @_middle_flow_kernel(%arg0: i32, %arg1: memref<1x16x16x128xbf16, #tpu.memory_space<vmem>>, %arg2: memref<3x9x128xf32, #tpu.memory_space<vmem>>, %arg3: memref<3x128x128xbf16, #tpu.memory_space<vmem>>, %arg4: memref<3x1x128xf32, #tpu.memory_space<vmem>>, %arg5: memref<1x16x16x128xf32, #tpu.memory_space<vmem>>, %arg6: memref<18x18x128xf32, #tpu.memory_space<vmem>>) attributes {dimension_semantics = [#tpu.dimension_semantics<parallel>], iteration_bounds = array<i64: 2>, scalar_prefetch = 0 : i64, scratch_operands = 1 : i64, tpu.core_type = #tpu.core_type<tc>, window_params = [{transform_indices = @transform_0, window_bounds = array<i64: 1, 16, 16, 128>}, {pipeline_mode = #tpu.pipeline_mode<synchronous>, transform_indices = @transform_1, window_bounds = array<i64: 3, 9, 128>}, {pipeline_mode = #tpu.pipeline_mode<synchronous>, transform_indices = @transform_2, window_bounds = array<i64: 3, 128, 128>}, {pipeline_mode = #tpu.pipeline_mode<synchronous>, transform_indices = @transform_3, window_bounds = array<i64: 3, 1, 128>}, {transform_indices = @transform_4, window_bounds = array<i64: 1, 16, 16, 128>}]} {
    %cst = arith.constant 0.000000e+00 : f32
    %0 = vector.broadcast %cst : f32 to vector<18x18x128xf32>
    %c0 = arith.constant 0 : index
    %c0_0 = arith.constant 0 : index
    %c0_1 = arith.constant 0 : index
    %1 = vector.load %arg6[%c0, %c0_0, %c0_1] : memref<18x18x128xf32, #tpu.memory_space<vmem>>, vector<18x18x128xf32>
    tpu.vector_store %arg6[%c0, %c0_0, %c0_1], %0 {strides = array<i32>} : memref<18x18x128xf32, #tpu.memory_space<vmem>>, vector<18x18x128xf32>,
    %c0_2 = arith.constant 0 : index
    %c0_3 = arith.constant 0 : index
    %c0_4 = arith.constant 0 : index
    %c0_5 = arith.constant 0 : index
    %2 = vector.load %arg1[%c0_2, %c0_3, %c0_4, %c0_5] : memref<1x16x16x128xbf16, #tpu.memory_space<vmem>>, vector<1x16x16x128xbf16>
    %3 = vector.shape_cast %2 : vector<1x16x16x128xbf16> to vector<16x16x128xbf16>
    %4 = arith.extf %3 : vector<16x16x128xbf16> to vector<16x16x128xf32>
    %cst_6 = arith.constant 0.000000e+00 : f32
    %5 = vector.broadcast %cst_6 : f32 to vector<16x16x128xf32>
    %6 = arith.maximumf %4, %5 : vector<16x16x128xf32>
    %c1 = arith.constant 1 : index
    %c1_7 = arith.constant 1 : index
    %c0_8 = arith.constant 0 : index
    %7 = vector.load %arg6[%c1, %c1_7, %c0_8] : memref<18x18x128xf32, #tpu.memory_space<vmem>>, vector<16x16x128xf32>
    tpu.vector_store %arg6[%c1, %c1_7, %c0_8], %6 {strides = array<i32>} : memref<18x18x128xf32, #tpu.memory_space<vmem>>, vector<16x16x128xf32>,
    %c0_9 = arith.constant 0 : index
    %c0_10 = arith.constant 0 : index
    %c0_11 = arith.constant 0 : index
    %8 = vector.load %arg6[%c0_9, %c0_10, %c0_11] : memref<18x18x128xf32, #tpu.memory_space<vmem>>, vector<18x16x128xf32>
    %c0_12 = arith.constant 0 : index
    %c1_13 = arith.constant 1 : index
    %c0_14 = arith.constant 0 : index
    %9 = vector.load %arg6[%c0_12, %c1_13, %c0_14] : memref<18x18x128xf32, #tpu.memory_space<vmem>>, vector<18x16x128xf32>
    %c0_15 = arith.constant 0 : index
    %c2 = arith.constant 2 : index
    %c0_16 = arith.constant 0 : index
    %10 = vector.load %arg6[%c0_15, %c2, %c0_16] : memref<18x18x128xf32, #tpu.memory_space<vmem>>, vector<18x16x128xf32>
    %c0_17 = arith.constant 0 : index
    %c0_18 = arith.constant 0 : index
    %c0_19 = arith.constant 0 : index
    %11 = vector.load %arg2[%c0_17, %c0_18, %c0_19] : memref<3x9x128xf32, #tpu.memory_space<vmem>>, vector<1x9x128xf32>
    %12 = vector.shape_cast %11 : vector<1x9x128xf32> to vector<9x128xf32>
    %cst_20 = arith.constant 0.000000e+00 : f32
    %13 = vector.broadcast %cst_20 : f32 to vector<16x16x128xf32>
    %14 = vector.extract_strided_slice %12 {offsets = [0, 0], sizes = [1, 128], strides = [1, 1]} : vector<9x128xf32> to vector<1x128xf32>
    %15 = vector.shape_cast %14 : vector<1x128xf32> to vector<1x1x128xf32>
    %16 = vector.extract_strided_slice %8 {offsets = [0, 0, 0], sizes = [16, 16, 128], strides = [1, 1, 1]} : vector<18x16x128xf32> to vector<16x16x128xf32>
    %17 = vector.broadcast %15 : vector<1x1x128xf32> to vector<16x16x128xf32>
    %18 = arith.mulf %16, %17 : vector<16x16x128xf32>
    %19 = arith.addf %13, %18 : vector<16x16x128xf32>
    %20 = vector.extract_strided_slice %12 {offsets = [1, 0], sizes = [1, 128], strides = [1, 1]} : vector<9x128xf32> to vector<1x128xf32>
    %21 = vector.shape_cast %20 : vector<1x128xf32> to vector<1x1x128xf32>
    %22 = vector.extract_strided_slice %9 {offsets = [0, 0, 0], sizes = [16, 16, 128], strides = [1, 1, 1]} : vector<18x16x128xf32> to vector<16x16x128xf32>
    %23 = vector.broadcast %21 : vector<1x1x128xf32> to vector<16x16x128xf32>
    %24 = arith.mulf %22, %23 : vector<16x16x128xf32>
    %25 = arith.addf %19, %24 : vector<16x16x128xf32>
    %26 = vector.extract_strided_slice %12 {offsets = [2, 0], sizes = [1, 128], strides = [1, 1]} : vector<9x128xf32> to vector<1x128xf32>
    %27 = vector.shape_cast %26 : vector<1x128xf32> to vector<1x1x128xf32>
    %28 = vector.extract_strided_slice %10 {offsets = [0, 0, 0], sizes = [16, 16, 128], strides = [1, 1, 1]} : vector<18x16x128xf32> to vector<16x16x128xf32>
    %29 = vector.broadcast %27 : vector<1x1x128xf32> to vector<16x16x128xf32>
    %30 = arith.mulf %28, %29 : vector<16x16x128xf32>
    %31 = arith.addf %25, %30 : vector<16x16x128xf32>
    %32 = vector.extract_strided_slice %12 {offsets = [3, 0], sizes = [1, 128], strides = [1, 1]} : vector<9x128xf32> to vector<1x128xf32>
    %33 = vector.shape_cast %32 : vector<1x128xf32> to vector<1x1x128xf32>
    %34 = vector.extract_strided_slice %8 {offsets = [1, 0, 0], sizes = [16, 16, 128], strides = [1, 1, 1]} : vector<18x16x128xf32> to vector<16x16x128xf32>
    %35 = vector.broadcast %33 : vector<1x1x128xf32> to vector<16x16x128xf32>
    %36 = arith.mulf %34, %35 : vector<16x16x128xf32>
    %37 = arith.addf %31, %36 : vector<16x16x128xf32>
    %38 = vector.extract_strided_slice %12 {offsets = [4, 0], sizes = [1, 128], strides = [1, 1]} : vector<9x128xf32> to vector<1x128xf32>
    %39 = vector.shape_cast %38 : vector<1x128xf32> to vector<1x1x128xf32>
    %40 = vector.extract_strided_slice %9 {offsets = [1, 0, 0], sizes = [16, 16, 128], strides = [1, 1, 1]} : vector<18x16x128xf32> to vector<16x16x128xf32>
    %41 = vector.broadcast %39 : vector<1x1x128xf32> to vector<16x16x128xf32>
    %42 = arith.mulf %40, %41 : vector<16x16x128xf32>
    %43 = arith.addf %37, %42 : vector<16x16x128xf32>
    %44 = vector.extract_strided_slice %12 {offsets = [5, 0], sizes = [1, 128], strides = [1, 1]} : vector<9x128xf32> to vector<1x128xf32>
    %45 = vector.shape_cast %44 : vector<1x128xf32> to vector<1x1x128xf32>
    %46 = vector.extract_strided_slice %10 {offsets = [1, 0, 0], sizes = [16, 16, 128], strides = [1, 1, 1]} : vector<18x16x128xf32> to vector<16x16x128xf32>
    %47 = vector.broadcast %45 : vector<1x1x128xf32> to vector<16x16x128xf32>
    %48 = arith.mulf %46, %47 : vector<16x16x128xf32>
    %49 = arith.addf %43, %48 : vector<16x16x128xf32>
    %50 = vector.extract_strided_slice %12 {offsets = [6, 0], sizes = [1, 128], strides = [1, 1]} : vector<9x128xf32> to vector<1x128xf32>
    %51 = vector.shape_cast %50 : vector<1x128xf32> to vector<1x1x128xf32>
    %52 = vector.extract_strided_slice %8 {offsets = [2, 0, 0], sizes = [16, 16, 128], strides = [1, 1, 1]} : vector<18x16x128xf32> to vector<16x16x128xf32>
    %53 = vector.broadcast %51 : vector<1x1x128xf32> to vector<16x16x128xf32>
    %54 = arith.mulf %52, %53 : vector<16x16x128xf32>
    %55 = arith.addf %49, %54 : vector<16x16x128xf32>
    %56 = vector.extract_strided_slice %12 {offsets = [7, 0], sizes = [1, 128], strides = [1, 1]} : vector<9x128xf32> to vector<1x128xf32>
    %57 = vector.shape_cast %56 : vector<1x128xf32> to vector<1x1x128xf32>
    %58 = vector.extract_strided_slice %9 {offsets = [2, 0, 0], sizes = [16, 16, 128], strides = [1, 1, 1]} : vector<18x16x128xf32> to vector<16x16x128xf32>
    %59 = vector.broadcast %57 : vector<1x1x128xf32> to vector<16x16x128xf32>
    %60 = arith.mulf %58, %59 : vector<16x16x128xf32>
    %61 = arith.addf %55, %60 : vector<16x16x128xf32>
    %62 = vector.extract_strided_slice %12 {offsets = [8, 0], sizes = [1, 128], strides = [1, 1]} : vector<9x128xf32> to vector<1x128xf32>
    %63 = vector.shape_cast %62 : vector<1x128xf32> to vector<1x1x128xf32>
    %64 = vector.extract_strided_slice %10 {offsets = [2, 0, 0], sizes = [16, 16, 128], strides = [1, 1, 1]} : vector<18x16x128xf32> to vector<16x16x128xf32>
    %65 = vector.broadcast %63 : vector<1x1x128xf32> to vector<16x16x128xf32>
    %66 = arith.mulf %64, %65 : vector<16x16x128xf32>
    %67 = arith.addf %61, %66 : vector<16x16x128xf32>
    %68 = vector.shape_cast %67 : vector<16x16x128xf32> to vector<256x128xf32>
    %69 = arith.truncf %68 : vector<256x128xf32> to vector<256x128xbf16>
    %c0_21 = arith.constant 0 : index
    %c0_22 = arith.constant 0 : index
    %c0_23 = arith.constant 0 : index
    %70 = vector.load %arg3[%c0_21, %c0_22, %c0_23] : memref<3x128x128xbf16, #tpu.memory_space<vmem>>, vector<1x128x128xbf16>
    %71 = vector.shape_cast %70 : vector<1x128x128xbf16> to vector<128x128xbf16>
    %cst_24 = arith.constant dense<0.000000e+00> : vector<256x128xf32>
    %72 = tpu.matmul %69, %71, %cst_24 {dimension_numbers = #tpu.dot_dimension_numbers<[1], [0], [0], [1], [0, 0, 1, 1], [], []>} : vector<256x128xbf16>, vector<128x128xbf16>, vector<256x128xf32> -> vector<256x128xf32>
    %c0_25 = arith.constant 0 : index
    %c0_26 = arith.constant 0 : index
    %c0_27 = arith.constant 0 : index
    %73 = vector.load %arg4[%c0_25, %c0_26, %c0_27] : memref<3x1x128xf32, #tpu.memory_space<vmem>>, vector<1x1x128xf32>
    %74 = vector.shape_cast %73 : vector<1x1x128xf32> to vector<1x128xf32>
    %75 = vector.broadcast %74 : vector<1x128xf32> to vector<256x128xf32>
    %76 = arith.addf %72, %75 : vector<256x128xf32>
    %77 = vector.shape_cast %76 : vector<256x128xf32> to vector<16x16x128xf32>
    %cst_28 = arith.constant 0.000000e+00 : f32
    %78 = vector.broadcast %cst_28 : f32 to vector<16x16x128xf32>
    %79 = arith.maximumf %77, %78 : vector<16x16x128xf32>
    %c1_29 = arith.constant 1 : index
    %c1_30 = arith.constant 1 : index
    %c0_31 = arith.constant 0 : index
    %80 = vector.load %arg6[%c1_29, %c1_30, %c0_31] : memref<18x18x128xf32, #tpu.memory_space<vmem>>, vector<16x16x128xf32>
    tpu.vector_store %arg6[%c1_29, %c1_30, %c0_31], %79 {strides = array<i32>} : memref<18x18x128xf32, #tpu.memory_space<vmem>>, vector<16x16x128xf32>,
    %c0_32 = arith.constant 0 : index
    %c0_33 = arith.constant 0 : index
    %c0_34 = arith.constant 0 : index
    %81 = vector.load %arg6[%c0_32, %c0_33, %c0_34] : memref<18x18x128xf32, #tpu.memory_space<vmem>>, vector<18x16x128xf32>
    %c0_35 = arith.constant 0 : index
    %c1_36 = arith.constant 1 : index
    %c0_37 = arith.constant 0 : index
    %82 = vector.load %arg6[%c0_35, %c1_36, %c0_37] : memref<18x18x128xf32, #tpu.memory_space<vmem>>, vector<18x16x128xf32>
    %c0_38 = arith.constant 0 : index
    %c2_39 = arith.constant 2 : index
    %c0_40 = arith.constant 0 : index
    %83 = vector.load %arg6[%c0_38, %c2_39, %c0_40] : memref<18x18x128xf32, #tpu.memory_space<vmem>>, vector<18x16x128xf32>
    %c1_41 = arith.constant 1 : index
    %c0_42 = arith.constant 0 : index
    %c0_43 = arith.constant 0 : index
    %84 = vector.load %arg2[%c1_41, %c0_42, %c0_43] : memref<3x9x128xf32, #tpu.memory_space<vmem>>, vector<1x9x128xf32>
    %85 = vector.shape_cast %84 : vector<1x9x128xf32> to vector<9x128xf32>
    %cst_44 = arith.constant 0.000000e+00 : f32
    %86 = vector.broadcast %cst_44 : f32 to vector<16x16x128xf32>
    %87 = vector.extract_strided_slice %85 {offsets = [0, 0], sizes = [1, 128], strides = [1, 1]} : vector<9x128xf32> to vector<1x128xf32>
    %88 = vector.shape_cast %87 : vector<1x128xf32> to vector<1x1x128xf32>
    %89 = vector.extract_strided_slice %81 {offsets = [0, 0, 0], sizes = [16, 16, 128], strides = [1, 1, 1]} : vector<18x16x128xf32> to vector<16x16x128xf32>
    %90 = vector.broadcast %88 : vector<1x1x128xf32> to vector<16x16x128xf32>
    %91 = arith.mulf %89, %90 : vector<16x16x128xf32>
    %92 = arith.addf %86, %91 : vector<16x16x128xf32>
    %93 = vector.extract_strided_slice %85 {offsets = [1, 0], sizes = [1, 128], strides = [1, 1]} : vector<9x128xf32> to vector<1x128xf32>
    %94 = vector.shape_cast %93 : vector<1x128xf32> to vector<1x1x128xf32>
    %95 = vector.extract_strided_slice %82 {offsets = [0, 0, 0], sizes = [16, 16, 128], strides = [1, 1, 1]} : vector<18x16x128xf32> to vector<16x16x128xf32>
    %96 = vector.broadcast %94 : vector<1x1x128xf32> to vector<16x16x128xf32>
    %97 = arith.mulf %95, %96 : vector<16x16x128xf32>
    %98 = arith.addf %92, %97 : vector<16x16x128xf32>
    %99 = vector.extract_strided_slice %85 {offsets = [2, 0], sizes = [1, 128], strides = [1, 1]} : vector<9x128xf32> to vector<1x128xf32>
    %100 = vector.shape_cast %99 : vector<1x128xf32> to vector<1x1x128xf32>
    %101 = vector.extract_strided_slice %83 {offsets = [0, 0, 0], sizes = [16, 16, 128], strides = [1, 1, 1]} : vector<18x16x128xf32> to vector<16x16x128xf32>
    %102 = vector.broadcast %100 : vector<1x1x128xf32> to vector<16x16x128xf32>
    %103 = arith.mulf %101, %102 : vector<16x16x128xf32>
    %104 = arith.addf %98, %103 : vector<16x16x128xf32>
    %105 = vector.extract_strided_slice %85 {offsets = [3, 0], sizes = [1, 128], strides = [1, 1]} : vector<9x128xf32> to vector<1x128xf32>
    %106 = vector.shape_cast %105 : vector<1x128xf32> to vector<1x1x128xf32>
    %107 = vector.extract_strided_slice %81 {offsets = [1, 0, 0], sizes = [16, 16, 128], strides = [1, 1, 1]} : vector<18x16x128xf32> to vector<16x16x128xf32>
    %108 = vector.broadcast %106 : vector<1x1x128xf32> to vector<16x16x128xf32>
    %109 = arith.mulf %107, %108 : vector<16x16x128xf32>
    %110 = arith.addf %104, %109 : vector<16x16x128xf32>
    %111 = vector.extract_strided_slice %85 {offsets = [4, 0], sizes = [1, 128], strides = [1, 1]} : vector<9x128xf32> to vector<1x128xf32>
    %112 = vector.shape_cast %111 : vector<1x128xf32> to vector<1x1x128xf32>
    %113 = vector.extract_strided_slice %82 {offsets = [1, 0, 0], sizes = [16, 16, 128], strides = [1, 1, 1]} : vector<18x16x128xf32> to vector<16x16x128xf32>
    %114 = vector.broadcast %112 : vector<1x1x128xf32> to vector<16x16x128xf32>
    %115 = arith.mulf %113, %114 : vector<16x16x128xf32>
    %116 = arith.addf %110, %115 : vector<16x16x128xf32>
    %117 = vector.extract_strided_slice %85 {offsets = [5, 0], sizes = [1, 128], strides = [1, 1]} : vector<9x128xf32> to vector<1x128xf32>
    %118 = vector.shape_cast %117 : vector<1x128xf32> to vector<1x1x128xf32>
    %119 = vector.extract_strided_slice %83 {offsets = [1, 0, 0], sizes = [16, 16, 128], strides = [1, 1, 1]} : vector<18x16x128xf32> to vector<16x16x128xf32>
    %120 = vector.broadcast %118 : vector<1x1x128xf32> to vector<16x16x128xf32>
    %121 = arith.mulf %119, %120 : vector<16x16x128xf32>
    %122 = arith.addf %116, %121 : vector<16x16x128xf32>
    %123 = vector.extract_strided_slice %85 {offsets = [6, 0], sizes = [1, 128], strides = [1, 1]} : vector<9x128xf32> to vector<1x128xf32>
    %124 = vector.shape_cast %123 : vector<1x128xf32> to vector<1x1x128xf32>
    %125 = vector.extract_strided_slice %81 {offsets = [2, 0, 0], sizes = [16, 16, 128], strides = [1, 1, 1]} : vector<18x16x128xf32> to vector<16x16x128xf32>
    %126 = vector.broadcast %124 : vector<1x1x128xf32> to vector<16x16x128xf32>
    %127 = arith.mulf %125, %126 : vector<16x16x128xf32>
    %128 = arith.addf %122, %127 : vector<16x16x128xf32>
    %129 = vector.extract_strided_slice %85 {offsets = [7, 0], sizes = [1, 128], strides = [1, 1]} : vector<9x128xf32> to vector<1x128xf32>
    %130 = vector.shape_cast %129 : vector<1x128xf32> to vector<1x1x128xf32>
    %131 = vector.extract_strided_slice %82 {offsets = [2, 0, 0], sizes = [16, 16, 128], strides = [1, 1, 1]} : vector<18x16x128xf32> to vector<16x16x128xf32>
    %132 = vector.broadcast %130 : vector<1x1x128xf32> to vector<16x16x128xf32>
    %133 = arith.mulf %131, %132 : vector<16x16x128xf32>
    %134 = arith.addf %128, %133 : vector<16x16x128xf32>
    %135 = vector.extract_strided_slice %85 {offsets = [8, 0], sizes = [1, 128], strides = [1, 1]} : vector<9x128xf32> to vector<1x128xf32>
    %136 = vector.shape_cast %135 : vector<1x128xf32> to vector<1x1x128xf32>
    %137 = vector.extract_strided_slice %83 {offsets = [2, 0, 0], sizes = [16, 16, 128], strides = [1, 1, 1]} : vector<18x16x128xf32> to vector<16x16x128xf32>
    %138 = vector.broadcast %136 : vector<1x1x128xf32> to vector<16x16x128xf32>
    %139 = arith.mulf %137, %138 : vector<16x16x128xf32>
    %140 = arith.addf %134, %139 : vector<16x16x128xf32>
    %141 = vector.shape_cast %140 : vector<16x16x128xf32> to vector<256x128xf32>
    %142 = arith.truncf %141 : vector<256x128xf32> to vector<256x128xbf16>
    %c1_45 = arith.constant 1 : index
    %c0_46 = arith.constant 0 : index
    %c0_47 = arith.constant 0 : index
    %143 = vector.load %arg3[%c1_45, %c0_46, %c0_47] : memref<3x128x128xbf16, #tpu.memory_space<vmem>>, vector<1x128x128xbf16>
    %144 = vector.shape_cast %143 : vector<1x128x128xbf16> to vector<128x128xbf16>
    %cst_48 = arith.constant dense<0.000000e+00> : vector<256x128xf32>
    %145 = tpu.matmul %142, %144, %cst_48 {dimension_numbers = #tpu.dot_dimension_numbers<[1], [0], [0], [1], [0, 0, 1, 1], [], []>} : vector<256x128xbf16>, vector<128x128xbf16>, vector<256x128xf32> -> vector<256x128xf32>
    %c1_49 = arith.constant 1 : index
    %c0_50 = arith.constant 0 : index
    %c0_51 = arith.constant 0 : index
    %146 = vector.load %arg4[%c1_49, %c0_50, %c0_51] : memref<3x1x128xf32, #tpu.memory_space<vmem>>, vector<1x1x128xf32>
    %147 = vector.shape_cast %146 : vector<1x1x128xf32> to vector<1x128xf32>
    %148 = vector.broadcast %147 : vector<1x128xf32> to vector<256x128xf32>
    %149 = arith.addf %145, %148 : vector<256x128xf32>
    %150 = vector.shape_cast %149 : vector<256x128xf32> to vector<16x16x128xf32>
    %cst_52 = arith.constant 0.000000e+00 : f32
    %151 = vector.broadcast %cst_52 : f32 to vector<16x16x128xf32>
    %152 = arith.maximumf %150, %151 : vector<16x16x128xf32>
    %c1_53 = arith.constant 1 : index
    %c1_54 = arith.constant 1 : index
    %c0_55 = arith.constant 0 : index
    %153 = vector.load %arg6[%c1_53, %c1_54, %c0_55] : memref<18x18x128xf32, #tpu.memory_space<vmem>>, vector<16x16x128xf32>
    tpu.vector_store %arg6[%c1_53, %c1_54, %c0_55], %152 {strides = array<i32>} : memref<18x18x128xf32, #tpu.memory_space<vmem>>, vector<16x16x128xf32>,
    %c0_56 = arith.constant 0 : index
    %c0_57 = arith.constant 0 : index
    %c0_58 = arith.constant 0 : index
    %154 = vector.load %arg6[%c0_56, %c0_57, %c0_58] : memref<18x18x128xf32, #tpu.memory_space<vmem>>, vector<18x16x128xf32>
    %c0_59 = arith.constant 0 : index
    %c1_60 = arith.constant 1 : index
    %c0_61 = arith.constant 0 : index
    %155 = vector.load %arg6[%c0_59, %c1_60, %c0_61] : memref<18x18x128xf32, #tpu.memory_space<vmem>>, vector<18x16x128xf32>
    %c0_62 = arith.constant 0 : index
    %c2_63 = arith.constant 2 : index
    %c0_64 = arith.constant 0 : index
    %156 = vector.load %arg6[%c0_62, %c2_63, %c0_64] : memref<18x18x128xf32, #tpu.memory_space<vmem>>, vector<18x16x128xf32>
    %c2_65 = arith.constant 2 : index
    %c0_66 = arith.constant 0 : index
    %c0_67 = arith.constant 0 : index
    %157 = vector.load %arg2[%c2_65, %c0_66, %c0_67] : memref<3x9x128xf32, #tpu.memory_space<vmem>>, vector<1x9x128xf32>
    %158 = vector.shape_cast %157 : vector<1x9x128xf32> to vector<9x128xf32>
    %cst_68 = arith.constant 0.000000e+00 : f32
    %159 = vector.broadcast %cst_68 : f32 to vector<16x16x128xf32>
    %160 = vector.extract_strided_slice %158 {offsets = [0, 0], sizes = [1, 128], strides = [1, 1]} : vector<9x128xf32> to vector<1x128xf32>
    %161 = vector.shape_cast %160 : vector<1x128xf32> to vector<1x1x128xf32>
    %162 = vector.extract_strided_slice %154 {offsets = [0, 0, 0], sizes = [16, 16, 128], strides = [1, 1, 1]} : vector<18x16x128xf32> to vector<16x16x128xf32>
    %163 = vector.broadcast %161 : vector<1x1x128xf32> to vector<16x16x128xf32>
    %164 = arith.mulf %162, %163 : vector<16x16x128xf32>
    %165 = arith.addf %159, %164 : vector<16x16x128xf32>
    %166 = vector.extract_strided_slice %158 {offsets = [1, 0], sizes = [1, 128], strides = [1, 1]} : vector<9x128xf32> to vector<1x128xf32>
    %167 = vector.shape_cast %166 : vector<1x128xf32> to vector<1x1x128xf32>
    %168 = vector.extract_strided_slice %155 {offsets = [0, 0, 0], sizes = [16, 16, 128], strides = [1, 1, 1]} : vector<18x16x128xf32> to vector<16x16x128xf32>
    %169 = vector.broadcast %167 : vector<1x1x128xf32> to vector<16x16x128xf32>
    %170 = arith.mulf %168, %169 : vector<16x16x128xf32>
    %171 = arith.addf %165, %170 : vector<16x16x128xf32>
    %172 = vector.extract_strided_slice %158 {offsets = [2, 0], sizes = [1, 128], strides = [1, 1]} : vector<9x128xf32> to vector<1x128xf32>
    %173 = vector.shape_cast %172 : vector<1x128xf32> to vector<1x1x128xf32>
    %174 = vector.extract_strided_slice %156 {offsets = [0, 0, 0], sizes = [16, 16, 128], strides = [1, 1, 1]} : vector<18x16x128xf32> to vector<16x16x128xf32>
    %175 = vector.broadcast %173 : vector<1x1x128xf32> to vector<16x16x128xf32>
    %176 = arith.mulf %174, %175 : vector<16x16x128xf32>
    %177 = arith.addf %171, %176 : vector<16x16x128xf32>
    %178 = vector.extract_strided_slice %158 {offsets = [3, 0], sizes = [1, 128], strides = [1, 1]} : vector<9x128xf32> to vector<1x128xf32>
    %179 = vector.shape_cast %178 : vector<1x128xf32> to vector<1x1x128xf32>
    %180 = vector.extract_strided_slice %154 {offsets = [1, 0, 0], sizes = [16, 16, 128], strides = [1, 1, 1]} : vector<18x16x128xf32> to vector<16x16x128xf32>
    %181 = vector.broadcast %179 : vector<1x1x128xf32> to vector<16x16x128xf32>
    %182 = arith.mulf %180, %181 : vector<16x16x128xf32>
    %183 = arith.addf %177, %182 : vector<16x16x128xf32>
    %184 = vector.extract_strided_slice %158 {offsets = [4, 0], sizes = [1, 128], strides = [1, 1]} : vector<9x128xf32> to vector<1x128xf32>
    %185 = vector.shape_cast %184 : vector<1x128xf32> to vector<1x1x128xf32>
    %186 = vector.extract_strided_slice %155 {offsets = [1, 0, 0], sizes = [16, 16, 128], strides = [1, 1, 1]} : vector<18x16x128xf32> to vector<16x16x128xf32>
    %187 = vector.broadcast %185 : vector<1x1x128xf32> to vector<16x16x128xf32>
    %188 = arith.mulf %186, %187 : vector<16x16x128xf32>
    %189 = arith.addf %183, %188 : vector<16x16x128xf32>
    %190 = vector.extract_strided_slice %158 {offsets = [5, 0], sizes = [1, 128], strides = [1, 1]} : vector<9x128xf32> to vector<1x128xf32>
    %191 = vector.shape_cast %190 : vector<1x128xf32> to vector<1x1x128xf32>
    %192 = vector.extract_strided_slice %156 {offsets = [1, 0, 0], sizes = [16, 16, 128], strides = [1, 1, 1]} : vector<18x16x128xf32> to vector<16x16x128xf32>
    %193 = vector.broadcast %191 : vector<1x1x128xf32> to vector<16x16x128xf32>
    %194 = arith.mulf %192, %193 : vector<16x16x128xf32>
    %195 = arith.addf %189, %194 : vector<16x16x128xf32>
    %196 = vector.extract_strided_slice %158 {offsets = [6, 0], sizes = [1, 128], strides = [1, 1]} : vector<9x128xf32> to vector<1x128xf32>
    %197 = vector.shape_cast %196 : vector<1x128xf32> to vector<1x1x128xf32>
    %198 = vector.extract_strided_slice %154 {offsets = [2, 0, 0], sizes = [16, 16, 128], strides = [1, 1, 1]} : vector<18x16x128xf32> to vector<16x16x128xf32>
    %199 = vector.broadcast %197 : vector<1x1x128xf32> to vector<16x16x128xf32>
    %200 = arith.mulf %198, %199 : vector<16x16x128xf32>
    %201 = arith.addf %195, %200 : vector<16x16x128xf32>
    %202 = vector.extract_strided_slice %158 {offsets = [7, 0], sizes = [1, 128], strides = [1, 1]} : vector<9x128xf32> to vector<1x128xf32>
    %203 = vector.shape_cast %202 : vector<1x128xf32> to vector<1x1x128xf32>
    %204 = vector.extract_strided_slice %155 {offsets = [2, 0, 0], sizes = [16, 16, 128], strides = [1, 1, 1]} : vector<18x16x128xf32> to vector<16x16x128xf32>
    %205 = vector.broadcast %203 : vector<1x1x128xf32> to vector<16x16x128xf32>
    %206 = arith.mulf %204, %205 : vector<16x16x128xf32>
    %207 = arith.addf %201, %206 : vector<16x16x128xf32>
    %208 = vector.extract_strided_slice %158 {offsets = [8, 0], sizes = [1, 128], strides = [1, 1]} : vector<9x128xf32> to vector<1x128xf32>
    %209 = vector.shape_cast %208 : vector<1x128xf32> to vector<1x1x128xf32>
    %210 = vector.extract_strided_slice %156 {offsets = [2, 0, 0], sizes = [16, 16, 128], strides = [1, 1, 1]} : vector<18x16x128xf32> to vector<16x16x128xf32>
    %211 = vector.broadcast %209 : vector<1x1x128xf32> to vector<16x16x128xf32>
    %212 = arith.mulf %210, %211 : vector<16x16x128xf32>
    %213 = arith.addf %207, %212 : vector<16x16x128xf32>
    %214 = vector.shape_cast %213 : vector<16x16x128xf32> to vector<256x128xf32>
    %215 = arith.truncf %214 : vector<256x128xf32> to vector<256x128xbf16>
    %c2_69 = arith.constant 2 : index
    %c0_70 = arith.constant 0 : index
    %c0_71 = arith.constant 0 : index
    %216 = vector.load %arg3[%c2_69, %c0_70, %c0_71] : memref<3x128x128xbf16, #tpu.memory_space<vmem>>, vector<1x128x128xbf16>
    %217 = vector.shape_cast %216 : vector<1x128x128xbf16> to vector<128x128xbf16>
    %cst_72 = arith.constant dense<0.000000e+00> : vector<256x128xf32>
    %218 = tpu.matmul %215, %217, %cst_72 {dimension_numbers = #tpu.dot_dimension_numbers<[1], [0], [0], [1], [0, 0, 1, 1], [], []>} : vector<256x128xbf16>, vector<128x128xbf16>, vector<256x128xf32> -> vector<256x128xf32>
    %c2_73 = arith.constant 2 : index
    %c0_74 = arith.constant 0 : index
    %c0_75 = arith.constant 0 : index
    %219 = vector.load %arg4[%c2_73, %c0_74, %c0_75] : memref<3x1x128xf32, #tpu.memory_space<vmem>>, vector<1x1x128xf32>
    %220 = vector.shape_cast %219 : vector<1x1x128xf32> to vector<1x128xf32>
    %221 = vector.broadcast %220 : vector<1x128xf32> to vector<256x128xf32>
    %222 = arith.addf %218, %221 : vector<256x128xf32>
    %223 = vector.shape_cast %222 : vector<256x128xf32> to vector<16x16x128xf32>
    %c0_76 = arith.constant 0 : index
    %c0_77 = arith.constant 0 : index
    %c0_78 = arith.constant 0 : index
    %c0_79 = arith.constant 0 : index
    %224 = vector.load %arg1[%c0_76, %c0_77, %c0_78, %c0_79] : memref<1x16x16x128xbf16, #tpu.memory_space<vmem>>, vector<1x16x16x128xbf16>
    %225 = vector.shape_cast %224 : vector<1x16x16x128xbf16> to vector<16x16x128xbf16>
    %226 = arith.extf %225 : vector<16x16x128xbf16> to vector<16x16x128xf32>
    %227 = arith.addf %223, %226 : vector<16x16x128xf32>
    %c0_80 = arith.constant 0 : index
    %c0_81 = arith.constant 0 : index
    %c0_82 = arith.constant 0 : index
    %c0_83 = arith.constant 0 : index
    %228 = vector.load %arg5[%c0_80, %c0_81, %c0_82, %c0_83] : memref<1x16x16x128xf32, #tpu.memory_space<vmem>>, vector<1x16x16x128xf32>
    %229 = vector.shape_cast %228 : vector<1x16x16x128xf32> to vector<16x16x128xf32>
    %230 = vector.shape_cast %227 : vector<16x16x128xf32> to vector<1x16x16x128xf32>
    tpu.vector_store %arg5[%c0_80, %c0_81, %c0_82, %c0_83], %230 {strides = array<i32>} : memref<1x16x16x128xf32, #tpu.memory_space<vmem>>, vector<1x16x16x128xf32>,
    return
  }
  func.func @transform_0(%arg0: i32) -> (i32, i32, i32, i32) {
    %c0_i32 = arith.constant 0 : i32
    %c0_i32_0 = arith.constant 0 : i32
    %c0_i32_1 = arith.constant 0 : i32
    %c0_i32_2 = arith.constant 0 : i32
    return %arg0, %c0_i32, %c0_i32_0, %c0_i32_1 : i32, i32, i32, i32
  }
  func.func @transform_1(%arg0: i32) -> (i32, i32, i32) {
    %c0_i32 = arith.constant 0 : i32
    %c0_i32_0 = arith.constant 0 : i32
    %c0_i32_1 = arith.constant 0 : i32
    %c0_i32_2 = arith.constant 0 : i32
    return %c0_i32, %c0_i32_0, %c0_i32_1 : i32, i32, i32
  }
  func.func @transform_2(%arg0: i32) -> (i32, i32, i32) {
    %c0_i32 = arith.constant 0 : i32
    %c0_i32_0 = arith.constant 0 : i32
    %c0_i32_1 = arith.constant 0 : i32
    %c0_i32_2 = arith.constant 0 : i32
    return %c0_i32, %c0_i32_0, %c0_i32_1 : i32, i32, i32
  }
  func.func @transform_3(%arg0: i32) -> (i32, i32, i32) {
    %c0_i32 = arith.constant 0 : i32
    %c0_i32_0 = arith.constant 0 : i32
    %c0_i32_1 = arith.constant 0 : i32
    %c0_i32_2 = arith.constant 0 : i32
    return %c0_i32, %c0_i32_0, %c0_i32_1 : i32, i32, i32
  }
  func.func @transform_4(%arg0: i32) -> (i32, i32, i32, i32) {
    %c0_i32 = arith.constant 0 : i32
    %c0_i32_0 = arith.constant 0 : i32
    %c0_i32_1 = arith.constant 0 : i32
    %c0_i32_2 = arith.constant 0 : i32
    return %arg0, %c0_i32, %c0_i32_0, %c0_i32_1 : i32, i32, i32, i32
  }
}

</mosaic_0001>

<bundles_post_ra>
// kernel: middle_flow_forward.1
= control target key start
LH: loop header
LB: loop body
LE: loop exit
PB: predicated region body
PF: predicated region fallthrough
CT: control target
= control target key end

     0   :  { %s4154_s15 = smov 0   ;;  %s6461_s0 = inlined_call_operand.vmem [shape: bf16[2,16,16,128], index: 0, kind: input, shape index: {}]   ;;  %s6462_s1 = inlined_call_operand.vmem [shape: f32[3,9,128], index: 1, kind: input, shape index: {}]   ;;  %s6463_s2 = inlined_call_operand.vmem [shape: bf16[3,128,128], index: 2, kind: input, shape index: {}]   ;;  %s6464_s3 = inlined_call_operand.vmem [shape: f32[3,1,128], index: 3, kind: input, shape index: {}]   ;;  %s6465_s4 = inlined_call_operand.vmem [shape: f32[2,16,16,128], index: 4, kind: output, shape index: {}]  }
   0x1 LB: > { %s3609_s16 = sadd.s32 4294967295, %s4126_s15   ;;  %p3613_p0 = scmp.ge.s32.totalorder %s4126_s15, 1  ;;  %s4126_s15 = sphi %s4154_s15, %s14_s15  }
   0x2   : > { %p162_p1 = scmp.lt.s32.totalorder %s4126_s15, 3 }
   0x4   : > { %p163_p2 = pnand %p3613_p0, %p162_p1 }
   0x6   : > { %166 = sbr.rel (%p163_p2) target bundleno = 910 (0x38e), region = 36 }
   0xb   : > { %v4089_v0 = vld [vmem:[%s6463_s2 + $0x38] sm:$0xff]   ;;  %p188_p3 = scmp.lt.s32.totalorder %s3609_s16, 1  ;;  %v492_v1 = vlaneseq  ;;  %v4168_v2 = vld [vmem:[%s6463_s2 + $0x30] sm:$0xff]   ;;  %v4128_v3 = vmov 0.0   ;;  %v4091_v5 = vld [vmem:[%s6463_s2 + $0x28] sm:$0xff]  }
   0xc   : > { %3920 = vmatprep.subr.bf16.mxu0 %v4089_v0  ;;  %4064 = vmatprep.subr.bf16.mxu1 %v4089_v0  ;;  %199 = vst [vmem:[#allocation2] sm:$0xff] %v4128_v3  ;;  %200 = vst [vmem:[#allocation2 + $0x8] sm:$0xff] %v4128_v3  ;;  %v4092_v8 = vld [vmem:[%s6463_s2 + $0x20] sm:$0xff]   ;;  %v4093_v31 = vld [vmem:[%s6463_s2 + $0x18] sm:$0xff]  }
   0xd   : > { %s6600_s16 = smov (!%p188_p3, %s3609_s16), 1  ;;  %201 = vst [vmem:[#allocation2 + $0x10] sm:$0x3] %v4128_v3  ;;  %202 = vst [vmem:[#allocation2 + $0x18] sm:$0xff] %v4128_v3  ;;  %3921 = vmatpush3.bf16.msra.mxu0 %v4089_v0  ;;  %4072 = vmatpush3.bf16.msra.mxu1 %v4089_v0  ;;  %v4172_v4 = vshrl.u32 %v492_v1, 7  ;;  %v4204_v12 = vld [vmem:[%s6462_s1] sm:$0xff] }
   0xe   : > { %203 = vst [vmem:[#allocation2 + $0x20] sm:$0xff] %v4128_v3  ;;  %204 = vst [vmem:[#allocation2 + $0x28] sm:$0x3] %v4128_v3  ;;  %3922 = vmatprep.subr.bf16.mxu0 %v4168_v2  ;;  %4065 = vmatprep.subr.bf16.mxu1 %v4168_v2  ;;  %s3688_s23 = sshll.u32 %s6600_s16, 7  ;;  %v4253_v41 = vld [vmem:[%s6463_s2 + $0x10] sm:$0xff]   ;;  %v4292_v61 = vld [vmem:[%s6463_s2 + $0x8] sm:$0xff]  }
   0xf   : > { %205 = vst [vmem:[#allocation2 + $0x30] sm:$0xff] %v4128_v3  ;;  %206 = vst [vmem:[#allocation2 + $0x38] sm:$0xff] %v4128_v3  ;;  %s4183_s26 = scalar_lea.vmem %s6461_s0, %s3688_s23  ;;  %v4186_v6 = vsub.s32 0, %v4172_v4  ;;  %v4189_v7 = vsub.s32 1, %v4172_v4  ;;  %v4197_v9 = vsub.s32 2, %v4172_v4  ;;  %v4207_v13 = vsub.s32 3, %v4172_v4 }
  0x10   : > { %207 = vst [vmem:[#allocation2 + $0x40] sm:$0x3] %v4128_v3  ;;  %208 = vst [vmem:[#allocation2 + $0x48] sm:$0xff] %v4128_v3  ;;  %v3691_v10 = vld [vmem:[%s4183_s26] sm:$0xff]   ;;  %v3818_v11 = vld [vmem:[%s4183_s26 + $0x8] sm:$0xff]   ;;  %v4210_v14 = vsub.s32 4, %v4172_v4 }
  0x11   : > { %209 = vst [vmem:[#allocation2 + $0x50] sm:$0xff] %v4128_v3  ;;  %210 = vst [vmem:[#allocation2 + $0x58] sm:$0x3] %v4128_v3  ;;  %3923 = vmatpush3.bf16.msra.mxu0 %v4168_v2  ;;  %4073 = vmatpush3.bf16.msra.mxu1 %v4168_v2  ;;  %v3692_v15 = vunpack.c.l.bf16 %v3691_v10  ;;  %v3693_v16 = vunpack.c.h.bf16 %v3691_v10  ;;  %v3696_v17 = vunpack.c.l.bf16 %v3818_v11  ;;  %v3697_v18 = vunpack.c.h.bf16 %v3818_v11  ;;  %v3819_v40 = vld [vmem:[%s4183_s26 + $0x10] sm:$0xff]   ;;  %v4258_v46 = vld [vmem:[%s4183_s26 + $0x18] sm:$0xff]   ;;  %s3689_s28 = sshll.u32 %s6600_s16, 8 }
  0x12   : > { %211 = vst [vmem:[#allocation2 + $0x60] sm:$0xff] %v4128_v3  ;;  %212 = vst [vmem:[#allocation2 + $0x68] sm:$0xff] %v4128_v3  ;;  %3924 = vmatprep.subr.bf16.mxu0 %v4091_v5  ;;  %4066 = vmatprep.subr.bf16.mxu1 %v4091_v5  ;;  %v4214_v21 = vrot.slane %v4204_v12, %v4186_v6  ;;  %v4218_v22 = vrot.slane %v4204_v12, %v4189_v7  ;;  %v4225_v24 = vsub.s32 5, %v4172_v4  ;;  %v4275_v51 = vld [vmem:[%s4183_s26 + $0x20] sm:$0xff]   ;;  %v4278_v52 = vld [vmem:[%s4183_s26 + $0x28] sm:$0xff]   ;;  %s6379_s5 = scalar_lea.vmem %s6465_s4, %s3689_s28 }
  0x13   : > { %213 = vst [vmem:[#allocation2 + $0x70] sm:$0x3] %v4128_v3  ;;  %214 = vst [vmem:[#allocation2 + $0x78] sm:$0xff] %v4128_v3  ;;  %v418_v19 = vld [vmem:[#allocation2 + $0x1] sm:$0xff]  ;;  %v4222_v23 = vrot.slane %v4204_v12, %v4197_v9  ;;  %v317_v25 = vmax.f32 %v3692_v15, 0.0  ;;  %v318_v26 = vmax.f32 %v3693_v16, 0.0  ;;  %v4247_v39 = vrot.slane %v4204_v12, %v4207_v13 }
  0x14   : > { %215 = vst [vmem:[#allocation2 + $0x80] sm:$0xff] %v4128_v3  ;;  %216 = vst [vmem:[#allocation2 + $0x88] sm:$0x3] %v4128_v3  ;;  %v419_v20 = vld [vmem:[#allocation2 + $0x9] sm:$0xff]  ;;  %v319_v27 = vmax.f32 %v3696_v17, 0.0  ;;  %v320_v28 = vmax.f32 %v3697_v18, 0.0  ;;  %v564_v33 = vmul.f32 %v4218_v22, %v418_v19  ;;  %v4265_v48 = vrot.slane %v4204_v12, %v4210_v14 }
  0x15   : > { %217 = vst [vmem:[#allocation2 + $0x90] sm:$0xff] %v4128_v3  ;;  %218 = vst [vmem:[#allocation2 + $0x98] sm:$0xff] %v4128_v3  ;;  %3925 = vmatpush3.bf16.msra.mxu0 %v4091_v5  ;;  %4074 = vmatpush3.bf16.msra.mxu1 %v4091_v5  ;;  %v454_v29 = vld [vmem:[#allocation2 + $0x2] sm:$0xff]  ;;  %v455_v30 = vld [vmem:[#allocation2 + $0xa] sm:$0xff]  ;;  %v496_v32 = vmul.f32 0.0, %v4214_v21  ;;  %v565_v34 = vmul.f32 %v4218_v22, %v419_v20  ;;  %v4234_v35 = vsub.s32 6, %v4172_v4  ;;  %v3700_v55 = vunpack.c.l.bf16 %v3819_v40 }
  0x16   : > { %219 = vst [vmem:[#allocation2 + $0xa0] sm:$0x3] %v4128_v3  ;;  %220 = vst [vmem:[#allocation2 + $0xa8] sm:$0xff] %v4128_v3  ;;  %3926 = vmatprep.subr.bf16.mxu0 %v4092_v8  ;;  %4067 = vmatprep.subr.bf16.mxu1 %v4092_v8  ;;  %v4237_v36 = vmul.f32 %v4218_v22, %v317_v25  ;;  %v4240_v37 = vmul.f32 %v4218_v22, %v318_v26  ;;  %v4272_v50 = vsub.s32 7, %v4172_v4 }
  0x17   : > { %221 = vst [vmem:[#allocation2 + $0xb0] sm:$0xff] %v4128_v3  ;;  %222 = vst [vmem:[#allocation2 + $0xb8] sm:$0x3] %v4128_v3  ;;  %v4243_v38 = vmul.f32 %v4218_v22, %v319_v27  ;;  %v596_v42 = vadd.f32 %v564_v33, %v496_v32  ;;  %v597_v43 = vadd.f32 %v565_v34, %v496_v32  ;;  %v3701_v56 = vunpack.c.h.bf16 %v3819_v40 }
  0x18   : > { %223 = vst [vmem:[#allocation2 + $0xc0] sm:$0xff] %v4128_v3  ;;  %224 = vst [vmem:[#allocation2 + $0xc8] sm:$0xff] %v4128_v3  ;;  %v632_v44 = vmul.f32 %v4222_v23, %v454_v29  ;;  %v633_v45 = vmul.f32 %v4222_v23, %v455_v30  ;;  %v4261_v47 = vmul.f32 %v4218_v22, %v320_v28  ;;  %v4301_v0 = vmax.f32 %v3700_v55, 0.0  ;;  %v4336_v30 = vld [vmem:[%s6463_s2] sm:$0xff]  }
  0x19   : > { %225 = vst [vmem:[#allocation2 + $0xd0] sm:$0x3] %v4128_v3  ;;  %226 = vst [vmem:[#allocation2 + $0xd8] sm:$0xff] %v4128_v3  ;;  %3927 = vmatpush3.bf16.msra.mxu0 %v4092_v8  ;;  %4075 = vmatpush3.bf16.msra.mxu1 %v4092_v8  ;;  %v4269_v49 = vrot.slane %v4204_v12, %v4225_v24  ;;  %v4282_v54 = vrot.slane %v4204_v12, %v4234_v35  ;;  %v4303_v1 = vmax.f32 %v3701_v56, 0.0 }
  0x1a   : > { %227 = vst [vmem:[#allocation2 + $0xe0] sm:$0xff] %v4128_v3  ;;  %228 = vst [vmem:[#allocation2 + $0xe8] sm:$0x3] %v4128_v3  ;;  %3928 = vmatprep.subr.bf16.mxu0 %v4093_v31  ;;  %v664_v53 = vadd.f32 %v632_v44, %v596_v42  ;;  %4068 = vmatprep.subr.bf16.mxu1 %v4093_v31  ;;  %v665_v57 = vadd.f32 %v633_v45, %v597_v43  ;;  %v3704_v2 = vunpack.c.l.bf16 %v4258_v46 }
  0x1b   : > { %229 = vst [vmem:[#allocation2 + $0xf0] sm:$0xff] %v4128_v3  ;;  %230 = vst [vmem:[#allocation2 + $0xf8] sm:$0xff] %v4128_v3  ;;  %v768_v58 = vmul.f32 %v4265_v48, %v317_v25  ;;  %v769_v59 = vmul.f32 %v4265_v48, %v318_v26  ;;  %v4287_v60 = vmul.f32 %v4265_v48, %v319_v27 }
  0x1c   : > { %231 = vst [vmem:[#allocation2 + $0x100] sm:$0x3] %v4128_v3  ;;  %232 = vst [vmem:[#allocation2 + $0x108] sm:$0xff] %v4128_v3  ;;  %v4295_v62 = vmul.f32 %v4265_v48, %v320_v28  ;;  %v4299_v63 = vrot.slane %v4204_v12, %v4272_v50  ;;  %v4313_v12 = vld [vmem:[%s6462_s1 + $0x8] ss:$0 sm:$0xff]  ;;  %v4325_v17 = vmul.f32 %v4218_v22, %v4301_v0 }
  0x1d   : > { %233 = vst [vmem:[#allocation2 + $0x110] sm:$0xff] %v4128_v3  ;;  %234 = vst [vmem:[#allocation2 + $0x118] sm:$0x3] %v4128_v3  ;;  %3929 = vmatpush3.bf16.msra.mxu0 %v4093_v31  ;;  %4076 = vmatpush3.bf16.msra.mxu1 %v4093_v31  ;;  %v4343_v42 = vmul.f32 %v4218_v22, %v4303_v1 }
  0x1e   : > { %235 = vst [vmem:[#allocation2 + $0x120] sm:$0xff] %v4128_v3  ;;  %236 = vst [vmem:[#allocation2 + $0x128] sm:$0xff] %v4128_v3  ;;  %3930 = vmatprep.subr.bf16.mxu0 %v4253_v41  ;;  %v4316_v15 = vmul.f32 %v4299_v63, %v319_v27  ;;  %v4319_v16 = vmul.f32 %v4299_v63, %v320_v28  ;;  %4069 = vmatprep.subr.bf16.mxu1 %v4253_v41 }
  0x1f   : > { %237 = vst [vmem:[#allocation2 + $0x130] sm:$0x3] %v4128_v3  ;;  %238 = vst [vmem:[#allocation2 + $0x138] sm:$0xff] %v4128_v3 }
  0x20   : > { %239 = vst [vmem:[#allocation2 + $0x140] sm:$0xff] %v4128_v3  ;;  %240 = vst [vmem:[#allocation2 + $0x148] sm:$0x3] %v4128_v3 }
  0x21   : > { %241 = vst [vmem:[#allocation2 + $0x150] sm:$0xff] %v4128_v3  ;;  %242 = vst [vmem:[#allocation2 + $0x158] sm:$0xff] %v4128_v3  ;;  %3931 = vmatpush3.bf16.msra.mxu0 %v4253_v41  ;;  %4077 = vmatpush3.bf16.msra.mxu1 %v4253_v41 }
  0x22   : > { %243 = vst [vmem:[#allocation2 + $0x160] sm:$0x3] %v4128_v3  ;;  %244 = vst [vmem:[#allocation2 + $0x168] sm:$0xff] %v4128_v3  ;;  %3932 = vmatprep.subr.bf16.mxu0 %v4292_v61  ;;  %4070 = vmatprep.subr.bf16.mxu1 %v4292_v61 }
  0x23   : > { %245 = vst [vmem:[#allocation2 + $0x170] sm:$0xff] %v4128_v3  ;;  %246 = vst [vmem:[#allocation2 + $0x178] sm:$0x3] %v4128_v3 }
  0x24   : > { %247 = vst [vmem:[#allocation2 + $0x180] sm:$0xff] %v4128_v3  ;;  %248 = vst [vmem:[#allocation2 + $0x188] sm:$0xff] %v4128_v3 }
  0x25   : > { %249 = vst [vmem:[#allocation2 + $0x190] sm:$0x3] %v4128_v3  ;;  %250 = vst [vmem:[#allocation2 + $0x198] sm:$0xff] %v4128_v3  ;;  %3933 = vmatpush3.bf16.msra.mxu0 %v4292_v61  ;;  %4078 = vmatpush3.bf16.msra.mxu1 %v4292_v61  ;;  %v4386_v61 = vmax.f32 %v3704_v2, 0.0 }
  0x26   : > { %251 = vst [vmem:[#allocation2 + $0x1a0] sm:$0xff] %v4128_v3  ;;  %252 = vst [vmem:[#allocation2 + $0x1a8] sm:$0x3] %v4128_v3  ;;  %v3705_v3 = vunpack.c.h.bf16 %v4258_v46  ;;  %3934 = vmatprep.subr.bf16.mxu0 %v4336_v30  ;;  %4071 = vmatprep.subr.bf16.mxu1 %v4336_v30 }
  0x27   : > { %6508 = vst [vmem:[#allocation3_spill] sm:$0xff] %v4186_v6  ;;  %6509 = vst [vmem:[#allocation4_spill] sm:$0xff] %v4189_v7  ;;  %v4401_v46 = vmul.f32 %v4218_v22, %v4386_v61 }
  0x28   : > { %6510 = vst [vmem:[#allocation5_spill] sm:$0xff] %v4197_v9  ;;  %6511 = vst [vmem:[#allocation6_spill] sm:$0xff] %v4207_v13 }
  0x29   : > { %6512 = vst [vmem:[#allocation7_spill] sm:$0xff] %v4210_v14  ;;  %6513 = vst [vmem:[#allocation8_spill] sm:$0xff] %v4225_v24  ;;  %3935 = vmatpush3.bf16.msra.mxu0 %v4336_v30  ;;  %4079 = vmatpush3.bf16.msra.mxu1 %v4336_v30 }
  0x2a   : > { %6514 = vst [vmem:[#allocation9_spill] sm:$0xff] %v4234_v35  ;;  %350 = vst [vmem:[#allocation2 + $0x19] sm:$0xff] %v317_v25 }
  0x2b   : > { %351 = vst [vmem:[#allocation2 + $0x21] sm:$0xff] %v318_v26  ;;  %352 = vst [vmem:[#allocation2 + $0x31] sm:$0xff] %v319_v27 }
  0x2c   : > { %353 = vst [vmem:[#allocation2 + $0x39] sm:$0xff] %v320_v28  ;;  %6515 = vst [vmem:[#allocation10_spill] sm:$0xff] %v4265_v48 }
  0x2d   : > { %6516 = vst [vmem:[#allocation11_spill] sm:$0xff] %v4272_v50  ;;  %354 = vst [vmem:[#allocation2 + $0x49] sm:$0xff] %v4301_v0 }
  0x2e   : > { %355 = vst [vmem:[#allocation2 + $0x51] sm:$0xff] %v4303_v1  ;;  %356 = vst [vmem:[#allocation2 + $0x61] sm:$0xff] %v4386_v61 }
  0x31   : > { %v384_v8 = vld [vmem:[#allocation2 + $0x18] sm:$0xff] }
  0x32   : > { %v385_v10 = vld [vmem:[#allocation2 + $0x20] sm:$0xff]  ;;  %v386_v11 = vld [vmem:[#allocation2 + $0x30] sm:$0xff]  ;;  %v498_v26 = vmul.f32 %v4214_v21, %v384_v8  ;;  %v700_v29 = vmul.f32 %v4247_v39, %v384_v8 }
  0x33   : > { %v387_v19 = vld [vmem:[#allocation2 + $0x38] sm:$0xff]  ;;  %v457_v25 = vld [vmem:[#allocation2 + $0x22] sm:$0xff]  ;;  %v499_v27 = vmul.f32 %v4214_v21, %v385_v10  ;;  %v500_v28 = vmul.f32 %v4214_v21, %v386_v11  ;;  %v701_v40 = vmul.f32 %v4247_v39, %v385_v10  ;;  %v904_v4 = vmul.f32 %v4282_v54, %v386_v11 }
  0x34   : > { %v456_v20 = vld [vmem:[#allocation2 + $0x1a] sm:$0xff]  ;;  %v458_v31 = vld [vmem:[#allocation2 + $0x32] sm:$0xff]  ;;  %v501_v33 = vmul.f32 %v4214_v21, %v387_v19  ;;  %v635_v34 = vmul.f32 %v4222_v23, %v457_v25  ;;  %v598_v43 = vadd.f32 %v4237_v36, %v498_v26  ;;  %v732_v8 = vadd.f32 %v700_v29, %v664_v53 }
  0x35   : > { %v459_v32 = vld [vmem:[#allocation2 + $0x3a] sm:$0xff]  ;;  %v599_v44 = vadd.f32 %v4240_v37, %v499_v27  ;;  %v600_v45 = vadd.f32 %v4243_v38, %v500_v28  ;;  %v836_v55 = vmul.f32 %v4269_v49, %v456_v20  ;;  %v733_v10 = vadd.f32 %v701_v40, %v665_v57 }
  0x36   : > { %v637_v56 = vmul.f32 %v4222_v23, %v459_v32  ;;  %v837_v18 = vmul.f32 %v4269_v49, %v457_v25  ;;  %v601_v5 = vadd.f32 %v4261_v47, %v501_v33  ;;  %v905_v36 = vmul.f32 %v4282_v54, %v387_v19  ;;  %v4362_v47 = vld [vmem:[#allocation2 + $0x48] sm:$0xff] }
  0x37   : > { %v1040_v37 = vmul.f32 %v4313_v12, %v458_v31  ;;  %v800_v38 = vadd.f32 %v768_v58, %v732_v8  ;;  %v801_v26 = vadd.f32 %v769_v59, %v733_v10  ;;  %v634_v27 = vmul.f32 %v4222_v23, %v456_v20  ;;  %v389_v59 = vld [vmem:[#allocation2 + $0x50] sm:$0xff] }
  0x38   : > { %v667_v28 = vadd.f32 %v635_v34, %v599_v44  ;;  %v1041_v53 = vmul.f32 %v4313_v12, %v459_v32  ;;  %v702_v57 = vmul.f32 %v4247_v39, %v386_v11  ;;  %v703_v25 = vmul.f32 %v4247_v39, %v387_v19  ;;  %v4375_v10 = vld [vmem:[#allocation2 + $0x4a] sm:$0xff] }
  0x39   : > { %v838_v29 = vmul.f32 %v4269_v49, %v458_v31  ;;  %v868_v41 = vadd.f32 %v836_v55, %v800_v38  ;;  %v869_v58 = vadd.f32 %v837_v18, %v801_v26  ;;  %v666_v20 = vadd.f32 %v634_v27, %v598_v43  ;;  %v461_v26 = vld [vmem:[#allocation2 + $0x52] sm:$0xff] }
  0x3a   : > { %v839_v33 = vmul.f32 %v4269_v49, %v459_v32  ;;  %v735_v34 = vadd.f32 %v703_v25, %v667_v28  ;;  %v906_v40 = vmul.f32 %v4282_v54, %v4362_v47  ;;  %v907_v44 = vmul.f32 %v4282_v54, %v389_v59 }
  0x3b   : > { %v974_v11 = vmul.f32 %v4299_v63, %v4301_v0  ;;  %v936_v19 = vadd.f32 %v904_v4, %v868_v41  ;;  %v937_v8 = vadd.f32 %v905_v36, %v869_v58  ;;  %v734_v18 = vadd.f32 %v702_v57, %v666_v20 }
  0x3c   : > { %v975_v43 = vmul.f32 %v4299_v63, %v4303_v1  ;;  %v803_v32 = vadd.f32 %v4295_v62, %v735_v34  ;;  %v1042_v55 = vmul.f32 %v4313_v12, %v4375_v10  ;;  %v4390_v4 = vmax.f32 %v3705_v3, 0.0 }
  0x3d   : > { %v1004_v36 = vadd.f32 %v4316_v15, %v936_v19  ;;  %v1005_v38 = vadd.f32 %v4319_v16, %v937_v8  ;;  %v802_v27 = vadd.f32 %v4287_v60, %v734_v18  ;;  %v636_v62 = vmul.f32 %v4222_v23, %v458_v31 }
  0x3e   : > { %v871_v28 = vadd.f32 %v839_v33, %v803_v32  ;;  %v1043_v57 = vmul.f32 %v4313_v12, %v461_v26  ;;  %357 = vst [vmem:[#allocation2 + $0x69] sm:$0xff] %v4390_v4  ;;  %v669_v2 = vadd.f32 %v637_v56, %v601_v5  ;;  %v704_v31 = vmul.f32 %v4247_v39, %v4362_v47 }
  0x3f   : > { %v1072_v3 = vadd.f32 %v1040_v37, %v1004_v36  ;;  %v1073_v15 = vadd.f32 %v1041_v53, %v1005_v38  ;;  %v870_v16 = vadd.f32 %v838_v29, %v802_v27  ;;  %v668_v60 = vadd.f32 %v636_v62, %v600_v45 }
  0x40   : > { %v939_v25 = vadd.f32 %v907_v44, %v871_v28  ;;  %v705_v41 = vmul.f32 %v4247_v39, %v389_v59  ;;  %v772_v58 = vmul.f32 %v4265_v48, %v4301_v0  ;;  %v773_v5 = vmul.f32 %v4265_v48, %v4303_v1 }
  0x41   : > { %v1104_v20 = vpack.c.bf16 %v1073_v15, %v1072_v3  ;;  %v938_v33 = vadd.f32 %v906_v40, %v870_v16  ;;  %v840_v30 = vmul.f32 %v4269_v49, %v4375_v10  ;;  %v736_v37 = vadd.f32 %v704_v31, %v668_v60 }
  0x42   : > { %v1007_v56 = vadd.f32 %v975_v43, %v939_v25  ;;  %v737_v45 = vadd.f32 %v705_v41, %v669_v2  ;;  %v841_v53 = vmul.f32 %v4269_v49, %v461_v26  ;;  %v4416_v34 = vmul.f32 %v4218_v22, %v4390_v4 }
  0x43   : > { %3936 = vmatprep.mubr.bf16.mxu0 %v1104_v20  ;;  %v1006_v29 = vadd.f32 %v974_v11, %v938_v33  ;;  %v976_v0 = vmul.f32 %v4299_v63, %v4386_v61  ;;  %v6517_v40 = vunpack.c.l.bf16 %v4275_v51  ;;  %v804_v19 = vadd.f32 %v772_v58, %v736_v37  ;;  %v390_v11 = vld [vmem:[#allocation2 + $0x60] sm:$0xff] }
  0x44   : > { %v1075_v44 = vadd.f32 %v1043_v57, %v1007_v56  ;;  %v805_v8 = vadd.f32 %v773_v5, %v737_v45  ;;  %v6518_v18 = vunpack.c.h.bf16 %v4275_v51  ;;  %v977_v38 = vmul.f32 %v4299_v63, %v4390_v4 }
  0x45   : > { %v4422_v1 = vmax.f32 %v6517_v40, 0.0  ;;  %v1074_v32 = vadd.f32 %v1042_v55, %v1006_v29  ;;  %v391_v36 = vld [vmem:[#allocation2 + $0x68] sm:$0xff]  ;;  %v502_v27 = vmul.f32 %v4214_v21, %v4362_v47  ;;  %v503_v62 = vmul.f32 %v4214_v21, %v389_v59 }
  0x46   : > { %v4426_v43 = vmax.f32 %v6518_v18, 0.0  ;;  %v462_v28 = vld [vmem:[#allocation2 + $0x62] sm:$0xff]  ;;  %v463_v57 = vld [vmem:[#allocation2 + $0x6a] sm:$0xff]  ;;  %v872_v2 = vadd.f32 %v840_v30, %v804_v19  ;;  %v873_v3 = vadd.f32 %v841_v53, %v805_v8  ;;  %v908_v51 = vmul.f32 %v4282_v54, %v390_v11 }
  0x47   : > { %358 = vst [vmem:[#allocation2 + $0x79] sm:$0xff] %v4422_v1  ;;  %v909_v55 = vmul.f32 %v4282_v54, %v391_v36  ;;  %v1105_v15 = vpack.c.bf16 %v1075_v44, %v1074_v32  ;;  %v1044_v16 = vmul.f32 %v4313_v12, %v462_v28  ;;  %v1045_v60 = vmul.f32 %v4313_v12, %v463_v57 }
  0x48   : > { %359 = vst [vmem:[#allocation2 + $0x81] sm:$0xff] %v4426_v43  ;;  %v4441_v47 = vmul.f32 %v4218_v22, %v4422_v1  ;;  %v940_v59 = vadd.f32 %v908_v51, %v872_v2  ;;  %v602_v31 = vadd.f32 %v4325_v17, %v502_v27  ;;  %v603_v41 = vadd.f32 %v4343_v42, %v503_v62 }
  0x49   : > { %v941_v25 = vadd.f32 %v909_v55, %v873_v3  ;;  %3937 = vmatmul.mubr.bf16.vlgmr.msra.gmra.mxu0 %v1105_v15  ;;  %v638_v58 = vmul.f32 %v4222_v23, %v4375_v10  ;;  %v639_v20 = vmul.f32 %v4222_v23, %v461_v26  ;;  %v706_v33 = vmul.f32 %v4247_v39, %v390_v11 }
  0x4a   : > { %v707_v5 = vmul.f32 %v4247_v39, %v391_v36  ;;  %v1008_v30 = vadd.f32 %v976_v0, %v940_v59  ;;  %v4452_v37 = vmul.f32 %v4218_v22, %v4426_v43  ;;  %v774_v17 = vmul.f32 %v4265_v48, %v4386_v61 }
  0x4b   : > { %v1009_v56 = vadd.f32 %v977_v38, %v941_v25  ;;  %v670_v42 = vadd.f32 %v638_v58, %v602_v31  ;;  %v671_v45 = vadd.f32 %v639_v20, %v603_v41  ;;  %v775_v10 = vmul.f32 %v4265_v48, %v4390_v4 }
  0x4c   : > { %v842_v26 = vmul.f32 %v4269_v49, %v462_v28  ;;  %v1076_v53 = vadd.f32 %v1044_v16, %v1008_v30  ;;  %v843_v40 = vmul.f32 %v4269_v49, %v463_v57  ;;  %v978_v0 = vmul.f32 %v4299_v63, %v4422_v1 }
  0x4d   : > { %v1077_v29 = vadd.f32 %v1045_v60, %v1009_v56  ;;  %v738_v61 = vadd.f32 %v706_v33, %v670_v42  ;;  %v739_v18 = vadd.f32 %v707_v5, %v671_v45  ;;  %v979_v4 = vmul.f32 %v4299_v63, %v4426_v43  ;;  %v3824_v42 = vld [vmem:[%s4183_s26 + $0x38] sm:$0xff]  }
  0x4e   : > { %v4462_v44 = vld [vmem:[#allocation2 + $0x78] sm:$0xff]  ;;  %v3713_v32 = vunpack.c.h.bf16 %v4278_v52  ;;  %v6519_v55 = vunpack.c.l.bf16 %v4278_v52  ;;  %v504_v59 = vmul.f32 %v4214_v21, %v390_v11  ;;  %v505_v25 = vmul.f32 %v4214_v21, %v391_v36 }
  0x4f   : > { %v4464_v19 = vld [vmem:[#allocation2 + $0x80] sm:$0xff]  ;;  %v1106_v38 = vpack.c.bf16 %v1077_v29, %v1076_v53  ;;  %v910_v27 = vmul.f32 %v4282_v54, %v4462_v44  ;;  %v806_v3 = vadd.f32 %v774_v17, %v738_v61  ;;  %v807_v51 = vadd.f32 %v775_v10, %v739_v18  ;;  %v3826_v18 = vld [vmem:[%s4183_s26 + $0x48] sm:$0xff]  }
  0x50   : > { %v4466_v8 = vld [vmem:[#allocation2 + $0x7a] sm:$0xff]  ;;  %v911_v62 = vmul.f32 %v4282_v54, %v4464_v19  ;;  %v4479_v15 = vmax.f32 %v6519_v55, 0.0  ;;  %v4481_v16 = vmax.f32 %v3713_v32, 0.0  ;;  %v4483_v60 = vld [vmem:[#allocation2 + $0x82] sm:$0xff]  ;;  %v640_v31 = vmul.f32 %v4222_v23, %v462_v28 }
  0x51   : > { %v1046_v2 = vmul.f32 %v4313_v12, %v4466_v8  ;;  %3940 = vmatprep.mubr.bf16.mxu0 %v1106_v38  ;;  %v641_v41 = vmul.f32 %v4222_v23, %v463_v57  ;;  %v874_v58 = vadd.f32 %v842_v26, %v806_v3  ;;  %v875_v20 = vadd.f32 %v843_v40, %v807_v51  ;;  %v3825_v26 = vld [vmem:[%s4183_s26 + $0x40] sm:$0xff]  }
  0x52   : > { %v1047_v52 = vmul.f32 %v4313_v12, %v4483_v60  ;;  %360 = vst [vmem:[#allocation2 + $0x91] sm:$0xff] %v4479_v15  ;;  %361 = vst [vmem:[#allocation2 + $0x99] sm:$0xff] %v4481_v16  ;;  %v4495_v11 = vmul.f32 %v4218_v22, %v4479_v15  ;;  %v604_v36 = vadd.f32 %v4401_v46, %v504_v59  ;;  %v3720_v38 = vunpack.c.l.bf16 %v3824_v42 }
  0x53   : > { %v605_v28 = vadd.f32 %v4416_v34, %v505_v25  ;;  %v708_v57 = vmul.f32 %v4247_v39, %v4462_v44  ;;  %v709_v33 = vmul.f32 %v4247_v39, %v4464_v19  ;;  %v942_v5 = vadd.f32 %v910_v27, %v874_v58 }
  0x54   : > { %v943_v30 = vadd.f32 %v911_v62, %v875_v20  ;;  %v4505_v56 = vmul.f32 %v4218_v22, %v4481_v16  ;;  %v776_v17 = vmul.f32 %v4265_v48, %v4422_v1  ;;  %v672_v46 = vadd.f32 %v640_v31, %v604_v36 }
  0x55   : > { %v673_v45 = vadd.f32 %v641_v41, %v605_v28  ;;  %v777_v34 = vmul.f32 %v4265_v48, %v4426_v43  ;;  %v844_v10 = vmul.f32 %v4269_v49, %v4466_v8  ;;  %v1010_v53 = vadd.f32 %v978_v0, %v942_v5 }
  0x56   : > { %6520 = vst [vmem:[#allocation12_spill] sm:$0xff] %v4505_v56  ;;  %v1011_v29 = vadd.f32 %v979_v4, %v943_v30  ;;  %v845_v40 = vmul.f32 %v4269_v49, %v4483_v60  ;;  %v980_v61 = vmul.f32 %v4299_v63, %v4479_v15  ;;  %v740_v1 = vadd.f32 %v708_v57, %v672_v46 }
  0x57   : > { %v741_v32 = vadd.f32 %v709_v33, %v673_v45  ;;  %v3721_v27 = vunpack.c.h.bf16 %v3824_v42  ;;  %v1078_v62 = vadd.f32 %v1046_v2, %v1010_v53  ;;  %v3724_v43 = vunpack.c.l.bf16 %v3825_v26 }
  0x58   : > { %v1079_v3 = vadd.f32 %v1047_v52, %v1011_v29  ;;  %v3725_v51 = vunpack.c.h.bf16 %v3825_v26  ;;  %v808_v0 = vadd.f32 %v776_v17, %v740_v1  ;;  %v3728_v25 = vunpack.c.l.bf16 %v3826_v18  ;;  %v3823_v1 = vld [vmem:[%s4183_s26 + $0x30] sm:$0xff]  }
  0x59   : > { %v4520_v55 = vld [vmem:[#allocation2 + $0x90] sm:$0xff]  ;;  %v4522_v59 = vld [vmem:[#allocation2 + $0x98] sm:$0xff]  ;;  %v809_v4 = vadd.f32 %v777_v34, %v741_v32  ;;  %v3729_v31 = vunpack.c.h.bf16 %v3826_v18  ;;  %v981_v52 = vmul.f32 %v4299_v63, %v4481_v16  ;;  %v4534_v33 = vmax.f32 %v3720_v38, 0.0 }
  0x5a   : > { %v1107_v41 = vpack.c.bf16 %v1079_v3, %v1078_v62  ;;  %v4524_v58 = vld [vmem:[#allocation2 + $0x92] sm:$0xff]  ;;  %v912_v20 = vmul.f32 %v4282_v54, %v4520_v55  ;;  %v913_v2 = vmul.f32 %v4282_v54, %v4522_v59  ;;  %v876_v36 = vadd.f32 %v844_v10, %v808_v0  ;;  %v4536_v5 = vld [vmem:[#allocation2 + $0x9a] sm:$0xff] }
  0x5b   : > { %v877_v28 = vadd.f32 %v845_v40, %v809_v4  ;;  %v1048_v57 = vmul.f32 %v4313_v12, %v4524_v58  ;;  %6521 = vst [vmem:[#allocation13_spill] sm:$0xff] %v4534_v33  ;;  %v4538_v30 = vmax.f32 %v3721_v27, 0.0  ;;  %v4540_v17 = vmax.f32 %v3724_v43, 0.0  ;;  %364 = vst [vmem:[#allocation2 + $0xc1] sm:$0xff] %v4534_v33 }
  0x5c   : > { %3941 = vmatmul.mubr.bf16.gmra.mxu0 %v1107_v41  ;;  %v4542_v42 = vmax.f32 %v3725_v51, 0.0  ;;  %v335_v46 = vmax.f32 %v3728_v25, 0.0  ;;  %v944_v45 = vadd.f32 %v912_v20, %v876_v36  ;;  %v1049_v10 = vmul.f32 %v4313_v12, %v4536_v5 }
  0x5d   : > { %6522 = vst [vmem:[#allocation14_spill] sm:$0xff] %v4538_v30  ;;  %6523 = vst [vmem:[#allocation15_spill] sm:$0xff] %v4540_v17  ;;  %v945_v34 = vadd.f32 %v913_v2, %v877_v28  ;;  %v336_v26 = vmax.f32 %v3729_v31, 0.0  ;;  %v580_v53 = vmul.f32 %v4218_v22, %v4534_v33  ;;  %v581_v29 = vmul.f32 %v4218_v22, %v4538_v30 }
  0x5e   : > { %6524 = vst [vmem:[#allocation16_spill] sm:$0xff] %v4542_v42  ;;  %365 = vst [vmem:[#allocation2 + $0xc9] sm:$0xff] %v4538_v30  ;;  %v4556_v40 = vmul.f32 %v4218_v22, %v4540_v17  ;;  %v4560_v18 = vmul.f32 %v4218_v22, %v4542_v42  ;;  %v1012_v32 = vadd.f32 %v980_v61, %v944_v45  ;;  %v3716_v31 = vunpack.c.l.bf16 %v3823_v1 }
  0x5f   : > { %366 = vst [vmem:[#allocation2 + $0xd9] sm:$0xff] %v4540_v17  ;;  %367 = vst [vmem:[#allocation2 + $0xe1] sm:$0xff] %v4542_v42  ;;  %v1013_v38 = vadd.f32 %v981_v52, %v945_v34  ;;  %v584_v27 = vmul.f32 %v4218_v22, %v335_v46  ;;  %v585_v62 = vmul.f32 %v4218_v22, %v336_v26  ;;  %v3717_v20 = vunpack.c.h.bf16 %v3823_v1 }
  0x60   : > { %368 = vst [vmem:[#allocation2 + $0xf1] sm:$0xff] %v335_v46  ;;  %369 = vst [vmem:[#allocation2 + $0xf9] sm:$0xff] %v336_v26  ;;  %v4567_v3 = vmul.f32 %v4265_v48, %v4540_v17  ;;  %v4571_v43 = vmul.f32 %v4265_v48, %v4542_v42  ;;  %v4574_v51 = vmul.f32 %v4265_v48, %v335_v46  ;;  %v4589_v28 = vmax.f32 %v3716_v31, 0.0 }
  0x61   : > { %v4577_v0 = vmul.f32 %v4265_v48, %v336_v26  ;;  %v1080_v61 = vadd.f32 %v1048_v57, %v1012_v32  ;;  %v1081_v4 = vadd.f32 %v1049_v10, %v1013_v38  ;;  %v4580_v25 = vmul.f32 %v4299_v63, %v335_v46 }
  0x62   : > { %v4583_v41 = vmul.f32 %v4299_v63, %v336_v26  ;;  %v506_v2 = vmul.f32 %v4214_v21, %v4462_v44  ;;  %v507_v52 = vmul.f32 %v4214_v21, %v4464_v19  ;;  %6525 = vst [vmem:[#allocation17_spill] sm:$0xff] %v4589_v28  ;;  %v642_v57 = vmul.f32 %v4222_v23, %v4466_v8  ;;  %v4595_v45 = vld [vmem:[#allocation2 + $0xc0] sm:$0xff] }
  0x63   : > { %v1108_v36 = vpack.c.bf16 %v1081_v4, %v1080_v61  ;;  %v643_v46 = vmul.f32 %v4222_v23, %v4483_v60  ;;  %6526 = vst [vmem:[#allocation18_spill] sm:$0xff] %v4595_v45  ;;  %v4597_v34 = vmax.f32 %v3717_v20, 0.0  ;;  %v710_v19 = vmul.f32 %v4247_v39, %v4520_v55  ;;  %362 = vst [vmem:[#allocation2 + $0xa9] sm:$0xff] %v4589_v28 }
  0x64   : > { %v606_v10 = vadd.f32 %v4441_v47, %v506_v2  ;;  %v607_v44 = vadd.f32 %v4452_v37, %v507_v52  ;;  %v512_v60 = vmul.f32 %v4214_v21, %v4595_v45  ;;  %v4614_v47 = vmul.f32 %v4218_v22, %v4589_v28 }
  0x65   : > { %6527 = vst [vmem:[#allocation19_spill] sm:$0xff] %v4597_v34  ;;  %3944 = vmatprep.mubr.bf16.mxu0 %v1108_v36  ;;  %v4603_v26 = vld [vmem:[#allocation2 + $0xc8] sm:$0xff]  ;;  %v711_v37 = vmul.f32 %v4247_v39, %v4522_v59  ;;  %v778_v32 = vmul.f32 %v4265_v48, %v4479_v15  ;;  %363 = vst [vmem:[#allocation2 + $0xb1] sm:$0xff] %v4597_v34  ;;  %v779_v15 = vmul.f32 %v4265_v48, %v4481_v16 }
  0x66   : > { %6528 = vst [vmem:[#allocation20_spill] sm:$0xff] %v4603_v26  ;;  %v4605_v1 = vld [vmem:[#allocation2 + $0xd8] sm:$0xff]  ;;  %v4607_v8 = vld [vmem:[#allocation2 + $0xe0] sm:$0xff]  ;;  %6529 = vst [vmem:[#allocation21_spill] sm:$0xff] %v4614_v47  ;;  %v513_v31 = vmul.f32 %v4214_v21, %v4603_v26  ;;  %v612_v50 = vadd.f32 %v580_v53, %v512_v60  ;;  %v4653_v6 = vmul.f32 %v4218_v22, %v4597_v34 }
  0x67   : > { %v4620_v38 = vld [vmem:[#allocation2 + $0xf0] sm:$0xff]  ;;  %v4622_v61 = vld [vmem:[#allocation2 + $0xf8] sm:$0xff]  ;;  %v4624_v4 = vld [vmem:[#allocation2 + $0xc2] sm:$0xff]  ;;  %v716_v20 = vmul.f32 %v4247_v39, %v4605_v1  ;;  %v717_v2 = vmul.f32 %v4247_v39, %v4607_v8 }
  0x68   : > { %6530 = vst [vmem:[#allocation22_spill] sm:$0xff] %v4624_v4  ;;  %v4635_v52 = vld [vmem:[#allocation2 + $0xca] sm:$0xff]  ;;  %v4637_v36 = vld [vmem:[#allocation2 + $0xda] sm:$0xff]  ;;  %v516_v35 = vmul.f32 %v4214_v21, %v4620_v38  ;;  %v517_v24 = vmul.f32 %v4214_v21, %v4622_v61  ;;  %v648_v14 = vmul.f32 %v4222_v23, %v4624_v4  ;;  %v4645_v13 = vld [vmem:[#allocation2 + $0xe2] sm:$0xff]  ;;  %v613_v9 = vadd.f32 %v581_v29, %v513_v31 }
  0x69   : > { %6531 = vst [vmem:[#allocation23_spill] sm:$0xff] %v4635_v52  ;;  %v649_v16 = vmul.f32 %v4222_v23, %v4635_v52  ;;  %v852_v7 = vmul.f32 %v4269_v49, %v4637_v36  ;;  %6532 = vst [vmem:[#allocation24_spill] sm:$0xff] %v4653_v6  ;;  %v4655_v42 = vld [vmem:[#allocation2 + $0xf2] sm:$0xff]  ;;  %v853_v29 = vmul.f32 %v4269_v49, %v4645_v13  ;;  %v4663_v31 = vld [vmem:[#allocation2 + $0xfa] sm:$0xff] }
  0x6a   : > { %v4657_v17 = vadd.f32 %v584_v27, %v516_v35  ;;  %v4659_v53 = vadd.f32 %v585_v62, %v517_v24  ;;  %v680_v60 = vadd.f32 %v648_v14, %v612_v50  ;;  %v920_v52 = vmul.f32 %v4282_v54, %v4620_v38  ;;  %v4673_v62 = vld [vmem:[#allocation2 + $0xa8] sm:$0xff] }
  0x6b   : > { %v681_v47 = vadd.f32 %v649_v16, %v613_v9  ;;  %v921_v4 = vmul.f32 %v4282_v54, %v4622_v61  ;;  %v1056_v6 = vmul.f32 %v4313_v12, %v4655_v42  ;;  %v1057_v14 = vmul.f32 %v4313_v12, %v4663_v31 }
  0x6c   : > { %6533 = vst [vmem:[#allocation25_spill] sm:$0xff] %v4657_v17  ;;  %6534 = vst [vmem:[#allocation26_spill] sm:$0xff] %v4659_v53  ;;  %v748_v35 = vadd.f32 %v716_v20, %v680_v60  ;;  %v674_v24 = vadd.f32 %v642_v57, %v606_v10  ;;  %v675_v50 = vadd.f32 %v643_v46, %v607_v44  ;;  %v4682_v20 = vld [vmem:[#allocation2 + $0xb0] sm:$0xff] }
  0x6d   : > { %v749_v27 = vadd.f32 %v717_v2, %v681_v47  ;;  %v846_v9 = vmul.f32 %v4269_v49, %v4524_v58  ;;  %v847_v16 = vmul.f32 %v4269_v49, %v4536_v5  ;;  %v982_v17 = vmul.f32 %v4299_v63, %v4589_v28  ;;  %v4684_v60 = vld [vmem:[#allocation2 + $0xaa] sm:$0xff]  ;;  %v4690_v2 = vld [vmem:[#allocation2 + $0xb2] sm:$0xff] }
  0x6e   : > { %v816_v53 = vadd.f32 %v4567_v3, %v748_v35  ;;  %6535 = vst [vmem:[#allocation27_spill] sm:$0xff] %v4684_v60  ;;  %v742_v57 = vadd.f32 %v710_v19, %v674_v24  ;;  %v743_v46 = vadd.f32 %v711_v37, %v675_v50  ;;  %v914_v10 = vmul.f32 %v4282_v54, %v4673_v62  ;;  %v3827_v44 = vld [vmem:[%s4183_s26 + $0x50] sm:$0xff]  }
  0x6f   : > { %v817_v47 = vadd.f32 %v4571_v43, %v749_v27  ;;  %v915_v30 = vmul.f32 %v4282_v54, %v4682_v20  ;;  %v983_v3 = vmul.f32 %v4299_v63, %v4597_v34  ;;  %v1050_v35 = vmul.f32 %v4313_v12, %v4684_v60 }
  0x70   : > { %v884_v33 = vadd.f32 %v852_v7, %v816_v53  ;;  %v810_v19 = vadd.f32 %v778_v32, %v742_v57  ;;  %v811_v37 = vadd.f32 %v779_v15, %v743_v46  ;;  %v1051_v24 = vmul.f32 %v4313_v12, %v4690_v2 }
  0x71   : > { %v885_v50 = vadd.f32 %v853_v29, %v817_v47  ;;  %v3732_v26 = vunpack.c.l.bf16 %v3827_v44  ;;  %v3733_v43 = vunpack.c.h.bf16 %v3827_v44  ;;  %v514_v27 = vmul.f32 %v4214_v21, %v4605_v1 }
  0x72   : > { %v952_v45 = vadd.f32 %v920_v52, %v884_v33  ;;  %v878_v48 = vadd.f32 %v846_v9, %v810_v19  ;;  %v879_v28 = vadd.f32 %v847_v16, %v811_v37  ;;  %v515_v34 = vmul.f32 %v4214_v21, %v4607_v8 }
  0x73   : > { %v953_v56 = vadd.f32 %v921_v4, %v885_v50  ;;  %v4704_v60 = vmax.f32 %v3732_v26, 0.0  ;;  %v4706_v7 = vmax.f32 %v3733_v43, 0.0  ;;  %v614_v32 = vadd.f32 %v4556_v40, %v514_v27 }
  0x74   : > { %v1020_v15 = vadd.f32 %v4580_v25, %v952_v45  ;;  %v946_v53 = vadd.f32 %v914_v10, %v878_v48  ;;  %v947_v29 = vadd.f32 %v915_v30, %v879_v28  ;;  %v615_v57 = vadd.f32 %v4560_v18, %v515_v34 }
  0x75   : > { %v4713_v33 = vmul.f32 %v4222_v23, %v4663_v31  ;;  %v1021_v52 = vadd.f32 %v4583_v41, %v953_v56  ;;  %370 = vst [vmem:[#allocation2 + $0x109] sm:$0xff] %v4704_v60  ;;  %371 = vst [vmem:[#allocation2 + $0x111] sm:$0xff] %v4706_v7  ;;  %v4720_v26 = vmul.f32 %v4218_v22, %v4704_v60 }
  0x76   : > { %v650_v48 = vmul.f32 %v4222_v23, %v4637_v36  ;;  %v1088_v30 = vadd.f32 %v1056_v6, %v1020_v15  ;;  %v1014_v40 = vadd.f32 %v982_v17, %v946_v53  ;;  %v1015_v18 = vadd.f32 %v983_v3, %v947_v29  ;;  %v6536_v15 = vld [vmem:[#allocation12_spill] sm:$0xff] }
  0x77   : > { %v651_v25 = vmul.f32 %v4222_v23, %v4645_v13  ;;  %v1089_v28 = vadd.f32 %v1057_v14, %v1021_v52  ;;  %v718_v56 = vmul.f32 %v4247_v39, %v4620_v38  ;;  %v719_v41 = vmul.f32 %v4247_v39, %v4622_v61 }
  0x78   : > { %v682_v45 = vadd.f32 %v650_v48, %v614_v32  ;;  %v1082_v34 = vadd.f32 %v1050_v35, %v1014_v40  ;;  %v1083_v4 = vadd.f32 %v1051_v24, %v1015_v18  ;;  %v4732_v9 = vmul.f32 %v4218_v22, %v4706_v7  ;;  %v6537_v48 = vld [vmem:[#allocation17_spill] sm:$0xff]  ;;  %v6539_v18 = vld [vmem:[#allocation19_spill] sm:$0xff] }
  0x79   : > { %v683_v6 = vadd.f32 %v651_v25, %v615_v57  ;;  %v1112_v17 = vpack.c.bf16 %v1089_v28, %v1088_v30  ;;  %v854_v46 = vmul.f32 %v4269_v49, %v4655_v42  ;;  %v855_v14 = vmul.f32 %v4269_v49, %v4663_v31  ;;  %v6538_v30 = vld [vmem:[#allocation10_spill] sm:$0xff] }
  0x7a   : > { %v750_v16 = vadd.f32 %v718_v56, %v682_v45  ;;  %v1109_v10 = vpack.c.bf16 %v1083_v4, %v1082_v34  ;;  %v990_v61 = vmul.f32 %v4299_v63, %v4704_v60  ;;  %v508_v44 = vmul.f32 %v4214_v21, %v4520_v55  ;;  %v3828_v4 = vld [vmem:[%s4183_s26 + $0x58] sm:$0xff]  }
  0x7b   : > { %v751_v38 = vadd.f32 %v719_v41, %v683_v6  ;;  %3952 = vmatprep.mubr.bf16.mxu1 %v1112_v17  ;;  %v991_v3 = vmul.f32 %v4299_v63, %v4706_v7  ;;  %v509_v35 = vmul.f32 %v4214_v21, %v4522_v59  ;;  %v644_v31 = vmul.f32 %v4222_v23, %v4524_v58  ;;  %v6540_v41 = vld [vmem:[#allocation27_spill] sm:$0xff] }
  0x7c   : > { %v818_v47 = vadd.f32 %v4574_v51, %v750_v16  ;;  %3945 = vmatmul.mubr.bf16.gmra.mxu0 %v1109_v10  ;;  %v4749_v19 = vld [vmem:[#allocation2 + $0x108] sm:$0xff]  ;;  %v4751_v37 = vld [vmem:[#allocation2 + $0x110] sm:$0xff]  ;;  %v608_v55 = vadd.f32 %v4495_v11, %v508_v44  ;;  %v645_v51 = vmul.f32 %v4222_v23, %v4536_v5  ;;  %v712_v50 = vmul.f32 %v4247_v39, %v4673_v62 }
  0x7d   : > { %v819_v24 = vadd.f32 %v4577_v0, %v751_v38  ;;  %v4759_v43 = vld [vmem:[#allocation2 + $0x10a] sm:$0xff]  ;;  %v922_v58 = vmul.f32 %v4282_v54, %v4749_v19  ;;  %v923_v27 = vmul.f32 %v4282_v54, %v4751_v37  ;;  %v713_v0 = vmul.f32 %v4247_v39, %v4682_v20  ;;  %v4767_v11 = vld [vmem:[#allocation2 + $0x112] sm:$0xff] }
  0x7e   : > { %v886_v59 = vadd.f32 %v854_v46, %v818_v47  ;;  %v1058_v5 = vmul.f32 %v4313_v12, %v4759_v43  ;;  %v609_v53 = vadd.f32 %v6536_v15, %v509_v35  ;;  %v676_v29 = vadd.f32 %v644_v31, %v608_v55  ;;  %v6541_v16 = vld [vmem:[#allocation18_spill] sm:$0xff]  ;;  %v6543_v35 = vld [vmem:[#allocation13_spill] sm:$0xff] }
  0x7f   : > { %v887_v32 = vadd.f32 %v855_v14, %v819_v24  ;;  %v1059_v52 = vmul.f32 %v4313_v12, %v4767_v11  ;;  %v780_v40 = vmul.f32 %v6538_v30, %v6537_v48  ;;  %v781_v25 = vmul.f32 %v6538_v30, %v6539_v18  ;;  %v6542_v14 = vld [vmem:[#allocation20_spill] sm:$0xff]  ;;  %v6544_v55 = vld [vmem:[#allocation14_spill] sm:$0xff] }
  0x80   : > { %v954_v57 = vadd.f32 %v922_v58, %v886_v59  ;;  %v677_v45 = vadd.f32 %v645_v51, %v609_v53  ;;  %v744_v56 = vadd.f32 %v712_v50, %v676_v29  ;;  %v848_v34 = vmul.f32 %v4269_v49, %v6540_v41 }
  0x81   : > { %v955_v28 = vadd.f32 %v923_v27, %v887_v32  ;;  %v849_v17 = vmul.f32 %v4269_v49, %v4690_v2  ;;  %v916_v46 = vmul.f32 %v4282_v54, %v6541_v16  ;;  %v917_v10 = vmul.f32 %v4282_v54, %v6542_v14 }
  0x82   : > { %v1022_v6 = vadd.f32 %v990_v61, %v954_v57  ;;  %v745_v44 = vadd.f32 %v713_v0, %v677_v45  ;;  %v812_v47 = vadd.f32 %v780_v40, %v744_v56  ;;  %v984_v31 = vmul.f32 %v4299_v63, %v6543_v35  ;;  %v6545_v61 = vld [vmem:[#allocation22_spill] sm:$0xff] }
  0x83   : > { %v1023_v38 = vadd.f32 %v991_v3, %v955_v28  ;;  %v985_v51 = vmul.f32 %v4299_v63, %v6544_v55  ;;  %v1052_v50 = vmul.f32 %v4313_v12, %v6545_v61  ;;  %v3736_v59 = vunpack.c.l.bf16 %v3828_v4  ;;  %v6546_v0 = vld [vmem:[#allocation26_spill] sm:$0xff]  ;;  %v6548_v28 = vld [vmem:[#allocation25_spill] sm:$0xff] }
  0x84   : > { %v1090_v24 = vadd.f32 %v1058_v5, %v1022_v6  ;;  %v813_v27 = vadd.f32 %v781_v25, %v745_v44  ;;  %v880_v32 = vadd.f32 %v848_v34, %v812_v47  ;;  %v3737_v15 = vunpack.c.h.bf16 %v3828_v4 }
  0x85   : > { %v1091_v58 = vadd.f32 %v1059_v52, %v1023_v38  ;;  %v4793_v53 = vmax.f32 %v3736_v59, 0.0  ;;  %v652_v3 = vmul.f32 %v4222_v23, %v4655_v42  ;;  %v685_v29 = vadd.f32 %v4713_v33, %v6546_v0  ;;  %v6547_v52 = vld [vmem:[#allocation23_spill] sm:$0xff]  ;;  %v6549_v0 = vld [vmem:[#allocation21_spill] sm:$0xff] }
  0x86   : > { %v720_v5 = vmul.f32 %v4247_v39, %v4749_v19  ;;  %v881_v48 = vadd.f32 %v849_v17, %v813_v27  ;;  %v948_v40 = vadd.f32 %v916_v46, %v880_v32  ;;  %v4801_v18 = vmax.f32 %v3737_v15, 0.0 }
  0x87   : > { %v1113_v57 = vpack.c.bf16 %v1091_v58, %v1090_v24  ;;  %v1053_v25 = vmul.f32 %v4313_v12, %v6547_v52  ;;  %372 = vst [vmem:[#allocation2 + $0x121] sm:$0xff] %v4793_v53  ;;  %v684_v45 = vadd.f32 %v652_v3, %v6548_v28  ;;  %v721_v42 = vmul.f32 %v4247_v39, %v4751_v37 }
  0x88   : > { %v788_v33 = vmul.f32 %v6538_v30, %v4704_v60  ;;  %v949_v56 = vadd.f32 %v917_v10, %v881_v48  ;;  %v1016_v34 = vadd.f32 %v984_v31, %v948_v40  ;;  %373 = vst [vmem:[#allocation2 + $0x129] sm:$0xff] %v4801_v18  ;;  %v4814_v4 = vmul.f32 %v4218_v22, %v4793_v53 }
  0x89   : > { %3953 = vmatmul.mubr.bf16.vlgmr.msra.gmra.mxu1 %v1113_v57  ;;  %v789_v6 = vmul.f32 %v6538_v30, %v4706_v7  ;;  %v752_v17 = vadd.f32 %v720_v5, %v684_v45  ;;  %v753_v46 = vadd.f32 %v721_v42, %v685_v29  ;;  %v856_v38 = vmul.f32 %v4269_v49, %v4759_v43  ;;  %v6550_v5 = vld [vmem:[#allocation24_spill] sm:$0xff] }
  0x8a   : > { %v857_v60 = vmul.f32 %v4269_v49, %v4767_v11  ;;  %v1017_v44 = vadd.f32 %v985_v51, %v949_v56  ;;  %v1084_v10 = vadd.f32 %v1052_v50, %v1016_v34  ;;  %v992_v47 = vmul.f32 %v4299_v63, %v4793_v53 }
  0x8b   : > { %v993_v31 = vmul.f32 %v4299_v63, %v4801_v18  ;;  %v820_v24 = vadd.f32 %v788_v33, %v752_v17  ;;  %v821_v59 = vadd.f32 %v789_v6, %v753_v46  ;;  %v510_v7 = vmul.f32 %v4214_v21, %v4673_v62 }
  0x8c   : > { %v511_v58 = vmul.f32 %v4214_v21, %v4682_v20  ;;  %v1085_v27 = vadd.f32 %v1053_v25, %v1017_v44  ;;  %v646_v32 = vmul.f32 %v4222_v23, %v6540_v41  ;;  %v647_v51 = vmul.f32 %v4222_v23, %v4690_v2  ;;  %v6551_v44 = vld [vmem:[#allocation15_spill] sm:$0xff] }
  0x8d   : > { %v714_v50 = vmul.f32 %v4247_v39, %v6541_v16  ;;  %v888_v15 = vadd.f32 %v856_v38, %v820_v24  ;;  %v889_v3 = vadd.f32 %v857_v60, %v821_v59  ;;  %v610_v29 = vadd.f32 %v6549_v0, %v510_v7  ;;  %v6552_v24 = vld [vmem:[#allocation16_spill] sm:$0xff] }
  0x8e   : > { %v611_v57 = vadd.f32 %v6550_v5, %v511_v58  ;;  %v1110_v62 = vpack.c.bf16 %v1085_v27, %v1084_v10  ;;  %v4838_v48 = vld [vmem:[#allocation2 + $0x120] sm:$0xff]  ;;  %v715_v20 = vmul.f32 %v4247_v39, %v6542_v14  ;;  %v782_v41 = vmul.f32 %v6538_v30, %v6543_v35 }
  0x8f   : > { %v783_v2 = vmul.f32 %v6538_v30, %v6544_v55  ;;  %v4846_v40 = vld [vmem:[#allocation2 + $0x128] sm:$0xff]  ;;  %v924_v28 = vmul.f32 %v4282_v54, %v4838_v48  ;;  %v678_v45 = vadd.f32 %v646_v32, %v610_v29  ;;  %v850_v14 = vmul.f32 %v4269_v49, %v6545_v61  ;;  %v3829_v61 = vld [vmem:[%s4183_s26 + $0x60] sm:$0xff]  }
  0x90   : > { %v4848_v16 = vld [vmem:[#allocation2 + $0x122] sm:$0xff]  ;;  %v4850_v25 = vld [vmem:[#allocation2 + $0x12a] sm:$0xff]  ;;  %v679_v42 = vadd.f32 %v647_v51, %v611_v57  ;;  %3948 = vmatprep.mubr.bf16.mxu0 %v1110_v62  ;;  %v925_v35 = vmul.f32 %v4282_v54, %v4846_v40  ;;  %v851_v56 = vmul.f32 %v4269_v49, %v6547_v52  ;;  %v918_v46 = vmul.f32 %v4282_v54, %v4605_v1 }
  0x91   : > { %v1060_v55 = vmul.f32 %v4313_v12, %v4848_v16  ;;  %v1061_v33 = vmul.f32 %v4313_v12, %v4850_v25  ;;  %v956_v34 = vadd.f32 %v924_v28, %v888_v15  ;;  %v746_v6 = vadd.f32 %v714_v50, %v678_v45 }
  0x92   : > { %v747_v17 = vadd.f32 %v715_v20, %v679_v42  ;;  %v957_v38 = vadd.f32 %v925_v35, %v889_v3  ;;  %v919_v60 = vmul.f32 %v4282_v54, %v4607_v8  ;;  %v986_v10 = vmul.f32 %v4299_v63, %v6551_v44  ;;  %v3830_v35 = vld [vmem:[%s4183_s26 + $0x68] sm:$0xff]  }
  0x93   : > { %v987_v59 = vmul.f32 %v4299_v63, %v6552_v24  ;;  %v1024_v7 = vadd.f32 %v992_v47, %v956_v34  ;;  %v814_v58 = vadd.f32 %v782_v41, %v746_v6  ;;  %v1054_v27 = vmul.f32 %v4313_v12, %v4637_v36 }
  0x94   : > { %v815_v52 = vadd.f32 %v783_v2, %v747_v17  ;;  %v1025_v32 = vadd.f32 %v993_v31, %v957_v38  ;;  %v1055_v1 = vmul.f32 %v4313_v12, %v4645_v13  ;;  %v3740_v51 = vunpack.c.l.bf16 %v3829_v61  ;;  %v4097_v13 = vld [vmem:[%s6463_s2 + $0x78] sm:$0xff]  }
  0x95   : > { %v3741_v50 = vunpack.c.h.bf16 %v3829_v61  ;;  %v1092_v15 = vadd.f32 %v1060_v55, %v1024_v7  ;;  %v882_v8 = vadd.f32 %v850_v14, %v814_v58  ;;  %v518_v0 = vmul.f32 %v4214_v21, %v4749_v19  ;;  %3968 = vmatprep.subr.bf16.mxu1 %v4097_v13 }
  0x96   : > { %v883_v3 = vadd.f32 %v851_v56, %v815_v52  ;;  %v1093_v29 = vadd.f32 %v1061_v33, %v1025_v32  ;;  %v4879_v5 = vmax.f32 %v3740_v51, 0.0  ;;  %v519_v36 = vmul.f32 %v4214_v21, %v4751_v37  ;;  %3969 = vmatpush3.bf16.msra.mxu1 %v4097_v13 }
  0x97   : > { %v4881_v47 = vmax.f32 %v3741_v50, 0.0  ;;  %v950_v12 = vadd.f32 %v918_v46, %v882_v8  ;;  %v618_v57 = vadd.f32 %v4720_v26, %v518_v0  ;;  %v654_v62 = vmul.f32 %v4222_v23, %v4759_v43 }
  0x98   : > { %v951_v31 = vadd.f32 %v919_v60, %v883_v3  ;;  %v589_v19 = vmul.f32 %v4218_v22, %v4801_v18  ;;  %v1114_v20 = vpack.c.bf16 %v1093_v29, %v1092_v15  ;;  %374 = vst [vmem:[#allocation2 + $0x139] sm:$0xff] %v4879_v5  ;;  %v4897_v37 = vmul.f32 %v4218_v22, %v4879_v5  ;;  %v4940_v3 = vld [vmem:[%s6462_s1 + $0x8] ss:$0 sm:$0xff] }
  0x99   : > { %375 = vst [vmem:[#allocation2 + $0x141] sm:$0xff] %v4881_v47  ;;  %v619_v41 = vadd.f32 %v4732_v9, %v519_v36  ;;  %v1018_v26 = vadd.f32 %v986_v10, %v950_v12  ;;  %v655_v43 = vmul.f32 %v4222_v23, %v4767_v11  ;;  %v686_v28 = vadd.f32 %v654_v62, %v618_v57 }
  0x9a   : > { %v1019_v2 = vadd.f32 %v987_v59, %v951_v31  ;;  %3956 = vmatprep.mubr.bf16.mxu1 %v1114_v20  ;;  %v4904_v45 = vmul.f32 %v4218_v22, %v4881_v47  ;;  %v722_v42 = vmul.f32 %v4247_v39, %v4838_v48  ;;  %v723_v14 = vmul.f32 %v4247_v39, %v4846_v40 }
  0x9b   : > { %v790_v9 = vmul.f32 %v6538_v30, %v4793_v53  ;;  %v1086_v55 = vadd.f32 %v1054_v27, %v1018_v26  ;;  %v687_v11 = vadd.f32 %v655_v43, %v619_v41  ;;  %v791_v56 = vmul.f32 %v6538_v30, %v4801_v18  ;;  %v3831_v41 = vld [vmem:[%s4183_s26 + $0x70] sm:$0xff]  }
  0x9c   : > { %v1087_v33 = vadd.f32 %v1055_v1, %v1019_v2  ;;  %v754_v34 = vadd.f32 %v722_v42, %v686_v28  ;;  %v858_v6 = vmul.f32 %v4269_v49, %v4848_v16  ;;  %v859_v17 = vmul.f32 %v4269_v49, %v4850_v25 }
  0x9d   : > { %v994_v46 = vmul.f32 %v4299_v63, %v4879_v5  ;;  %v755_v38 = vadd.f32 %v723_v14, %v687_v11  ;;  %v3744_v53 = vunpack.c.l.bf16 %v3830_v35  ;;  %v3745_v60 = vunpack.c.h.bf16 %v3830_v35 }
  0x9e   : > { %v1111_v61 = vpack.c.bf16 %v1087_v33, %v1086_v55  ;;  %v822_v44 = vadd.f32 %v790_v9, %v754_v34  ;;  %v995_v10 = vmul.f32 %v4299_v63, %v4881_v47  ;;  %v520_v18 = vmul.f32 %v4214_v21, %v4838_v48 }
  0x9f   : > { %v521_v24 = vmul.f32 %v4214_v21, %v4846_v40  ;;  %v408_v59 = vld [vmem:[#allocation2 + $0x138] sm:$0xff]  ;;  %v823_v58 = vadd.f32 %v791_v56, %v755_v38  ;;  %v4927_v52 = vmax.f32 %v3744_v53, 0.0  ;;  %v4929_v27 = vmax.f32 %v3745_v60, 0.0 }
  0xa0   : > { %3949 = vmatmul.mubr.bf16.gmra.mxu0 %v1111_v61  ;;  %v409_v7 = vld [vmem:[#allocation2 + $0x140] sm:$0xff]  ;;  %v656_v32 = vmul.f32 %v4222_v23, %v4848_v16  ;;  %v890_v50 = vadd.f32 %v858_v6, %v822_v44  ;;  %v926_v15 = vmul.f32 %v4282_v54, %v408_v59  ;;  %v657_v40 = vmul.f32 %v4222_v23, %v4850_v25 }
  0xa1   : > { %v480_v1 = vld [vmem:[#allocation2 + $0x13a] sm:$0xff]  ;;  %v481_v51 = vld [vmem:[#allocation2 + $0x142] sm:$0xff]  ;;  %v927_v48 = vmul.f32 %v4282_v54, %v409_v7  ;;  %v891_v8 = vadd.f32 %v859_v17, %v823_v58  ;;  %376 = vst [vmem:[#allocation2 + $0x151] sm:$0xff] %v4927_v52  ;;  %377 = vst [vmem:[#allocation2 + $0x159] sm:$0xff] %v4929_v27  ;;  %v4948_v29 = vmul.f32 %v4218_v22, %v4927_v52  ;;  %v3748_v33 = vunpack.c.l.bf16 %v3831_v41 }
  0xa2   : > { %v1062_v0 = vmul.f32 %v4940_v3, %v480_v1  ;;  %v1063_v16 = vmul.f32 %v4940_v3, %v481_v51  ;;  %v958_v25 = vadd.f32 %v926_v15, %v890_v50  ;;  %v620_v36 = vadd.f32 %v4814_v4, %v520_v18 }
  0xa3   : > { %v621_v13 = vadd.f32 %v589_v19, %v521_v24  ;;  %v724_v12 = vmul.f32 %v4247_v39, %v408_v59  ;;  %v959_v31 = vadd.f32 %v927_v48, %v891_v8  ;;  %v4954_v57 = vmul.f32 %v4218_v22, %v4929_v27  ;;  %v4098_v19 = vld [vmem:[%s6463_s2 + $0x70] sm:$0xff]  }
  0xa4   : > { %v725_v62 = vmul.f32 %v4247_v39, %v409_v7  ;;  %v792_v20 = vmul.f32 %v6538_v30, %v4879_v5  ;;  %v1026_v26 = vadd.f32 %v994_v46, %v958_v25  ;;  %v688_v2 = vadd.f32 %v656_v32, %v620_v36  ;;  %3970 = vmatprep.subr.bf16.mxu1 %v4098_v19 }
  0xa5   : > { %v689_v43 = vadd.f32 %v657_v40, %v621_v13  ;;  %v793_v4 = vmul.f32 %v6538_v30, %v4881_v47  ;;  %v1027_v28 = vadd.f32 %v995_v10, %v959_v31  ;;  %v860_v42 = vmul.f32 %v4269_v49, %v480_v1  ;;  %3971 = vmatpush3.bf16.msra.mxu1 %v4098_v19 }
  0xa6   : > { %v861_v14 = vmul.f32 %v4269_v49, %v481_v51  ;;  %v996_v9 = vmul.f32 %v4299_v63, %v4927_v52  ;;  %v1094_v5 = vadd.f32 %v1062_v0, %v1026_v26  ;;  %v756_v35 = vadd.f32 %v724_v12, %v688_v2 }
  0xa7   : > { %v757_v55 = vadd.f32 %v725_v62, %v689_v43  ;;  %v1095_v11 = vadd.f32 %v1063_v16, %v1027_v28  ;;  %v3749_v56 = vunpack.c.h.bf16 %v3831_v41  ;;  %v522_v47 = vmul.f32 %v4214_v21, %v408_v59  ;;  %v4099_v59 = vld [vmem:[%s6463_s2 + $0x68] sm:$0xff]  }
  0xa8   : > { %v523_v34 = vmul.f32 %v4214_v21, %v409_v7  ;;  %v410_v6 = vld [vmem:[#allocation2 + $0x150] sm:$0xff]  ;;  %v411_v17 = vld [vmem:[#allocation2 + $0x158] sm:$0xff]  ;;  %v824_v46 = vadd.f32 %v792_v20, %v756_v35  ;;  %v997_v38 = vmul.f32 %v4299_v63, %v4929_v27  ;;  %v4973_v53 = vmax.f32 %v3748_v33, 0.0  ;;  %3972 = vmatprep.subr.bf16.mxu1 %v4099_v59 }
  0xa9   : > { %v825_v61 = vadd.f32 %v793_v4, %v757_v55  ;;  %v1115_v60 = vpack.c.bf16 %v1095_v11, %v1094_v5  ;;  %v4975_v44 = vld [vmem:[#allocation2 + $0x152] sm:$0xff]  ;;  %v928_v10 = vmul.f32 %v4282_v54, %v410_v6  ;;  %v929_v18 = vmul.f32 %v4282_v54, %v411_v17  ;;  %v483_v7 = vld [vmem:[#allocation2 + $0x15a] sm:$0xff]  ;;  %3973 = vmatpush3.bf16.msra.mxu1 %v4099_v59 }
  0xaa   : > { %v658_v24 = vmul.f32 %v4222_v23, %v480_v1  ;;  %v892_v58 = vadd.f32 %v860_v42, %v824_v46  ;;  %v1064_v50 = vmul.f32 %v4940_v3, %v4975_v44  ;;  %v4985_v15 = vmax.f32 %v3749_v56, 0.0  ;;  %378 = vst [vmem:[#allocation2 + $0x169] sm:$0xff] %v4973_v53 }
  0xab   : > { %v893_v32 = vadd.f32 %v861_v14, %v825_v61  ;;  %3957 = vmatmul.mubr.bf16.gmra.mxu1 %v1115_v60  ;;  %v1065_v48 = vmul.f32 %v4940_v3, %v483_v7  ;;  %v622_v1 = vadd.f32 %v4897_v37, %v522_v47  ;;  %v623_v40 = vadd.f32 %v4904_v45, %v523_v34  ;;  %v3832_v45 = vld [vmem:[%s4183_s26 + $0x78] sm:$0xff]  }
  0xac   : > { %v659_v8 = vmul.f32 %v4222_v23, %v481_v51  ;;  %v960_v0 = vadd.f32 %v928_v10, %v892_v58  ;;  %379 = vst [vmem:[#allocation2 + $0x171] sm:$0xff] %v4985_v15  ;;  %v4995_v25 = vmul.f32 %v4218_v22, %v4973_v53  ;;  %v726_v36 = vmul.f32 %v4247_v39, %v410_v6 }
  0xad   : > { %v961_v16 = vadd.f32 %v929_v18, %v893_v32  ;;  %v690_v13 = vadd.f32 %v658_v24, %v622_v1  ;;  %v727_v31 = vmul.f32 %v4247_v39, %v411_v17  ;;  %v794_v37 = vmul.f32 %v6538_v30, %v4927_v52 }
  0xae   : > { %v691_v12 = vadd.f32 %v659_v8, %v623_v40  ;;  %v1028_v51 = vadd.f32 %v996_v9, %v960_v0  ;;  %v5004_v20 = vmul.f32 %v4218_v22, %v4985_v15  ;;  %v795_v41 = vmul.f32 %v6538_v30, %v4929_v27 }
  0xaf   : > { %v1029_v62 = vadd.f32 %v997_v38, %v961_v16  ;;  %v758_v26 = vadd.f32 %v726_v36, %v690_v13  ;;  %v862_v43 = vmul.f32 %v4269_v49, %v4975_v44  ;;  %v863_v4 = vmul.f32 %v4269_v49, %v483_v7 }
  0xb0   : > { %v759_v2 = vadd.f32 %v727_v31, %v691_v12  ;;  %v1096_v19 = vadd.f32 %v1064_v50, %v1028_v51  ;;  %v998_v28 = vmul.f32 %v4299_v63, %v4973_v53  ;;  %v3752_v42 = vunpack.c.l.bf16 %v3832_v45 }
  0xb1   : > { %v1097_v52 = vadd.f32 %v1065_v48, %v1029_v62  ;;  %v412_v14 = vld [vmem:[#allocation2 + $0x168] sm:$0xff]  ;;  %v826_v9 = vadd.f32 %v794_v37, %v758_v26  ;;  %v3753_v5 = vunpack.c.h.bf16 %v3832_v45  ;;  %v524_v35 = vmul.f32 %v4214_v21, %v410_v6 }
  0xb2   : > { %v827_v22 = vadd.f32 %v795_v41, %v759_v2  ;;  %v930_v55 = vmul.f32 %v4282_v54, %v412_v14  ;;  %v347_v33 = vmax.f32 %v3752_v42, 0.0  ;;  %v525_v11 = vmul.f32 %v4214_v21, %v411_v17 }
  0xb3   : > { %v1116_v27 = vpack.c.bf16 %v1097_v52, %v1096_v19  ;;  %v413_v56 = vld [vmem:[#allocation2 + $0x170] sm:$0xff]  ;;  %v894_v34 = vadd.f32 %v862_v43, %v826_v9  ;;  %v348_v61 = vmax.f32 %v3753_v5, 0.0  ;;  %v624_v38 = vadd.f32 %v4948_v29, %v524_v35 }
  0xb4   : > { %v484_v47 = vld [vmem:[#allocation2 + $0x16a] sm:$0xff]  ;;  %v895_v46 = vadd.f32 %v863_v4, %v827_v22  ;;  %v931_v60 = vmul.f32 %v4282_v54, %v413_v56  ;;  %v999_v10 = vmul.f32 %v4299_v63, %v4985_v15  ;;  %380 = vst [vmem:[#allocation2 + $0x181] sm:$0xff] %v347_v33  ;;  %v625_v18 = vadd.f32 %v4954_v57, %v525_v11  ;;  %v485_v24 = vld [vmem:[#allocation2 + $0x172] sm:$0xff] }
  0xb5   : > { %3960 = vmatprep.mubr.bf16.mxu1 %v1116_v27  ;;  %v1066_v6 = vmul.f32 %v4940_v3, %v484_v47  ;;  %v962_v17 = vadd.f32 %v930_v55, %v894_v34  ;;  %381 = vst [vmem:[#allocation2 + $0x189] sm:$0xff] %v348_v61  ;;  %v660_v59 = vmul.f32 %v4222_v23, %v4975_v44 }
  0xb6   : > { %v661_v58 = vmul.f32 %v4222_v23, %v483_v7  ;;  %v728_v29 = vmul.f32 %v4247_v39, %v412_v14  ;;  %v963_v32 = vadd.f32 %v931_v60, %v895_v46  ;;  %v1067_v50 = vmul.f32 %v4940_v3, %v485_v24 }
  0xb7   : > { %v729_v48 = vmul.f32 %v4247_v39, %v413_v56  ;;  %v796_v1 = vmul.f32 %v6538_v30, %v4973_v53  ;;  %v1030_v40 = vadd.f32 %v998_v28, %v962_v17  ;;  %v692_v57 = vadd.f32 %v660_v59, %v624_v38 }
  0xb8   : > { %v693_v8 = vadd.f32 %v661_v58, %v625_v18  ;;  %v797_v0 = vmul.f32 %v6538_v30, %v4985_v15  ;;  %v1031_v16 = vadd.f32 %v999_v10, %v963_v32  ;;  %v798_v44 = vmul.f32 %v6538_v30, %v347_v33  ;;  %v453_v10 = vld [vmem:[#allocation2 + $0x1a1] sm:$0xff] }
  0xb9   : > { %v799_v7 = vmul.f32 %v6538_v30, %v348_v61  ;;  %v864_v36 = vmul.f32 %v4269_v49, %v484_v47  ;;  %v1098_v13 = vadd.f32 %v1066_v6, %v1030_v40  ;;  %v760_v12 = vadd.f32 %v728_v29, %v692_v57  ;;  %v4114_v18 = vld [vmem:[#allocation2] sm:$0xff] }
  0xba   : > { %v761_v31 = vadd.f32 %v729_v48, %v693_v8  ;;  %v865_v37 = vmul.f32 %v4269_v49, %v485_v24  ;;  %v1099_v45 = vadd.f32 %v1067_v50, %v1031_v16  ;;  %v1000_v53 = vmul.f32 %v4299_v63, %v347_v33  ;;  %v488_v58 = vld [vmem:[#allocation2 + $0x19a] sm:$0xff]  ;;  %v489_v32 = vld [vmem:[#allocation2 + $0x1a2] sm:$0xff] }
  0xbb   : > { %v526_v51 = vmul.f32 %v4214_v21, %v412_v14  ;;  %v527_v62 = vmul.f32 %v4214_v21, %v413_v56  ;;  %v414_v15 = vld [vmem:[#allocation2 + $0x180] sm:$0xff]  ;;  %v828_v41 = vadd.f32 %v796_v1, %v760_v12  ;;  %v662_v2 = vmul.f32 %v4222_v23, %v484_v47  ;;  %v4103_v12 = vld [vmem:[%s6463_s2 + $0x48] sm:$0xff]  }
  0xbc   : > { %v829_v26 = vadd.f32 %v797_v0, %v761_v31  ;;  %v663_v30 = vmul.f32 %v4222_v23, %v485_v24  ;;  %v1117_v43 = vpack.c.bf16 %v1099_v45, %v1098_v13  ;;  %v415_v4 = vld [vmem:[#allocation2 + $0x188] sm:$0xff]  ;;  %v932_v19 = vmul.f32 %v4282_v54, %v414_v15  ;;  %v4100_v13 = vld [vmem:[%s6463_s2 + $0x60] sm:$0xff]   ;;  %v3628_v45 = vld [vmem:[%s6462_s1 + $0x10] sm:$0xff] }
  0xbd   : > { %v626_v52 = vadd.f32 %v4995_v25, %v526_v51  ;;  %v627_v28 = vadd.f32 %v5004_v20, %v527_v62  ;;  %v486_v42 = vld [vmem:[#allocation2 + $0x182] sm:$0xff]  ;;  %v896_v9 = vadd.f32 %v864_v36, %v828_v41  ;;  %v933_v21 = vmul.f32 %v4282_v54, %v415_v4  ;;  %v487_v5 = vld [vmem:[#allocation2 + $0x18a] sm:$0xff]  ;;  %3974 = vmatprep.subr.bf16.mxu1 %v4100_v13 }
  0xbe   : > { %v897_v14 = vadd.f32 %v865_v37, %v829_v26  ;;  %v1001_v22 = vmul.f32 %v4299_v63, %v348_v61  ;;  %3961 = vmatmul.mubr.bf16.gmra.mxu1 %v1117_v43  ;;  %v1068_v35 = vmul.f32 %v4940_v3, %v486_v42  ;;  %v730_v55 = vmul.f32 %v4247_v39, %v414_v15  ;;  %v452_v61 = vld [vmem:[#allocation2 + $0x199] sm:$0xff]  ;;  %v6553_v51 = vld [vmem:[#allocation3_spill] sm:$0xff]  ;;  %v1452_v26 = vld [vmem:[#allocation2 + $0x1] sm:$0xff] }
  0xbf   : > { %v694_v23 = vadd.f32 %v662_v2, %v626_v52  ;;  %v695_v27 = vadd.f32 %v663_v30, %v627_v28  ;;  %v964_v33 = vadd.f32 %v932_v19, %v896_v9  ;;  %v1069_v25 = vmul.f32 %v4940_v3, %v487_v5  ;;  %3975 = vmatpush3.bf16.msra.mxu1 %v4100_v13  ;;  %v4104_v31 = vld [vmem:[%s6463_s2 + $0x40] sm:$0xff]   ;;  %v6554_v43 = vld [vmem:[#allocation4_spill] sm:$0xff] }
  0xc0   : > { %v965_v11 = vadd.f32 %v933_v21, %v897_v14  ;;  %v731_v20 = vmul.f32 %v4247_v39, %v415_v4  ;;  %v866_v47 = vmul.f32 %v4269_v49, %v486_v42  ;;  %v867_v60 = vmul.f32 %v4269_v49, %v487_v5  ;;  %v5075_v37 = vld [vmem:[%s6464_s3] ss:$0 sm:$0xff]  ;;  %v1488_v5 = vld [vmem:[#allocation2 + $0x2] sm:$0xff] }
  0xc1   : > { %v762_v56 = vadd.f32 %v730_v55, %v694_v23  ;;  %v1032_v34 = vadd.f32 %v1000_v53, %v964_v33  ;;  %v934_v24 = vmul.f32 %v4114_v18, %v4282_v54  ;;  %v1002_v50 = vmul.f32 %v4299_v63, %v452_v61  ;;  %v6556_v14 = vld [vmem:[#allocation5_spill] sm:$0xff] }
  0xc2   : > { %v1033_v46 = vadd.f32 %v1001_v22, %v965_v11  ;;  %v763_v38 = vadd.f32 %v731_v20, %v695_v27  ;;  %v1003_v40 = vmul.f32 %v4299_v63, %v453_v10  ;;  %v1070_v49 = vmul.f32 %v4940_v3, %v488_v58  ;;  %v4101_v63 = vld [vmem:[%s6463_s2 + $0x58] sm:$0xff]   ;;  %v1453_v27 = vld [vmem:[#allocation2 + $0x9] sm:$0xff] }
  0xc3   : > { %v830_v6 = vadd.f32 %v798_v44, %v762_v56  ;;  %v1100_v17 = vadd.f32 %v1068_v35, %v1032_v34  ;;  %v1071_v0 = vmul.f32 %v4940_v3, %v489_v32  ;;  %3976 = vmatprep.subr.bf16.mxu1 %v4101_v63  ;;  %v4102_v3 = vld [vmem:[%s6463_s2 + $0x50] sm:$0xff]   ;;  %v5081_v62 = vrot.slane %v3628_v45, %v6553_v51  ;;  %v6561_v32 = vld [vmem:[#allocation8_spill] sm:$0xff] }
  0xc4   : > { %v1101_v59 = vadd.f32 %v1069_v25, %v1033_v46  ;;  %v831_v29 = vadd.f32 %v799_v7, %v763_v38  ;;  %3977 = vmatpush3.bf16.msra.mxu1 %v4101_v63  ;;  %v5088_v4 = vrot.slane %v3628_v45, %v6554_v43  ;;  %v5095_v21 = vrot.slane %v3628_v45, %v6556_v14  ;;  %v1489_v20 = vld [vmem:[#allocation2 + $0xa] sm:$0xff] }
  0xc5   : > { %v898_v39 = vadd.f32 %v866_v47, %v830_v6  ;;  %3978 = vmatprep.subr.bf16.mxu1 %v4102_v3  ;;  %v1531_v52 = vmul.f32 %v4114_v18, %v5081_v62  ;;  %v6557_v47 = vld [vmem:[#allocation6_spill] sm:$0xff]  ;;  %v6558_v18 = vld [vmem:[#allocation7_spill] sm:$0xff] }
  0xc6   : > { %v1118_v48 = vpack.c.bf16 %v1101_v59, %v1100_v17  ;;  %v899_v1 = vadd.f32 %v867_v60, %v831_v29  ;;  %6555 = vst [vmem:[#allocation12_spill] sm:$0xff] %v5088_v4  ;;  %v1599_v9 = vmul.f32 %v5088_v4, %v1452_v26  ;;  %v1667_v11 = vmul.f32 %v5095_v21, %v1488_v5  ;;  %v6560_v17 = vld [vmem:[#allocation11_spill] sm:$0xff] }
  0xc7   : > { %v966_v57 = vadd.f32 %v934_v24, %v898_v39  ;;  %v1600_v25 = vmul.f32 %v5088_v4, %v1453_v27  ;;  %v5104_v34 = vrot.slane %v3628_v45, %v6557_v47  ;;  %v1668_v38 = vmul.f32 %v5095_v21, %v1489_v20 }
  0xc8   : > { %3964 = vmatprep.mubr.bf16.mxu1 %v1118_v48  ;;  %v967_v8 = vadd.f32 %v934_v24, %v899_v1  ;;  %3979 = vmatpush3.bf16.msra.mxu1 %v4102_v3  ;;  %v1631_v33 = vadd.f32 %v1599_v9, %v1531_v52  ;;  %v5110_v24 = vrot.slane %v3628_v45, %v6558_v18 }
  0xc9   : > { %v1034_v54 = vadd.f32 %v1002_v50, %v966_v57  ;;  %3980 = vmatprep.subr.bf16.mxu1 %v4103_v12  ;;  %v1632_v61 = vadd.f32 %v1600_v25, %v1531_v52  ;;  %v5113_v59 = vrot.slane %v3628_v45, %v6560_v17  ;;  %v5117_v39 = vrot.slane %v3628_v45, %v6561_v32  ;;  %v6562_v50 = vld [vmem:[#allocation9_spill] sm:$0xff] }
  0xca   : > { %v1035_v16 = vadd.f32 %v1003_v40, %v967_v8  ;;  %v1699_v56 = vadd.f32 %v1667_v11, %v1631_v33  ;;  %6559 = vst [vmem:[#allocation17_spill] sm:$0xff] %v5110_v24  ;;  %v5120_v48 = vrot.slane %v3628_v45, %v6562_v50 }
  0xcb   : > { %v1102_v44 = vadd.f32 %v1070_v49, %v1034_v54 }
  0xcc   : > { %v1103_v36 = vadd.f32 %v1071_v0, %v1035_v16  ;;  %3981 = vmatpush3.bf16.msra.mxu1 %v4103_v12  ;;  %v1700_v0 = vadd.f32 %v1668_v38, %v1632_v61 }
  0xcd   : > { %3982 = vmatprep.subr.bf16.mxu1 %v4104_v31 }
  0xce   : > { %v1119_v7 = vpack.c.bf16 %v1103_v36, %v1102_v44 }
  0xd0   : > { %3965 = vmatmul.mubr.bf16.gmra.mxu1 %v1119_v7 }
  0xd1   : > { %3983 = vmatpush3.bf16.msra.mxu1 %v4104_v31 }
 0x109   : > { %v3938_v53 = vpop.f32.mrf.mxu0 }
 0x10a   : > { %v1234_v15 = vadd.f32 %v3938_v53, %v5075_v37 }
 0x10b   : > { %v1225_v41 = vpop.f32.mrf.mxu0 }
 0x10c   : > { %v5084_v2 = vmax.f32 %v1234_v15, 0.0  ;;  %v1226_v30 = vadd.f32 %v5075_v37, %v1225_v41 }
 0x10d   : > { %v3939_v19 = vpop.f32.mrf.mxu0 }
 0x10e   : > { %1386 = vst [vmem:[#allocation2 + $0x31] sm:$0xff] %v5084_v2  ;;  %v1352_v28 = vmax.f32 %v1226_v30, 0.0  ;;  %v1237_v42 = vadd.f32 %v3939_v19, %v5075_v37  ;;  %v1805_v61 = vmul.f32 %v5110_v24, %v5084_v2 }
 0x10f   : > { %v1228_v22 = vpop.f32.mrf.mxu0 }
 0x110   : > { %1384 = vst [vmem:[#allocation2 + $0x19] sm:$0xff] %v1352_v28  ;;  %v5097_v35 = vmax.f32 %v1237_v42, 0.0  ;;  %v1229_v23 = vadd.f32 %v5075_v37, %v1228_v22  ;;  %v1601_v58 = vmul.f32 %v5088_v4, %v1352_v28  ;;  %v1803_v16 = vmul.f32 %v5110_v24, %v1352_v28 }
 0x112   : > { %1387 = vst [vmem:[#allocation2 + $0x39] sm:$0xff] %v5097_v35  ;;  %v1353_v55 = vmax.f32 %v1229_v23, 0.0 }
 0x114   : > { %1385 = vst [vmem:[#allocation2 + $0x21] sm:$0xff] %v1353_v55  ;;  %v1602_v8 = vmul.f32 %v5088_v4, %v1353_v55  ;;  %v1804_v28 = vmul.f32 %v5110_v24, %v1353_v55 }
 0x115   : > { %v1420_v60 = vld [vmem:[#allocation2 + $0x30] sm:$0xff] }
 0x116   : > { %v1737_v54 = vmul.f32 %v5104_v34, %v1420_v60  ;;  %v1939_v9 = vmul.f32 %v5120_v48, %v1420_v60 }
 0x117   : > { %v1418_v46 = vld [vmem:[#allocation2 + $0x18] sm:$0xff] }
 0x118   : > { %v1533_v10 = vmul.f32 %v5081_v62, %v1418_v46  ;;  %v1735_v6 = vmul.f32 %v5104_v34, %v1418_v46 }
 0x119   : > { %v1421_v19 = vld [vmem:[#allocation2 + $0x38] sm:$0xff] }
 0x11a   : > { %v1767_v29 = vadd.f32 %v1735_v6, %v1699_v56  ;;  %v1633_v7 = vadd.f32 %v1601_v58, %v1533_v10  ;;  %v1738_v46 = vmul.f32 %v5104_v34, %v1421_v19  ;;  %v1492_v38 = vld [vmem:[#allocation2 + $0x32] sm:$0xff]  ;;  %v1940_v6 = vmul.f32 %v5120_v48, %v1421_v19 }
 0x11b   : > { %v1419_v40 = vld [vmem:[#allocation2 + $0x20] sm:$0xff]  ;;  %v2007_v58 = vmul.f32 %v5113_v59, %v5084_v2 }
 0x11c   : > { %v3942_v1 = vpop.f32.mrf.mxu0  ;;  %v1490_v57 = vld [vmem:[#allocation2 + $0x1a] sm:$0xff]  ;;  %v1491_v49 = vld [vmem:[#allocation2 + $0x22] sm:$0xff]  ;;  %v1534_v36 = vmul.f32 %v5081_v62, %v1419_v40  ;;  %v1736_v12 = vmul.f32 %v5104_v34, %v1419_v40  ;;  %v1835_v31 = vadd.f32 %v1803_v16, %v1767_v29  ;;  %v5157_v40 = vld [vmem:[%s6462_s1 + $0x18] ss:$0 sm:$0xff] }
 0x11d   : > { %v1250_v44 = vadd.f32 %v3942_v1, %v5075_v37  ;;  %v1669_v13 = vmul.f32 %v5095_v21, %v1490_v57  ;;  %v1670_v3 = vmul.f32 %v5095_v21, %v1491_v49  ;;  %v1871_v45 = vmul.f32 %v5117_v39, %v1490_v57  ;;  %v1493_v1 = vld [vmem:[#allocation2 + $0x3a] sm:$0xff] }
 0x11e   : > { %v1241_v63 = vpop.f32.mrf.mxu0  ;;  %v1634_v41 = vadd.f32 %v1602_v8, %v1534_v36  ;;  %v1768_v52 = vadd.f32 %v1736_v12, %v1700_v0  ;;  %v1872_v25 = vmul.f32 %v5117_v39, %v1491_v49  ;;  %v1535_v57 = vmul.f32 %v5081_v62, %v1420_v60 }
 0x11f   : > { %v5131_v53 = vmax.f32 %v1250_v44, 0.0  ;;  %v1242_v15 = vadd.f32 %v5075_v37, %v1241_v63  ;;  %v1701_v26 = vadd.f32 %v1669_v13, %v1633_v7  ;;  %v1903_v42 = vadd.f32 %v1871_v45, %v1835_v31 }
 0x120   : > { %v3943_v30 = vpop.f32.mrf.mxu0  ;;  %v1702_v23 = vadd.f32 %v1670_v3, %v1634_v41  ;;  %v1836_v11 = vadd.f32 %v1804_v28, %v1768_v52  ;;  %v1603_v44 = vmul.f32 %v5088_v4, %v5084_v2  ;;  %v1806_v36 = vmul.f32 %v5110_v24, %v5097_v35 }
 0x121   : > { %1390 = vst [vmem:[#allocation2 + $0x61] sm:$0xff] %v5131_v53  ;;  %v5137_v22 = vmax.f32 %v1242_v15, 0.0  ;;  %v1253_v5 = vadd.f32 %v3943_v30, %v5075_v37  ;;  %v1769_v27 = vadd.f32 %v1737_v54, %v1701_v26  ;;  %v1971_v20 = vadd.f32 %v1939_v9, %v1903_v42 }
 0x122   : > { %v1244_v33 = vpop.f32.mrf.mxu0  ;;  %v1904_v10 = vadd.f32 %v1872_v25, %v1836_v11  ;;  %v1770_v49 = vadd.f32 %v1738_v46, %v1702_v23  ;;  %v2008_v54 = vmul.f32 %v5113_v59, %v5097_v35  ;;  %v1873_v7 = vmul.f32 %v5117_v39, %v1492_v38 }
 0x123   : > { %1388 = vst [vmem:[#allocation2 + $0x49] sm:$0xff] %v5137_v22  ;;  %v5142_v56 = vmax.f32 %v1253_v5, 0.0  ;;  %v1245_v55 = vadd.f32 %v5075_v37, %v1244_v33  ;;  %v1837_v8 = vadd.f32 %v1805_v61, %v1769_v27  ;;  %v2039_v16 = vadd.f32 %v2007_v58, %v1971_v20 }
 0x124   : > { %v1972_v0 = vadd.f32 %v1940_v6, %v1904_v10  ;;  %v1671_v13 = vmul.f32 %v5095_v21, %v1492_v38  ;;  %v2075_v63 = vmul.f32 %v5157_v40, %v1492_v38  ;;  %v2076_v3 = vmul.f32 %v5157_v40, %v1493_v1 }
 0x125   : > { %1391 = vst [vmem:[#allocation2 + $0x69] sm:$0xff] %v5142_v56  ;;  %v5152_v29 = vmax.f32 %v1245_v55, 0.0  ;;  %v1536_v12 = vmul.f32 %v5081_v62, %v1421_v19  ;;  %v1838_v31 = vadd.f32 %v1806_v36, %v1770_v49  ;;  %v1905_v45 = vadd.f32 %v1873_v7, %v1837_v8 }
 0x126   : > { %v2040_v60 = vadd.f32 %v2008_v54, %v1972_v0  ;;  %v1635_v15 = vadd.f32 %v1603_v44, %v1535_v57  ;;  %v1604_v2 = vmul.f32 %v5088_v4, %v5097_v35  ;;  %v2107_v41 = vadd.f32 %v2075_v63, %v2039_v16 }
 0x127   : > { %1389 = vst [vmem:[#allocation2 + $0x51] sm:$0xff] %v5152_v29  ;;  %v1874_v52 = vmul.f32 %v5117_v39, %v1493_v1  ;;  %v1672_v11 = vmul.f32 %v5095_v21, %v1493_v1  ;;  %v1807_v20 = vmul.f32 %v5110_v24, %v5137_v22  ;;  %v2009_v46 = vmul.f32 %v5113_v59, %v5137_v22 }
 0x128   : > { %v2108_v26 = vadd.f32 %v2076_v3, %v2040_v60  ;;  %v1703_v42 = vadd.f32 %v1671_v13, %v1635_v15  ;;  %v1636_v23 = vadd.f32 %v1604_v2, %v1536_v12  ;;  %v5183_v61 = vld [vmem:[#allocation2 + $0x60] sm:$0xff]  ;;  %v2010_v49 = vmul.f32 %v5113_v59, %v5152_v29 }
 0x129   : > { %v1906_v27 = vadd.f32 %v1874_v52, %v1838_v31  ;;  %v1808_v54 = vmul.f32 %v5110_v24, %v5152_v29  ;;  %v1943_v44 = vmul.f32 %v5120_v48, %v5183_v61  ;;  %v2011_v52 = vmul.f32 %v5113_v59, %v5131_v53 }
 0x12a   : > { %v1422_v30 = vld [vmem:[#allocation2 + $0x48] sm:$0xff]  ;;  %v2139_v5 = vpack.c.bf16 %v2108_v26, %v2107_v41  ;;  %v1704_v10 = vadd.f32 %v1672_v11, %v1636_v23  ;;  %v1605_v23 = vmul.f32 %v5088_v4, %v5137_v22 }
 0x12b   : > { %v1941_v28 = vmul.f32 %v5120_v48, %v1422_v30  ;;  %v1739_v9 = vmul.f32 %v5104_v34, %v1422_v30  ;;  %v1537_v2 = vmul.f32 %v5081_v62, %v1422_v30  ;;  %v2012_v30 = vmul.f32 %v5113_v59, %v5142_v56 }
 0x12c   : > { %3984 = vmatprep.mubr.bf16.mxu1 %v2139_v5  ;;  %v1425_v60 = vld [vmem:[#allocation2 + $0x68] sm:$0xff] }
 0x12d   : > { %v1973_v19 = vadd.f32 %v1941_v28, %v1905_v45  ;;  %v1771_v33 = vadd.f32 %v1739_v9, %v1703_v42  ;;  %v1944_v26 = vmul.f32 %v5120_v48, %v1425_v60  ;;  %v1606_v28 = vmul.f32 %v5088_v4, %v5152_v29  ;;  %v1496_v9 = vld [vmem:[#allocation2 + $0x62] sm:$0xff]  ;;  %v1497_v5 = vld [vmem:[#allocation2 + $0x6a] sm:$0xff] }
 0x12e   : > { %v1423_v25 = vld [vmem:[#allocation2 + $0x50] sm:$0xff]  ;;  %v2080_v29 = vmul.f32 %v5157_v40, %v1497_v5 }
 0x12f   : > { %v1494_v35 = vld [vmem:[#allocation2 + $0x4a] sm:$0xff]  ;;  %v1942_v55 = vmul.f32 %v5120_v48, %v1423_v25  ;;  %v1495_v38 = vld [vmem:[#allocation2 + $0x52] sm:$0xff]  ;;  %v1740_v6 = vmul.f32 %v5104_v34, %v1423_v25  ;;  %v1839_v58 = vadd.f32 %v1807_v20, %v1771_v33  ;;  %v2041_v8 = vadd.f32 %v2009_v46, %v1973_v19 }
 0x130   : > { %v1875_v1 = vmul.f32 %v5117_v39, %v1494_v35  ;;  %v2077_v7 = vmul.f32 %v5157_v40, %v1494_v35  ;;  %v2078_v13 = vmul.f32 %v5157_v40, %v1495_v38  ;;  %v1876_v3 = vmul.f32 %v5117_v39, %v1495_v38 }
 0x131   : > { %v1974_v57 = vadd.f32 %v1942_v55, %v1906_v27  ;;  %v1772_v0 = vadd.f32 %v1740_v6, %v1704_v10  ;;  %v1538_v31 = vmul.f32 %v5081_v62, %v1423_v25  ;;  %v1673_v27 = vmul.f32 %v5095_v21, %v1494_v35 }
 0x132   : > { %v1907_v16 = vadd.f32 %v1875_v1, %v1839_v58  ;;  %v2109_v45 = vadd.f32 %v2077_v7, %v2041_v8  ;;  %v1637_v25 = vadd.f32 %v1605_v23, %v1537_v2  ;;  %v2079_v55 = vmul.f32 %v5157_v40, %v1496_v9 }
 0x133   : > { %v2042_v36 = vadd.f32 %v2010_v49, %v1974_v57  ;;  %v1840_v63 = vadd.f32 %v1808_v54, %v1772_v0  ;;  %v1638_v11 = vadd.f32 %v1606_v28, %v1538_v31  ;;  %v1674_v46 = vmul.f32 %v5095_v21, %v1495_v38 }
 0x134   : > { %v1975_v12 = vadd.f32 %v1943_v44, %v1907_v16  ;;  %v1705_v6 = vadd.f32 %v1673_v27, %v1637_v25  ;;  %v1741_v49 = vmul.f32 %v5104_v34, %v5183_v61  ;;  %v1742_v16 = vmul.f32 %v5104_v34, %v1425_v60 }
 0x135   : > { %v2110_v15 = vadd.f32 %v2078_v13, %v2042_v36  ;;  %v1908_v41 = vadd.f32 %v1876_v3, %v1840_v63  ;;  %v1706_v1 = vadd.f32 %v1674_v46, %v1638_v11  ;;  %v1540_v38 = vmul.f32 %v5081_v62, %v1425_v60 }
 0x136   : > { %v2043_v33 = vadd.f32 %v2011_v52, %v1975_v12  ;;  %v1773_v13 = vadd.f32 %v1741_v49, %v1705_v6  ;;  %v1539_v12 = vmul.f32 %v5081_v62, %v5183_v61  ;;  %v1608_v31 = vmul.f32 %v5088_v4, %v5142_v56 }
 0x137   : > { %v2140_v42 = vpack.c.bf16 %v2110_v15, %v2109_v45  ;;  %v1976_v19 = vadd.f32 %v1944_v26, %v1908_v41  ;;  %v1774_v63 = vadd.f32 %v1742_v16, %v1706_v1  ;;  %v1809_v60 = vmul.f32 %v5110_v24, %v5131_v53 }
 0x138   : > { %v2111_v35 = vadd.f32 %v2079_v55, %v2043_v33  ;;  %v1810_v2 = vmul.f32 %v5110_v24, %v5142_v56  ;;  %v1607_v41 = vmul.f32 %v5088_v4, %v5131_v53  ;;  %v1675_v26 = vmul.f32 %v5095_v21, %v1496_v9 }
 0x139   : > { %3985 = vmatmul.mubr.bf16.vlgmr.msra.gmra.mxu1 %v2140_v42  ;;  %v2044_v20 = vadd.f32 %v2012_v30, %v1976_v19  ;;  %v1841_v52 = vadd.f32 %v1809_v60, %v1773_v13  ;;  %v1640_v42 = vadd.f32 %v1608_v31, %v1540_v38  ;;  %v1676_v27 = vmul.f32 %v5095_v21, %v1497_v5 }
 0x13a   : > { %v1842_v28 = vadd.f32 %v1810_v2, %v1774_v63  ;;  %v1639_v23 = vadd.f32 %v1607_v41, %v1539_v12  ;;  %v1877_v19 = vmul.f32 %v5117_v39, %v1496_v9  ;;  %v1878_v30 = vmul.f32 %v5117_v39, %v1497_v5 }
 0x13b   : > { %v2112_v58 = vadd.f32 %v2080_v29, %v2044_v20  ;;  %v1708_v20 = vadd.f32 %v1676_v27, %v1640_v42 }
 0x13c   : > { %v3946_v10 = vpop.f32.mrf.mxu0  ;;  %v1707_v33 = vadd.f32 %v1675_v26, %v1639_v23  ;;  %v1909_v11 = vadd.f32 %v1877_v19, %v1841_v52  ;;  %v1910_v25 = vadd.f32 %v1878_v30, %v1842_v28 }
 0x13d   : > { %v1266_v22 = vadd.f32 %v3946_v10, %v5075_v37  ;;  %v2141_v54 = vpack.c.bf16 %v2112_v58, %v2111_v35 }
 0x13e   : > { %v1257_v57 = vpop.f32.mrf.mxu0 }
 0x13f   : > { %v1362_v8 = vmax.f32 %v1266_v22, 0.0  ;;  %v1258_v0 = vadd.f32 %v5075_v37, %v1257_v57  ;;  %3988 = vmatprep.mubr.bf16.mxu1 %v2141_v54 }
 0x140   : > { %v3947_v44 = vpop.f32.mrf.mxu0 }
 0x141   : > { %1394 = vst [vmem:[#allocation2 + $0x91] sm:$0xff] %v1362_v8  ;;  %v1360_v36 = vmax.f32 %v1258_v0, 0.0  ;;  %v1269_v7 = vadd.f32 %v3947_v44, %v5075_v37  ;;  %v5239_v10 = vmul.f32 %v5088_v4, %v1362_v8  ;;  %v5242_v6 = vmul.f32 %v5113_v59, %v1362_v8 }
 0x142   : > { %v1260_v3 = vpop.f32.mrf.mxu0  ;;  %v5245_v9 = vmul.f32 %v5110_v24, %v1362_v8 }
 0x143   : > { %1392 = vst [vmem:[#allocation2 + $0x79] sm:$0xff] %v1360_v36  ;;  %v5222_v45 = vmax.f32 %v1269_v7, 0.0  ;;  %v1261_v15 = vadd.f32 %v5075_v37, %v1260_v3  ;;  %v1609_v46 = vmul.f32 %v5088_v4, %v1360_v36  ;;  %v2013_v58 = vmul.f32 %v5113_v59, %v1360_v36 }
 0x144   : > { %v1811_v8 = vmul.f32 %v5110_v24, %v1360_v36 }
 0x145   : > { %1395 = vst [vmem:[#allocation2 + $0x99] sm:$0xff] %v5222_v45  ;;  %v1361_v61 = vmax.f32 %v1261_v15, 0.0  ;;  %v5255_v0 = vmul.f32 %v5088_v4, %v5222_v45 }
 0x147   : > { %1393 = vst [vmem:[#allocation2 + $0x81] sm:$0xff] %v1361_v61  ;;  %v1610_v49 = vmul.f32 %v5088_v4, %v1361_v61  ;;  %v2014_v7 = vmul.f32 %v5113_v59, %v1361_v61  ;;  %v1812_v60 = vmul.f32 %v5110_v24, %v1361_v61 }
 0x148   : > { %v1428_v1 = vld [vmem:[#allocation2 + $0x90] sm:$0xff] }
 0x149   : > { %v3954_v56 = vpop.f32.mrf.mxu1  ;;  %v1543_v31 = vmul.f32 %v5081_v62, %v1428_v1  ;;  %v1947_v36 = vmul.f32 %v5120_v48, %v1428_v1  ;;  %v1745_v61 = vmul.f32 %v5104_v34, %v1428_v1 }
 0x14a   : > { %v1298_v53 = vadd.f32 %v3954_v56, %v5075_v37  ;;  %v1426_v29 = vld [vmem:[#allocation2 + $0x78] sm:$0xff] }
 0x14b   : > { %v1289_v55 = vpop.f32.mrf.mxu1  ;;  %v1945_v35 = vmul.f32 %v5120_v48, %v1426_v29  ;;  %v1743_v54 = vmul.f32 %v5104_v34, %v1426_v29  ;;  %v1541_v52 = vmul.f32 %v5081_v62, %v1426_v29 }
 0x14c   : > { %v5247_v5 = vmax.f32 %v1298_v53, 0.0  ;;  %v1290_v22 = vadd.f32 %v5075_v37, %v1289_v55  ;;  %v1429_v13 = vld [vmem:[#allocation2 + $0x98] sm:$0xff] }
 0x14d   : > { %v3955_v57 = vpop.f32.mrf.mxu1  ;;  %v1977_v38 = vadd.f32 %v1945_v35, %v1909_v11  ;;  %v1775_v15 = vadd.f32 %v1743_v54, %v1707_v33  ;;  %v1948_v27 = vmul.f32 %v5120_v48, %v1429_v13 }
 0x14e   : > { %1402 = vst [vmem:[#allocation2 + $0xf1] sm:$0xff] %v5247_v5  ;;  %v5260_v16 = vmax.f32 %v1290_v22, 0.0  ;;  %v1301_v44 = vadd.f32 %v3955_v57, %v5075_v37  ;;  %v1427_v3 = vld [vmem:[#allocation2 + $0x80] sm:$0xff] }
 0x14f   : > { %v1292_v63 = vpop.f32.mrf.mxu1  ;;  %v1498_v12 = vld [vmem:[#allocation2 + $0x7a] sm:$0xff]  ;;  %v1499_v26 = vld [vmem:[#allocation2 + $0x82] sm:$0xff]  ;;  %v1946_v28 = vmul.f32 %v5120_v48, %v1427_v3  ;;  %v2045_v42 = vadd.f32 %v2013_v58, %v1977_v38  ;;  %v1744_v23 = vmul.f32 %v5104_v34, %v1427_v3  ;;  %v1843_v56 = vadd.f32 %v1811_v8, %v1775_v15 }
 0x150   : > { %1400 = vst [vmem:[#allocation2 + $0xd9] sm:$0xff] %v5260_v16  ;;  %v5268_v2 = vmax.f32 %v1301_v44, 0.0  ;;  %v1293_v41 = vadd.f32 %v5075_v37, %v1292_v63  ;;  %v1879_v33 = vmul.f32 %v5117_v39, %v1498_v12  ;;  %v2081_v53 = vmul.f32 %v5157_v40, %v1498_v12 }
 0x151   : > { %v1978_v30 = vadd.f32 %v1946_v28, %v1910_v25  ;;  %v2082_v11 = vmul.f32 %v5157_v40, %v1499_v26  ;;  %v1776_v55 = vadd.f32 %v1744_v23, %v1708_v20  ;;  %v1542_v29 = vmul.f32 %v5081_v62, %v1427_v3  ;;  %v1500_v25 = vld [vmem:[#allocation2 + $0x92] sm:$0xff] }
 0x152   : > { %1403 = vst [vmem:[#allocation2 + $0xf9] sm:$0xff] %v5268_v2  ;;  %v5277_v19 = vmax.f32 %v1293_v41, 0.0  ;;  %v1911_v35 = vadd.f32 %v1879_v33, %v1843_v56  ;;  %v1641_v58 = vadd.f32 %v1609_v46, %v1541_v52  ;;  %v1677_v1 = vmul.f32 %v5095_v21, %v1498_v12  ;;  %v1501_v41 = vld [vmem:[#allocation2 + $0x9a] sm:$0xff] }
 0x153   : > { %v2046_v22 = vadd.f32 %v2014_v7, %v1978_v30  ;;  %v1678_v57 = vmul.f32 %v5095_v21, %v1499_v26  ;;  %v1844_v54 = vadd.f32 %v1812_v60, %v1776_v55  ;;  %v1880_v8 = vmul.f32 %v5117_v39, %v1499_v26 }
 0x154   : > { %1401 = vst [vmem:[#allocation2 + $0xe1] sm:$0xff] %v5277_v19  ;;  %v1642_v44 = vadd.f32 %v1610_v49, %v1542_v29  ;;  %v2113_v38 = vadd.f32 %v2081_v53, %v2045_v42  ;;  %v1979_v15 = vadd.f32 %v1947_v36, %v1911_v35  ;;  %v1709_v20 = vadd.f32 %v1677_v1, %v1641_v58 }
 0x155   : > { %v2114_v63 = vadd.f32 %v2082_v11, %v2046_v22  ;;  %v1912_v3 = vadd.f32 %v1880_v8, %v1844_v54  ;;  %v1746_v7 = vmul.f32 %v5104_v34, %v1429_v13  ;;  %v1544_v46 = vmul.f32 %v5081_v62, %v1429_v13 }
 0x156   : > { %v1710_v28 = vadd.f32 %v1678_v57, %v1642_v44  ;;  %v2016_v12 = vmul.f32 %v5113_v59, %v5222_v45  ;;  %v1777_v23 = vadd.f32 %v1745_v61, %v1709_v20  ;;  %v1679_v60 = vmul.f32 %v5095_v21, %v1500_v25 }
 0x157   : > { %v2142_v52 = vpack.c.bf16 %v2114_v63, %v2113_v38  ;;  %v1980_v26 = vadd.f32 %v1948_v27, %v1912_v3  ;;  %v2047_v49 = vadd.f32 %v5242_v6, %v1979_v15  ;;  %v1814_v36 = vmul.f32 %v5110_v24, %v5222_v45  ;;  %v1434_v30 = vld [vmem:[#allocation2 + $0xd8] sm:$0xff] }
 0x158   : > { %v1778_v42 = vadd.f32 %v1746_v7, %v1710_v28  ;;  %v1680_v56 = vmul.f32 %v5095_v21, %v1501_v41  ;;  %v1845_v13 = vadd.f32 %v5245_v9, %v1777_v23  ;;  %v1643_v33 = vadd.f32 %v5239_v10, %v1543_v31  ;;  %v1436_v31 = vld [vmem:[#allocation2 + $0xf0] sm:$0xff] }
 0x159   : > { %3989 = vmatmul.mubr.bf16.gmra.mxu1 %v2142_v52  ;;  %v1644_v53 = vadd.f32 %v5255_v0, %v1544_v46  ;;  %v2048_v61 = vadd.f32 %v2016_v12, %v1980_v26  ;;  %v2083_v11 = vmul.f32 %v5157_v40, %v1500_v25  ;;  %v2084_v27 = vmul.f32 %v5157_v40, %v1501_v41  ;;  %v5318_v44 = vld [vmem:[#allocation2 + $0xfa] sm:$0xff] }
 0x15a   : > { %v1846_v6 = vadd.f32 %v1814_v36, %v1778_v42  ;;  %v1881_v29 = vmul.f32 %v5117_v39, %v1500_v25  ;;  %v1882_v45 = vmul.f32 %v5117_v39, %v1501_v41  ;;  %v5303_v22 = vadd.f32 %v1679_v60, %v1643_v33 }
 0x15b   : > { %v1507_v55 = vld [vmem:[#allocation2 + $0xe2] sm:$0xff]  ;;  %v1549_v35 = vmul.f32 %v5081_v62, %v1434_v30  ;;  %v2115_v9 = vadd.f32 %v2083_v11, %v2047_v49  ;;  %v2116_v58 = vadd.f32 %v2084_v27, %v2048_v61  ;;  %v1617_v10 = vmul.f32 %v5088_v4, %v5260_v16  ;;  %v1506_v15 = vld [vmem:[#allocation2 + $0xda] sm:$0xff] }
 0x15c   : > { %v1618_v0 = vmul.f32 %v5088_v4, %v5277_v19  ;;  %v5310_v1 = vadd.f32 %v1881_v29, %v1845_v13  ;;  %v5312_v57 = vadd.f32 %v1680_v56, %v1644_v53  ;;  %v1435_v25 = vld [vmem:[#allocation2 + $0xe0] sm:$0xff]  ;;  %v1686_v54 = vmul.f32 %v5095_v21, %v1507_v55  ;;  %v1437_v61 = vld [vmem:[#allocation2 + $0xf8] sm:$0xff] }
 0x15d   : > { %v5316_v8 = vmul.f32 %v5120_v48, %v1434_v30  ;;  %v2143_v38 = vpack.c.bf16 %v2116_v58, %v2115_v9  ;;  %v5320_v63 = vadd.f32 %v1882_v45, %v1846_v6  ;;  %v5323_v20 = vmul.f32 %v5120_v48, %v1435_v25 }
 0x15e   : > { %v5327_v41 = vmul.f32 %v5113_v59, %v5260_v16  ;;  %v5331_v28 = vmul.f32 %v5113_v59, %v5277_v19  ;;  %v5334_v7 = vmul.f32 %v5157_v40, %v1506_v15  ;;  %v5337_v46 = vmul.f32 %v5157_v40, %v1507_v55 }
 0x15f   : > { %v5340_v52 = vmul.f32 %v5081_v62, %v1436_v31  ;;  %3992 = vmatprep.mubr.bf16.mxu1 %v2143_v38  ;;  %v5345_v23 = vmul.f32 %v5088_v4, %v5247_v5  ;;  %v5349_v60 = vmul.f32 %v5088_v4, %v5268_v2  ;;  %v5353_v26 = vmul.f32 %v5095_v21, %v5318_v44 }
 0x160   : > { %v3950_v3 = vpop.f32.mrf.mxu0  ;;  %6563 = vst [vmem:[#allocation10_spill] sm:$0xff] %v5334_v7  ;;  %6564 = vst [vmem:[#allocation19_spill] sm:$0xff] %v5337_v46  ;;  %v5356_v42 = vmul.f32 %v5104_v34, %v1434_v30  ;;  %v5359_v36 = vmul.f32 %v5104_v34, %v1435_v25  ;;  %v5363_v56 = vmul.f32 %v5110_v24, %v5260_v16 }
 0x161   : > { %v1282_v12 = vadd.f32 %v3950_v3, %v5075_v37  ;;  %6565 = vst [vmem:[#allocation27_spill] sm:$0xff] %v5353_v26  ;;  %v1550_v13 = vmul.f32 %v5081_v62, %v1435_v25  ;;  %v1649_v11 = vadd.f32 %v1617_v10, %v1549_v35  ;;  %v1685_v27 = vmul.f32 %v5095_v21, %v1506_v15 }
 0x162   : > { %v1273_v49 = vpop.f32.mrf.mxu0  ;;  %v5370_v30 = vmul.f32 %v5110_v24, %v5277_v19  ;;  %v1753_v45 = vmul.f32 %v5104_v34, %v1436_v31  ;;  %v1754_v16 = vmul.f32 %v5104_v34, %v1437_v61  ;;  %v5376_v25 = vmul.f32 %v5117_v39, %v1506_v15 }
 0x163   : > { %v1366_v33 = vmax.f32 %v1282_v12, 0.0  ;;  %v1274_v53 = vadd.f32 %v5075_v37, %v1273_v49  ;;  %v1650_v29 = vadd.f32 %v1618_v0, %v1550_v13  ;;  %v5379_v35 = vmul.f32 %v5117_v39, %v1507_v55  ;;  %v1508_v13 = vld [vmem:[#allocation2 + $0xf2] sm:$0xff] }
 0x164   : > { %v3951_v6 = vpop.f32.mrf.mxu0  ;;  %v5382_v38 = vmul.f32 %v5120_v48, %v1436_v31  ;;  %v5385_v19 = vmul.f32 %v5120_v48, %v1437_v61  ;;  %v1717_v0 = vadd.f32 %v1685_v27, %v1649_v11  ;;  %v5390_v15 = vmul.f32 %v5113_v59, %v5247_v5 }
 0x165   : > { %1398 = vst [vmem:[#allocation2 + $0xc1] sm:$0xff] %v1366_v33  ;;  %v1364_v9 = vmax.f32 %v1274_v53, 0.0  ;;  %v1285_v58 = vadd.f32 %v3951_v6, %v5075_v37  ;;  %6566 = vst [vmem:[#allocation18_spill] sm:$0xff] %v5379_v35  ;;  %v1718_v3 = vadd.f32 %v1686_v54, %v1650_v29  ;;  %v1821_v55 = vmul.f32 %v5110_v24, %v5247_v5 }
 0x166   : > { %v1276_v10 = vpop.f32.mrf.mxu0  ;;  %6567 = vst [vmem:[#allocation20_spill] sm:$0xff] %v5382_v38  ;;  %6568 = vst [vmem:[#allocation13_spill] sm:$0xff] %v5385_v19  ;;  %v5396_v31 = vmul.f32 %v5113_v59, %v5268_v2  ;;  %v1785_v53 = vadd.f32 %v1753_v45, %v1717_v0  ;;  %v1822_v54 = vmul.f32 %v5110_v24, %v5268_v2 }
 0x167   : > { %1396 = vst [vmem:[#allocation2 + $0xa9] sm:$0xff] %v1364_v9  ;;  %v1367_v12 = vmax.f32 %v1285_v58, 0.0  ;;  %v1277_v49 = vadd.f32 %v5075_v37, %v1276_v10  ;;  %6569 = vst [vmem:[#allocation14_spill] sm:$0xff] %v5390_v15  ;;  %v1786_v6 = vadd.f32 %v1754_v16, %v1718_v3  ;;  %v1615_v27 = vmul.f32 %v5088_v4, %v1366_v33 }
 0x168   : > { %6570 = vst [vmem:[#allocation22_spill] sm:$0xff] %v5396_v31  ;;  %v5402_v29 = vmul.f32 %v5157_v40, %v1508_v13  ;;  %v5406_v5 = vmul.f32 %v5157_v40, %v5318_v44  ;;  %v5409_v58 = vmul.f32 %v5088_v4, %v1364_v9  ;;  %v2017_v45 = vmul.f32 %v5113_v59, %v1364_v9 }
 0x169   : > { %1399 = vst [vmem:[#allocation2 + $0xc9] sm:$0xff] %v1367_v12  ;;  %v1365_v11 = vmax.f32 %v1277_v49, 0.0  ;;  %v5413_v16 = vmul.f32 %v5113_v59, %v1366_v33  ;;  %v5416_v2 = vmul.f32 %v5110_v24, %v1366_v33  ;;  %v5419_v10 = vmul.f32 %v5088_v4, %v1367_v12 }
 0x16a   : > { %6571 = vst [vmem:[#allocation26_spill] sm:$0xff] %v5402_v29  ;;  %6572 = vst [vmem:[#allocation23_spill] sm:$0xff] %v5406_v5  ;;  %v1815_v0 = vmul.f32 %v5110_v24, %v1364_v9  ;;  %v1853_v3 = vadd.f32 %v1821_v55, %v1785_v53  ;;  %v1889_v49 = vmul.f32 %v5117_v39, %v1508_v13 }
 0x16b   : > { %1397 = vst [vmem:[#allocation2 + $0xb1] sm:$0xff] %v1365_v11  ;;  %v3958_v17 = vpop.f32.mrf.mxu1  ;;  %v5424_v32 = vmul.f32 %v5113_v59, %v1367_v12  ;;  %v1854_v18 = vadd.f32 %v1822_v54, %v1786_v6  ;;  %v1890_v47 = vmul.f32 %v5117_v39, %v5318_v44  ;;  %v1552_v33 = vmul.f32 %v5081_v62, %v1437_v61 }
 0x16c   : > { %v1432_v50 = vld [vmem:[#allocation2 + $0xc0] sm:$0xff]  ;;  %v1314_v14 = vadd.f32 %v3958_v17, %v5075_v37  ;;  %v1614_v43 = vmul.f32 %v5088_v4, %v1365_v11  ;;  %v2018_v9 = vmul.f32 %v5113_v59, %v1365_v11  ;;  %v5433_v55 = vmul.f32 %v5110_v24, %v1367_v12 }
 0x16d   : > { %v1305_v53 = vpop.f32.mrf.mxu1  ;;  %v1547_v5 = vmul.f32 %v5081_v62, %v1432_v50  ;;  %v1816_v6 = vmul.f32 %v5110_v24, %v1365_v11  ;;  %v1651_v44 = vadd.f32 %v5345_v23, %v5340_v52  ;;  %v1687_v61 = vmul.f32 %v5095_v21, %v1508_v13 }
 0x16e   : > { %v1430_v51 = vld [vmem:[#allocation2 + $0xa8] sm:$0xff]  ;;  %v1374_v54 = vmax.f32 %v1314_v14, 0.0  ;;  %v1306_v17 = vadd.f32 %v5075_v37, %v1305_v53  ;;  %v5442_v4 = vadd.f32 %v1889_v49, %v1853_v3  ;;  %v1951_v15 = vmul.f32 %v5120_v48, %v1432_v50 }
 0x16f   : > { %v1949_v29 = vmul.f32 %v5120_v48, %v1430_v51  ;;  %v3959_v12 = vpop.f32.mrf.mxu1  ;;  %v1747_v26 = vmul.f32 %v5104_v34, %v1430_v51  ;;  %v5448_v11 = vadd.f32 %v1890_v47, %v1854_v18  ;;  %v5451_v52 = vadd.f32 %v5349_v60, %v1552_v33 }
 0x170   : > { %v5444_v31 = vld [vmem:[#allocation2 + $0xca] sm:$0xff]  ;;  %1406 = vst [vmem:[#allocation2 + $0x121] sm:$0xff] %v1374_v54  ;;  %v5453_v14 = vmax.f32 %v1306_v17, 0.0  ;;  %v1317_v23 = vadd.f32 %v3959_v12, %v5075_v37  ;;  %v1749_v49 = vmul.f32 %v5104_v34, %v1432_v50  ;;  %v1545_v47 = vmul.f32 %v5081_v62, %v1430_v51 }
 0x171   : > { %6573 = vst [vmem:[#allocation25_spill] sm:$0xff] %v5451_v52  ;;  %v1981_v13 = vadd.f32 %v1949_v29, %v5310_v1  ;;  %v1433_v3 = vld [vmem:[#allocation2 + $0xc8] sm:$0xff]  ;;  %v1308_v53 = vpop.f32.mrf.mxu1  ;;  %v1779_v18 = vadd.f32 %v1747_v26, %v5303_v22  ;;  %v1647_v60 = vadd.f32 %v1615_v27, %v1547_v5  ;;  %v5460_v33 = vadd.f32 %v1687_v61, %v1651_v44 }
 0x172   : > { %v1431_v24 = vld [vmem:[#allocation2 + $0xb0] sm:$0xff]  ;;  %1404 = vst [vmem:[#allocation2 + $0x109] sm:$0xff] %v5453_v14  ;;  %v5463_v54 = vmax.f32 %v1317_v23, 0.0  ;;  %v1309_v1 = vadd.f32 %v5075_v37, %v1308_v53  ;;  %v1684_v50 = vmul.f32 %v5095_v21, %v5444_v31  ;;  %v1952_v22 = vmul.f32 %v5120_v48, %v1433_v3 }
 0x173   : > { %v1502_v19 = vld [vmem:[#allocation2 + $0xaa] sm:$0xff]  ;;  %v1503_v46 = vld [vmem:[#allocation2 + $0xb2] sm:$0xff]  ;;  %6574 = vst [vmem:[#allocation21_spill] sm:$0xff] %v5460_v33  ;;  %v1950_v29 = vmul.f32 %v5120_v48, %v1431_v24  ;;  %v2049_v12 = vadd.f32 %v2017_v45, %v1981_v13  ;;  %v1748_v51 = vmul.f32 %v5104_v34, %v1431_v24  ;;  %v1847_v5 = vadd.f32 %v1815_v0, %v1779_v18  ;;  %v1504_v33 = vld [vmem:[#allocation2 + $0xc2] sm:$0xff] }
 0x174   : > { %6575 = vst [vmem:[#allocation24_spill] sm:$0xff] %v5463_v54  ;;  %v1682_v17 = vmul.f32 %v5095_v21, %v1503_v46  ;;  %1407 = vst [vmem:[#allocation2 + $0x129] sm:$0xff] %v5463_v54  ;;  %v5473_v26 = vmax.f32 %v1309_v1, 0.0  ;;  %v1883_v44 = vmul.f32 %v5117_v39, %v1502_v19  ;;  %v2085_v61 = vmul.f32 %v5157_v40, %v1502_v19 }
 0x175   : > { %v1982_v27 = vadd.f32 %v1950_v29, %v5320_v63  ;;  %v2086_v23 = vmul.f32 %v5157_v40, %v1503_v46  ;;  %v1780_v53 = vadd.f32 %v1748_v51, %v5312_v57  ;;  %v1546_v45 = vmul.f32 %v5081_v62, %v1431_v24 }
 0x176   : > { %1405 = vst [vmem:[#allocation2 + $0x111] sm:$0xff] %v5473_v26  ;;  %v1915_v54 = vadd.f32 %v1883_v44, %v1847_v5  ;;  %v1645_v1 = vadd.f32 %v5409_v58, %v1545_v47  ;;  %v1681_v63 = vmul.f32 %v5095_v21, %v1502_v19  ;;  %v2117_v0 = vadd.f32 %v2085_v61, %v2049_v12 }
 0x177   : > { %v2050_v13 = vadd.f32 %v2018_v9, %v1982_v27  ;;  %v1848_v18 = vadd.f32 %v1816_v6, %v1780_v53  ;;  %v1884_v29 = vmul.f32 %v5117_v39, %v1503_v46  ;;  %v1646_v52 = vadd.f32 %v1614_v43, %v1546_v45 }
 0x178   : > { %v1983_v35 = vadd.f32 %v1951_v15, %v1915_v54  ;;  %v1713_v7 = vadd.f32 %v1681_v63, %v1645_v1  ;;  %v1750_v57 = vmul.f32 %v5104_v34, %v1433_v3  ;;  %v1548_v9 = vmul.f32 %v5081_v62, %v1433_v3 }
 0x179   : > { %v2118_v38 = vadd.f32 %v2086_v23, %v2050_v13  ;;  %v1916_v24 = vadd.f32 %v1884_v29, %v1848_v18  ;;  %v1714_v51 = vadd.f32 %v1682_v17, %v1646_v52  ;;  %v1683_v27 = vmul.f32 %v5095_v21, %v1504_v33 }
 0x17a   : > { %v2051_v58 = vadd.f32 %v5413_v16, %v1983_v35  ;;  %v2087_v19 = vmul.f32 %v5157_v40, %v1504_v33  ;;  %v1781_v6 = vadd.f32 %v1749_v49, %v1713_v7  ;;  %v1648_v43 = vadd.f32 %v5419_v10, %v1548_v9  ;;  %v5500_v10 = vld [vmem:[#allocation2 + $0x108] sm:$0xff]  ;;  %v6578_v9 = vld [vmem:[#allocation20_spill] sm:$0xff] }
 0x17b   : > { %v2144_v5 = vpack.c.bf16 %v2118_v38, %v2117_v0  ;;  %v1984_v47 = vadd.f32 %v1952_v22, %v1916_v24  ;;  %v1782_v46 = vadd.f32 %v1750_v57, %v1714_v51  ;;  %v1715_v15 = vadd.f32 %v1683_v27, %v1647_v60  ;;  %v6576_v24 = vld [vmem:[#allocation10_spill] sm:$0xff] }
 0x17c   : > { %v2088_v54 = vmul.f32 %v5157_v40, %v5444_v31  ;;  %v1849_v52 = vadd.f32 %v5416_v2, %v1781_v6  ;;  %v1885_v3 = vmul.f32 %v5117_v39, %v1504_v33  ;;  %v1886_v38 = vmul.f32 %v5117_v39, %v5444_v31  ;;  %v6577_v51 = vld [vmem:[#allocation18_spill] sm:$0xff] }
 0x17d   : > { %3993 = vmatmul.mubr.bf16.gmra.mxu1 %v2144_v5  ;;  %v2052_v35 = vadd.f32 %v5424_v32, %v1984_v47  ;;  %v1850_v7 = vadd.f32 %v5433_v55, %v1782_v46  ;;  %v1716_v16 = vadd.f32 %v1684_v50, %v1648_v43  ;;  %v1783_v49 = vadd.f32 %v5356_v42, %v1715_v15  ;;  %v5502_v60 = vld [vmem:[#allocation2 + $0x110] sm:$0xff]  ;;  %v4105_v43 = vld [vmem:[%s6463_s2 + $0xb8] sm:$0xff]   ;;  %v6580_v15 = vld [vmem:[#allocation13_spill] sm:$0xff] }
 0x17e   : > { %v3962_v17 = vpop.f32.mrf.mxu1  ;;  %v2119_v12 = vadd.f32 %v2087_v19, %v2051_v58  ;;  %v1917_v22 = vadd.f32 %v1885_v3, %v1849_v52  ;;  %v1957_v2 = vmul.f32 %v5120_v48, %v5500_v10  ;;  %v1958_v31 = vmul.f32 %v5120_v48, %v5502_v60  ;;  %v6579_v58 = vld [vmem:[#allocation19_spill] sm:$0xff]  ;;  %v6581_v52 = vld [vmem:[#allocation14_spill] sm:$0xff]  ;;  %4016 = vmatprep.subr.bf16.mxu0 %v4105_v43 }
 0x17f   : > { %v1330_v32 = vadd.f32 %v3962_v17, %v5075_v37  ;;  %v2120_v33 = vadd.f32 %v2088_v54, %v2052_v35  ;;  %v1918_v55 = vadd.f32 %v1886_v38, %v1850_v7  ;;  %v1784_v50 = vadd.f32 %v5359_v36, %v1716_v16  ;;  %v1510_v6 = vld [vmem:[#allocation2 + $0x10a] sm:$0xff]  ;;  %v1511_v47 = vld [vmem:[#allocation2 + $0x112] sm:$0xff]  ;;  %v6582_v17 = vld [vmem:[#allocation25_spill] sm:$0xff]  ;;  %4017 = vmatpush3.bf16.msra.mxu0 %v4105_v43 }
 0x180   : > { %v1321_v42 = vpop.f32.mrf.mxu1  ;;  %v1985_v44 = vadd.f32 %v5316_v8, %v1917_v22  ;;  %v1851_v61 = vadd.f32 %v5363_v56, %v1783_v49  ;;  %v1989_v23 = vadd.f32 %v1957_v2, %v5442_v4  ;;  %v1990_v53 = vadd.f32 %v1958_v31, %v5448_v11  ;;  %v6584_v2 = vld [vmem:[#allocation22_spill] sm:$0xff] }
 0x181   : > { %v1378_v45 = vmax.f32 %v1330_v32, 0.0  ;;  %v1322_v13 = vadd.f32 %v5075_v37, %v1321_v42  ;;  %v2145_v1 = vpack.c.bf16 %v2120_v33, %v2119_v12  ;;  %v1986_v63 = vadd.f32 %v5323_v20, %v1918_v55  ;;  %v6583_v12 = vld [vmem:[#allocation27_spill] sm:$0xff]  ;;  %v6585_v32 = vld [vmem:[#allocation12_spill] sm:$0xff]  ;;  %v6586_v42 = vld [vmem:[#allocation26_spill] sm:$0xff] }
 0x182   : > { %v3963_v0 = vpop.f32.mrf.mxu1  ;;  %v2053_v18 = vadd.f32 %v5327_v41, %v1985_v44  ;;  %v1852_v36 = vadd.f32 %v5370_v30, %v1784_v50  ;;  %v1919_v29 = vadd.f32 %v5376_v25, %v1851_v61  ;;  %v2025_v8 = vmul.f32 %v5113_v59, %v5453_v14 }
 0x183   : > { %1410 = vst [vmem:[#allocation2 + $0x151] sm:$0xff] %v1378_v45  ;;  %v1376_v4 = vmax.f32 %v1322_v13, 0.0  ;;  %v1333_v56 = vadd.f32 %v3963_v0, %v5075_v37  ;;  %3996 = vmatprep.mubr.bf16.mxu1 %v2145_v1  ;;  %v2054_v11 = vadd.f32 %v5331_v28, %v1986_v63  ;;  %v2026_v20 = vmul.f32 %v5113_v59, %v5473_v26  ;;  %v5533_v37 = vld [vmem:[%s6464_s3] ss:$0 sm:$0xff]  ;;  %v6587_v1 = vld [vmem:[#allocation23_spill] sm:$0xff] }
 0x184   : > { %v1324_v57 = vpop.f32.mrf.mxu1  ;;  %v2121_v41 = vadd.f32 %v6576_v24, %v2053_v18  ;;  %v1920_v30 = vadd.f32 %v6577_v51, %v1852_v36  ;;  %v1987_v25 = vadd.f32 %v6578_v9, %v1919_v29  ;;  %v2057_v27 = vadd.f32 %v2025_v8, %v1989_v23  ;;  %v1440_v23 = vld [vmem:[#allocation2 + $0x120] sm:$0xff] }
 0x185   : > { %1408 = vst [vmem:[#allocation2 + $0x139] sm:$0xff] %v1376_v4  ;;  %v5528_v5 = vmax.f32 %v1333_v56, 0.0  ;;  %v1325_v28 = vadd.f32 %v5533_v37, %v1324_v57  ;;  %v2122_v19 = vadd.f32 %v6579_v58, %v2054_v11  ;;  %v2058_v46 = vadd.f32 %v2026_v20, %v1990_v53  ;;  %v1476_v53 = vld [vmem:[#allocation2 + $0x121] sm:$0xff] }
 0x186   : > { %v1988_v54 = vadd.f32 %v6580_v15, %v1920_v30  ;;  %v2055_v3 = vadd.f32 %v6581_v52, %v1987_v25  ;;  %v2093_v38 = vmul.f32 %v5157_v40, %v1510_v6  ;;  %v2094_v35 = vmul.f32 %v5157_v40, %v1511_v47  ;;  %v6588_v18 = vld [vmem:[#allocation17_spill] sm:$0xff]  ;;  %v5571_v57 = vld [vmem:[#allocation2 + $0x128] sm:$0xff] }
 0x187   : > { %1411 = vst [vmem:[#allocation2 + $0x159] sm:$0xff] %v5528_v5  ;;  %v5545_v7 = vmax.f32 %v1325_v28, 0.0  ;;  %v2146_v16 = vpack.c.bf16 %v2122_v19, %v2121_v41  ;;  %v1553_v49 = vmul.f32 %v5081_v62, %v5500_v10  ;;  %v1720_v22 = vadd.f32 %v6583_v12, %v6582_v17  ;;  %v6589_v8 = vld [vmem:[#allocation21_spill] sm:$0xff] }
 0x188   : > { %v2056_v31 = vadd.f32 %v6584_v2, %v1988_v54  ;;  %v1621_v33 = vmul.f32 %v6585_v32, %v5453_v14  ;;  %v1622_v55 = vmul.f32 %v6585_v32, %v5473_v26  ;;  %v1690_v50 = vmul.f32 %v5095_v21, %v1511_v47  ;;  %v5586_v28 = vld [vmem:[#allocation2 + $0x122] sm:$0xff] }
 0x189   : > { %1409 = vst [vmem:[#allocation2 + $0x141] sm:$0xff] %v5545_v7  ;;  %3997 = vmatmul.mubr.bf16.gmra.mxu1 %v2146_v16  ;;  %v2123_v44 = vadd.f32 %v6586_v42, %v2055_v3  ;;  %v2125_v61 = vadd.f32 %v2093_v38, %v2057_v27  ;;  %v1755_v45 = vmul.f32 %v5104_v34, %v5500_v10  ;;  %v1513_v38 = vld [vmem:[#allocation2 + $0x12a] sm:$0xff] }
 0x18a   : > { %v1756_v13 = vmul.f32 %v5104_v34, %v5502_v60  ;;  %v2124_v63 = vadd.f32 %v6587_v1, %v2056_v31  ;;  %v2126_v0 = vadd.f32 %v2094_v35, %v2058_v46  ;;  %v1823_v36 = vmul.f32 %v6588_v18, %v5453_v14  ;;  %v6590_v14 = vld [vmem:[#allocation24_spill] sm:$0xff] }
 0x18b   : > { %v1824_v29 = vmul.f32 %v6588_v18, %v5473_v26  ;;  %v1787_v4 = vadd.f32 %v1755_v45, %v6589_v8  ;;  %v1891_v11 = vmul.f32 %v5117_v39, %v1510_v6  ;;  %v1892_v20 = vmul.f32 %v5117_v39, %v1511_v47 }
 0x18c   : > { %v1788_v56 = vadd.f32 %v1756_v13, %v1720_v22  ;;  %v2147_v10 = vpack.c.bf16 %v2124_v63, %v2123_v44  ;;  %v5574_v24 = vmul.f32 %v5081_v62, %v1440_v23  ;;  %v5577_v41 = vmul.f32 %v6585_v32, %v1476_v53 }
 0x18d   : > { %v5581_v51 = vmul.f32 %v6585_v32, %v6590_v14  ;;  %v1855_v26 = vadd.f32 %v1823_v36, %v1787_v4  ;;  %v1959_v9 = vmul.f32 %v5120_v48, %v1440_v23  ;;  %v1960_v25 = vmul.f32 %v5120_v48, %v5571_v57 }
 0x18e   : > { %v1856_v30 = vadd.f32 %v1824_v29, %v1788_v56  ;;  %4000 = vmatprep.mubr.bf16.mxu1 %v2147_v10  ;;  %v2148_v27 = vpack.c.bf16 %v2126_v0, %v2125_v61  ;;  %v2027_v58 = vmul.f32 %v5113_v59, %v1476_v53  ;;  %v2028_v19 = vmul.f32 %v5113_v59, %v6590_v14  ;;  %v1442_v56 = vld [vmem:[#allocation2 + $0x138] sm:$0xff] }
 0x18f   : > { %v1554_v47 = vmul.f32 %v5081_v62, %v5502_v60  ;;  %v1923_v43 = vadd.f32 %v1891_v11, %v1855_v26  ;;  %v2095_v54 = vmul.f32 %v5157_v40, %v5586_v28  ;;  %v1653_v52 = vadd.f32 %v1621_v33, %v1553_v49 }
 0x190   : > { %v3966_v46 = vpop.f32.mrf.mxu1  ;;  %v1924_v15 = vadd.f32 %v1892_v20, %v1856_v30  ;;  %v1689_v16 = vmul.f32 %v5095_v21, %v1510_v6  ;;  %v1757_v17 = vmul.f32 %v5104_v34, %v1440_v23  ;;  %v2096_v60 = vmul.f32 %v5157_v40, %v1513_v38  ;;  %v1443_v11 = vld [vmem:[#allocation2 + $0x140] sm:$0xff] }
 0x191   : > { %v1346_v3 = vadd.f32 %v5533_v37, %v3966_v46  ;;  %v1654_v35 = vadd.f32 %v1622_v55, %v1554_v47  ;;  %4001 = vmatmul.mubr.bf16.gmra.mxu1 %v2148_v27  ;;  %v1991_v22 = vadd.f32 %v1959_v9, %v1923_v43  ;;  %v1758_v31 = vmul.f32 %v5104_v34, %v5571_v57  ;;  %v1478_v20 = vld [vmem:[#allocation2 + $0x139] sm:$0xff]  ;;  %v1515_v43 = vld [vmem:[#allocation2 + $0x142] sm:$0xff] }
 0x192   : > { %v1337_v12 = vpop.f32.mrf.mxu1  ;;  %v1992_v2 = vadd.f32 %v1960_v25, %v1924_v15  ;;  %v1721_v33 = vadd.f32 %v1689_v16, %v1653_v52  ;;  %v1825_v6 = vmul.f32 %v6588_v18, %v1476_v53  ;;  %v1826_v23 = vmul.f32 %v6588_v18, %v6590_v14  ;;  %v1514_v46 = vld [vmem:[#allocation2 + $0x13a] sm:$0xff]  ;;  %v5632_v16 = vld [vmem:[%s6462_s1 + $0x18] ss:$0 sm:$0xff] }
 0x193   : > { %v1382_v42 = vmax.f32 %v1346_v3, 0.0  ;;  %v1338_v49 = vadd.f32 %v5533_v37, %v1337_v12  ;;  %v1722_v44 = vadd.f32 %v1690_v50, %v1654_v35  ;;  %v2059_v55 = vadd.f32 %v2027_v58, %v1991_v22  ;;  %v1444_v22 = vld [vmem:[#allocation2 + $0x150] sm:$0xff] }
 0x194   : > { %v3967_v61 = vpop.f32.mrf.mxu1  ;;  %v2060_v45 = vadd.f32 %v2028_v19, %v1992_v2  ;;  %v1789_v1 = vadd.f32 %v1757_v17, %v1721_v33  ;;  %v1893_v50 = vmul.f32 %v5117_v39, %v5586_v28  ;;  %v1894_v8 = vmul.f32 %v5117_v39, %v1513_v38 }
 0x195   : > { %1414 = vst [vmem:[#allocation2 + $0x181] sm:$0xff] %v1382_v42  ;;  %v5605_v13 = vmax.f32 %v1338_v49, 0.0  ;;  %v1349_v40 = vadd.f32 %v5533_v37, %v3967_v61  ;;  %v1790_v63 = vadd.f32 %v1758_v31, %v1722_v44  ;;  %v2127_v36 = vadd.f32 %v2095_v54, %v2059_v55  ;;  %v1480_v44 = vld [vmem:[#allocation2 + $0x151] sm:$0xff] }
 0x196   : > { %v1340_v0 = vpop.f32.mrf.mxu1  ;;  %v2128_v29 = vadd.f32 %v2096_v60, %v2060_v45  ;;  %v1857_v10 = vadd.f32 %v1825_v6, %v1789_v1  ;;  %v1961_v30 = vmul.f32 %v5120_v48, %v1442_v56  ;;  %v1962_v9 = vmul.f32 %v5120_v48, %v1443_v11 }
 0x197   : > { %1412 = vst [vmem:[#allocation2 + $0x169] sm:$0xff] %v5605_v13  ;;  %v5612_v53 = vmax.f32 %v1349_v40, 0.0  ;;  %v1341_v4 = vadd.f32 %v5533_v37, %v1340_v0  ;;  %v1858_v14 = vadd.f32 %v1826_v23, %v1790_v63  ;;  %v2029_v25 = vmul.f32 %v5113_v59, %v1478_v20 }
 0x198   : > { %v2149_v26 = vpack.c.bf16 %v2128_v29, %v2127_v36  ;;  %v1925_v58 = vadd.f32 %v1893_v50, %v1857_v10  ;;  %v2030_v37 = vmul.f32 %v5113_v59, %v5545_v7  ;;  %v1692_v47 = vmul.f32 %v5095_v21, %v1513_v38  ;;  %v1445_v36 = vld [vmem:[#allocation2 + $0x158] sm:$0xff] }
 0x199   : > { %1415 = vst [vmem:[#allocation2 + $0x189] sm:$0xff] %v5612_v53  ;;  %v5619_v27 = vmax.f32 %v1341_v4, 0.0  ;;  %v1926_v19 = vadd.f32 %v1894_v8, %v1858_v14  ;;  %v1557_v15 = vmul.f32 %v5081_v62, %v1442_v56  ;;  %v1625_v54 = vmul.f32 %v6585_v32, %v1478_v20  ;;  %v4106_v8 = vld [vmem:[%s6463_s2 + $0xb0] sm:$0xff]  }
 0x19a   : > { %4004 = vmatprep.mubr.bf16.mxu1 %v2149_v26  ;;  %v1556_v52 = vmul.f32 %v5081_v62, %v5571_v57  ;;  %v1993_v3 = vadd.f32 %v1961_v30, %v1925_v58  ;;  %v2097_v38 = vmul.f32 %v5632_v16, %v1514_v46  ;;  %v2098_v17 = vmul.f32 %v5632_v16, %v1515_v43  ;;  %v1516_v4 = vld [vmem:[#allocation2 + $0x152] sm:$0xff]  ;;  %v1517_v58 = vld [vmem:[#allocation2 + $0x15a] sm:$0xff] }
 0x19b   : > { %1413 = vst [vmem:[#allocation2 + $0x171] sm:$0xff] %v5619_v27  ;;  %v1994_v35 = vadd.f32 %v1962_v9, %v1926_v19  ;;  %v1626_v12 = vmul.f32 %v6585_v32, %v5545_v7  ;;  %v1655_v57 = vadd.f32 %v5577_v41, %v5574_v24  ;;  %v1691_v60 = vmul.f32 %v5095_v21, %v5586_v28 }
 0x19c   : > { %v1656_v2 = vadd.f32 %v5581_v51, %v1556_v52  ;;  %v2061_v31 = vadd.f32 %v2029_v25, %v1993_v3  ;;  %v1759_v49 = vmul.f32 %v5104_v34, %v1442_v56  ;;  %v1760_v33 = vmul.f32 %v5104_v34, %v1443_v11  ;;  %4018 = vmatprep.subr.bf16.mxu0 %v4106_v8 }
 0x19d   : > { %v2062_v42 = vadd.f32 %v2030_v37, %v1994_v35  ;;  %v1723_v61 = vadd.f32 %v1691_v60, %v1655_v57  ;;  %v1827_v45 = vmul.f32 %v6588_v18, %v1478_v20  ;;  %v1828_v6 = vmul.f32 %v6588_v18, %v5545_v7  ;;  %4019 = vmatpush3.bf16.msra.mxu0 %v4106_v8 }
 0x19e   : > { %v1724_v55 = vadd.f32 %v1692_v47, %v1656_v2  ;;  %v1694_v24 = vmul.f32 %v5095_v21, %v1515_v43  ;;  %v2129_v41 = vadd.f32 %v2097_v38, %v2061_v31  ;;  %v1559_v28 = vmul.f32 %v5081_v62, %v1444_v22 }
 0x19f   : > { %v2130_v51 = vadd.f32 %v2098_v17, %v2062_v42  ;;  %v1791_v23 = vadd.f32 %v1759_v49, %v1723_v61  ;;  %v1895_v1 = vmul.f32 %v5117_v39, %v1514_v46  ;;  %v1896_v63 = vmul.f32 %v5117_v39, %v1515_v43  ;;  %v1446_v42 = vld [vmem:[#allocation2 + $0x168] sm:$0xff] }
 0x1a0   : > { %v1792_v40 = vadd.f32 %v1760_v33, %v1724_v55  ;;  %v1627_v29 = vmul.f32 %v6585_v32, %v1480_v44  ;;  %v1628_v50 = vmul.f32 %v6585_v32, %v5528_v5  ;;  %v1963_v7 = vmul.f32 %v5120_v48, %v1444_v22 }
 0x1a1   : > { %v2150_v0 = vpack.c.bf16 %v2130_v51, %v2129_v41  ;;  %v1859_v56 = vadd.f32 %v1827_v45, %v1791_v23  ;;  %v1964_v10 = vmul.f32 %v5120_v48, %v1445_v36  ;;  %v1558_v14 = vmul.f32 %v5081_v62, %v1443_v11 }
 0x1a2   : > { %v1860_v20 = vadd.f32 %v1828_v6, %v1792_v40  ;;  %v2031_v26 = vmul.f32 %v5113_v59, %v1480_v44  ;;  %v2032_v30 = vmul.f32 %v5113_v59, %v5528_v5  ;;  %v2099_v9 = vmul.f32 %v5632_v16, %v1516_v4  ;;  %v1447_v49 = vld [vmem:[#allocation2 + $0x170] sm:$0xff] }
 0x1a3   : > { %4005 = vmatmul.mubr.bf16.gmra.mxu1 %v2150_v0  ;;  %v1657_v25 = vadd.f32 %v1625_v54, %v1557_v15  ;;  %v1927_v19 = vadd.f32 %v1895_v1, %v1859_v56  ;;  %v1658_v47 = vadd.f32 %v1626_v12, %v1558_v14  ;;  %v1693_v43 = vmul.f32 %v5095_v21, %v1514_v46  ;;  %v4107_v15 = vld [vmem:[%s6463_s2 + $0xa8] sm:$0xff]  }
 0x1a4   : > { %v1928_v37 = vadd.f32 %v1896_v63, %v1860_v20  ;;  %v2100_v52 = vmul.f32 %v5632_v16, %v1517_v58  ;;  %v1761_v11 = vmul.f32 %v5104_v34, %v1444_v22  ;;  %v1762_v3 = vmul.f32 %v5104_v34, %v1445_v36  ;;  %4020 = vmatprep.subr.bf16.mxu0 %v4107_v15 }
 0x1a5   : > { %v1829_v35 = vmul.f32 %v6588_v18, %v1480_v44  ;;  %v1995_v54 = vadd.f32 %v1963_v7, %v1927_v19  ;;  %v1725_v17 = vadd.f32 %v1693_v43, %v1657_v25  ;;  %v1726_v12 = vadd.f32 %v1694_v24, %v1658_v47  ;;  %4021 = vmatpush3.bf16.msra.mxu0 %v4107_v15  ;;  %v1518_v7 = vld [vmem:[#allocation2 + $0x16a] sm:$0xff] }
 0x1a6   : > { %v1996_v38 = vadd.f32 %v1964_v10, %v1928_v37  ;;  %v1696_v46 = vmul.f32 %v5095_v21, %v1517_v58  ;;  %v1830_v57 = vmul.f32 %v6588_v18, %v5528_v5  ;;  %v1897_v22 = vmul.f32 %v5117_v39, %v1516_v4  ;;  %v1519_v10 = vld [vmem:[#allocation2 + $0x172] sm:$0xff] }
 0x1a7   : > { %v1898_v2 = vmul.f32 %v5117_v39, %v1517_v58  ;;  %v2063_v60 = vadd.f32 %v2031_v26, %v1995_v54  ;;  %v1793_v33 = vadd.f32 %v1761_v11, %v1725_v17  ;;  %v1794_v44 = vadd.f32 %v1762_v3, %v1726_v12  ;;  %v1449_v11 = vld [vmem:[#allocation2 + $0x188] sm:$0xff] }
 0x1a8   : > { %v2064_v31 = vadd.f32 %v2032_v30, %v1996_v38  ;;  %v1561_v61 = vmul.f32 %v5081_v62, %v1446_v42  ;;  %v1965_v55 = vmul.f32 %v5120_v48, %v1446_v42  ;;  %v1966_v45 = vmul.f32 %v5120_v48, %v1447_v49  ;;  %v1484_v3 = vld [vmem:[#allocation2 + $0x181] sm:$0xff] }
 0x1a9   : > { %v2033_v5 = vmul.f32 %v5113_v59, %v5605_v13  ;;  %v2131_v6 = vadd.f32 %v2099_v9, %v2063_v60  ;;  %v1861_v41 = vadd.f32 %v1829_v35, %v1793_v33  ;;  %v1862_v51 = vadd.f32 %v1830_v57, %v1794_v44  ;;  %v1520_v57 = vld [vmem:[#allocation2 + $0x182] sm:$0xff] }
 0x1aa   : > { %v2132_v24 = vadd.f32 %v2100_v52, %v2064_v31  ;;  %v2034_v23 = vmul.f32 %v5113_v59, %v5619_v27  ;;  %v1560_v40 = vmul.f32 %v5081_v62, %v1445_v36  ;;  %v1659_v1 = vadd.f32 %v1627_v29, %v1559_v28  ;;  %v1448_v36 = vld [vmem:[#allocation2 + $0x180] sm:$0xff] }
 0x1ab   : > { %v1695_v63 = vmul.f32 %v5095_v21, %v1516_v4  ;;  %v1929_v8 = vadd.f32 %v1897_v22, %v1861_v41  ;;  %v1930_v56 = vadd.f32 %v1898_v2, %v1862_v51  ;;  %v1763_v20 = vmul.f32 %v5104_v34, %v1446_v42  ;;  %v1521_v42 = vld [vmem:[#allocation2 + $0x18a] sm:$0xff] }
 0x1ac   : > { %v2151_v0 = vpack.c.bf16 %v2132_v24, %v2131_v6  ;;  %v2101_v14 = vmul.f32 %v5632_v16, %v1518_v7  ;;  %v1660_v26 = vadd.f32 %v1628_v50, %v1560_v40  ;;  %v1764_v9 = vmul.f32 %v5104_v34, %v1447_v49 }
 0x1ad   : > { %v1727_v30 = vadd.f32 %v1695_v63, %v1659_v1  ;;  %v1997_v25 = vadd.f32 %v1965_v55, %v1929_v8  ;;  %v1998_v58 = vadd.f32 %v1966_v45, %v1930_v56  ;;  %v2102_v28 = vmul.f32 %v5632_v16, %v1519_v10 }
 0x1ae   : > { %4008 = vmatprep.mubr.bf16.mxu1 %v2151_v0  ;;  %v1831_v29 = vmul.f32 %v6588_v18, %v5605_v13  ;;  %v1629_v4 = vmul.f32 %v6585_v32, %v5605_v13  ;;  %v1728_v19 = vadd.f32 %v1696_v46, %v1660_v26  ;;  %v1832_v50 = vmul.f32 %v6588_v18, %v5619_v27 }
 0x1af   : > { %v1795_v37 = vadd.f32 %v1763_v20, %v1727_v30  ;;  %v1630_v47 = vmul.f32 %v6585_v32, %v5619_v27  ;;  %v2065_v43 = vadd.f32 %v2033_v5, %v1997_v25  ;;  %v2066_v52 = vadd.f32 %v2034_v23, %v1998_v58  ;;  %v1486_v20 = vld [vmem:[#allocation2 + $0x199] sm:$0xff]  ;;  %v1523_v58 = vld [vmem:[#allocation2 + $0x1a2] sm:$0xff] }
 0x1b0   : > { %v1899_v35 = vmul.f32 %v5117_v39, %v1518_v7  ;;  %v1796_v15 = vadd.f32 %v1764_v9, %v1728_v19  ;;  %v1900_v38 = vmul.f32 %v5117_v39, %v1519_v10  ;;  %v1967_v13 = vmul.f32 %v5120_v48, %v1448_v36  ;;  %v5718_v30 = vld [vmem:[#allocation2] sm:$0xff] }
 0x1b1   : > { %v1863_v54 = vadd.f32 %v1831_v29, %v1795_v37  ;;  %v1698_v17 = vmul.f32 %v5095_v21, %v1519_v10  ;;  %v2133_v12 = vadd.f32 %v2101_v14, %v2065_v43  ;;  %v2134_v46 = vadd.f32 %v2102_v28, %v2066_v52  ;;  %v1522_v25 = vld [vmem:[#allocation2 + $0x19a] sm:$0xff] }
 0x1b2   : > { %v1765_v22 = vmul.f32 %v5104_v34, %v1448_v36  ;;  %v1864_v32 = vadd.f32 %v1832_v50, %v1796_v15  ;;  %v1968_v2 = vmul.f32 %v5120_v48, %v1449_v11  ;;  %v2035_v60 = vmul.f32 %v5113_v59, %v1484_v3  ;;  %v4112_v15 = vld [vmem:[%s6463_s2 + $0x80] sm:$0xff]  }
 0x1b3   : > { %v1931_v27 = vadd.f32 %v1899_v35, %v1863_v54  ;;  %v2152_v31 = vpack.c.bf16 %v2134_v46, %v2133_v12  ;;  %v2036_v33 = vmul.f32 %v5113_v59, %v5612_v53  ;;  %v1562_v44 = vmul.f32 %v5081_v62, %v1447_v49  ;;  %v4111_v35 = vld [vmem:[%s6463_s2 + $0x88] sm:$0xff]   ;;  %v5744_v54 = vld [vmem:[%s6464_s3 + $0x1] ss:$0 sm:$0xff]  ;;  %v6591_v46 = vld [vmem:[#allocation3_spill] sm:$0xff] }
 0x1b4   : > { %v1661_v55 = vadd.f32 %v1629_v4, %v1561_v61  ;;  %v1932_v45 = vadd.f32 %v1900_v38, %v1864_v32  ;;  %v2103_v6 = vmul.f32 %v5632_v16, %v1520_v57  ;;  %v1697_v24 = vmul.f32 %v5095_v21, %v1518_v7 }
 0x1b5   : > { %v1999_v5 = vadd.f32 %v1967_v13, %v1931_v27  ;;  %4009 = vmatmul.mubr.bf16.gmra.mxu1 %v2152_v31  ;;  %v1833_v41 = vmul.f32 %v6588_v18, %v1484_v3  ;;  %v1662_v51 = vadd.f32 %v1630_v47, %v1562_v44  ;;  %v1766_v23 = vmul.f32 %v5104_v34, %v1449_v11  ;;  %v1487_v34 = vld [vmem:[#allocation2 + $0x1a1] sm:$0xff] }
 0x1b6   : > { %v2000_v40 = vadd.f32 %v1968_v2, %v1932_v45  ;;  %v2104_v63 = vmul.f32 %v5632_v16, %v1521_v42  ;;  %v1729_v0 = vadd.f32 %v1697_v24, %v1661_v55  ;;  %v1834_v62 = vmul.f32 %v6588_v18, %v5612_v53  ;;  %v4108_v11 = vld [vmem:[%s6463_s2 + $0xa0] sm:$0xff]  }
 0x1b7   : > { %v2067_v1 = vadd.f32 %v2035_v60, %v1999_v5  ;;  %v1730_v49 = vadd.f32 %v1698_v17, %v1662_v51  ;;  %v1901_v21 = vmul.f32 %v5117_v39, %v1520_v57  ;;  %v1902_v7 = vmul.f32 %v5117_v39, %v1521_v42  ;;  %4022 = vmatprep.subr.bf16.mxu0 %v4108_v11  ;;  %v3657_v17 = vld [vmem:[%s6462_s1 + $0x20] sm:$0xff]  ;;  %v6592_v60 = vld [vmem:[#allocation4_spill] sm:$0xff]  ;;  %v2490_v51 = vld [vmem:[#allocation2 + $0x9] sm:$0xff] }
 0x1b8   : > { %v2068_v61 = vadd.f32 %v2036_v33, %v2000_v40  ;;  %v1797_v56 = vadd.f32 %v1765_v22, %v1729_v0  ;;  %v1969_v9 = vmul.f32 %v5718_v30, %v5120_v48  ;;  %v2037_v36 = vmul.f32 %v5113_v59, %v1486_v20  ;;  %4023 = vmatpush3.bf16.msra.mxu0 %v4108_v11  ;;  %v2489_v27 = vld [vmem:[#allocation2 + $0x1] sm:$0xff] }
 0x1b9   : > { %v2135_v8 = vadd.f32 %v2103_v6, %v2067_v1  ;;  %v1798_v10 = vadd.f32 %v1766_v23, %v1730_v49  ;;  %v2038_v39 = vmul.f32 %v5113_v59, %v1487_v34  ;;  %v2105_v19 = vmul.f32 %v5632_v16, %v1522_v25  ;;  %v4109_v59 = vld [vmem:[%s6463_s2 + $0x98] sm:$0xff]   ;;  %v6593_v5 = vld [vmem:[#allocation5_spill] sm:$0xff]  ;;  %v6594_v49 = vld [vmem:[#allocation6_spill] sm:$0xff] }
 0x1ba   : > { %v2136_v14 = vadd.f32 %v2104_v63, %v2068_v61  ;;  %v1865_v26 = vadd.f32 %v1833_v41, %v1797_v56  ;;  %v2106_v50 = vmul.f32 %v5632_v16, %v1523_v58  ;;  %4024 = vmatprep.subr.bf16.mxu0 %v4109_v59  ;;  %v4110_v16 = vld [vmem:[%s6463_s2 + $0x90] sm:$0xff]   ;;  %v5751_v57 = vrot.slane %v3657_v17, %v6591_v46  ;;  %v2525_v23 = vld [vmem:[#allocation2 + $0x2] sm:$0xff]  ;;  %v6596_v34 = vld [vmem:[#allocation8_spill] sm:$0xff] }
 0x1bb   : > { %v1866_v18 = vadd.f32 %v1834_v62, %v1798_v10  ;;  %v5757_v31 = vrot.slane %v3657_v17, %v6592_v60  ;;  %v5765_v6 = vrot.slane %v3657_v17, %v6593_v5  ;;  %v2526_v62 = vld [vmem:[#allocation2 + $0xa] sm:$0xff]  ;;  %v5774_v61 = vrot.slane %v3657_v17, %v6594_v49 }
 0x1bc   : > { %v2153_v53 = vpack.c.bf16 %v2136_v14, %v2135_v8  ;;  %v1933_v28 = vadd.f32 %v1901_v21, %v1865_v26  ;;  %4025 = vmatpush3.bf16.msra.mxu0 %v4109_v59  ;;  %v2568_v55 = vmul.f32 %v5718_v30, %v5751_v57  ;;  %v6595_v10 = vld [vmem:[#allocation7_spill] sm:$0xff]  ;;  %v5782_v26 = vrot.slane %v3657_v17, %v6596_v34 }
 0x1bd   : > { %v1934_v29 = vadd.f32 %v1902_v7, %v1866_v18  ;;  %4026 = vmatprep.subr.bf16.mxu0 %v4110_v16  ;;  %v2636_v45 = vmul.f32 %v5757_v31, %v2489_v27  ;;  %v2637_v1 = vmul.f32 %v5757_v31, %v2490_v51  ;;  %v2704_v0 = vmul.f32 %v5765_v6, %v2525_v23 }
 0x1be   : > { %4012 = vmatprep.mubr.bf16.mxu1 %v2153_v53  ;;  %v2001_v4 = vadd.f32 %v1969_v9, %v1933_v28  ;;  %v2705_v21 = vmul.f32 %v5765_v6, %v2526_v62  ;;  %v5779_v14 = vrot.slane %v3657_v17, %v6595_v10  ;;  %v6597_v28 = vld [vmem:[#allocation9_spill] sm:$0xff] }
 0x1bf   : > { %v2002_v37 = vadd.f32 %v1969_v9, %v1934_v29  ;;  %v2668_v63 = vadd.f32 %v2636_v45, %v2568_v55  ;;  %v2669_v56 = vadd.f32 %v2637_v1, %v2568_v55 }
 0x1c0   : > { %v2069_v47 = vadd.f32 %v2037_v36, %v2001_v4  ;;  %4027 = vmatpush3.bf16.msra.mxu0 %v4110_v16  ;;  %v5786_v36 = vrot.slane %v3657_v17, %v6597_v28 }
 0x1c1   : > { %v2070_v43 = vadd.f32 %v2038_v39, %v2002_v37  ;;  %4028 = vmatprep.subr.bf16.mxu0 %v4111_v35  ;;  %v2736_v7 = vadd.f32 %v2704_v0, %v2668_v63  ;;  %v2737_v18 = vadd.f32 %v2705_v21, %v2669_v56 }
 0x1c2   : > { %v2137_v48 = vadd.f32 %v2105_v19, %v2069_v47 }
 0x1c3   : > { %v2138_v52 = vadd.f32 %v2106_v50, %v2070_v43  ;;  %v6598_v50 = vld [vmem:[#allocation11_spill] sm:$0xff] }
 0x1c4   : > { %4029 = vmatpush3.bf16.msra.mxu0 %v4111_v35  ;;  %v5791_v47 = vrot.slane %v3657_v17, %v6598_v50 }
 0x1c5   : > { %v2154_v3 = vpack.c.bf16 %v2138_v52, %v2137_v48  ;;  %4030 = vmatprep.subr.bf16.mxu0 %v4112_v15 }
 0x1c7   : > { %4013 = vmatmul.mubr.bf16.gmra.mxu1 %v2154_v3 }
 0x1c8   : > { %4031 = vmatpush3.bf16.msra.mxu0 %v4112_v15 }
 0x1f9   : > { %v3986_v38 = vpop.f32.mrf.mxu1 }
 0x1fa   : > { %v2271_v13 = vadd.f32 %v3986_v38, %v5744_v54 }
 0x1fb   : > { %v2262_v12 = vpop.f32.mrf.mxu1 }
 0x1fc   : > { %v5753_v22 = vmax.f32 %v2271_v13, 0.0  ;;  %v2263_v32 = vadd.f32 %v5744_v54, %v2262_v12 }
 0x1fd   : > { %v3987_v2 = vpop.f32.mrf.mxu1 }
 0x1fe   : > { %2423 = vst [vmem:[#allocation2 + $0x31] sm:$0xff] %v5753_v22  ;;  %v2389_v42 = vmax.f32 %v2263_v32, 0.0  ;;  %v2274_v33 = vadd.f32 %v3987_v2, %v5744_v54  ;;  %v3044_v17 = vmul.f32 %v5791_v47, %v5753_v22  ;;  %v5803_v32 = vld [vmem:[%s6462_s1 + $0x28] ss:$0 sm:$0xff] }
 0x1ff   : > { %v2265_v44 = vpop.f32.mrf.mxu1 }
 0x200   : > { %2421 = vst [vmem:[#allocation2 + $0x19] sm:$0xff] %v2389_v42  ;;  %v5767_v24 = vmax.f32 %v2274_v33, 0.0  ;;  %v2266_v41 = vadd.f32 %v5744_v54, %v2265_v44  ;;  %v2840_v58 = vmul.f32 %v5779_v14, %v2389_v42  ;;  %v2638_v2 = vmul.f32 %v5757_v31, %v2389_v42 }
 0x202   : > { %2424 = vst [vmem:[#allocation2 + $0x39] sm:$0xff] %v5767_v24  ;;  %v2390_v40 = vmax.f32 %v2266_v41, 0.0  ;;  %v3045_v44 = vmul.f32 %v5791_v47, %v5767_v24 }
 0x204   : > { %2422 = vst [vmem:[#allocation2 + $0x21] sm:$0xff] %v2390_v40  ;;  %v2841_v48 = vmul.f32 %v5779_v14, %v2390_v40  ;;  %v2639_v45 = vmul.f32 %v5757_v31, %v2390_v40 }
 0x205   : > { %v2457_v29 = vld [vmem:[#allocation2 + $0x30] sm:$0xff] }
 0x206   : > { %v2976_v11 = vmul.f32 %v5786_v36, %v2457_v29  ;;  %v2774_v56 = vmul.f32 %v5774_v61, %v2457_v29 }
 0x207   : > { %v2455_v8 = vld [vmem:[#allocation2 + $0x18] sm:$0xff] }
 0x208   : > { %v2772_v20 = vmul.f32 %v5774_v61, %v2455_v8  ;;  %v2570_v15 = vmul.f32 %v5751_v57, %v2455_v8 }
 0x209   : > { %v2458_v3 = vld [vmem:[#allocation2 + $0x38] sm:$0xff] }
 0x20a   : > { %v2804_v53 = vadd.f32 %v2772_v20, %v2736_v7  ;;  %v2977_v13 = vmul.f32 %v5786_v36, %v2458_v3  ;;  %v2529_v12 = vld [vmem:[#allocation2 + $0x32] sm:$0xff]  ;;  %v2530_v46 = vld [vmem:[#allocation2 + $0x3a] sm:$0xff]  ;;  %v2670_v5 = vadd.f32 %v2638_v2, %v2570_v15 }
 0x20b   : > { %v2456_v9 = vld [vmem:[#allocation2 + $0x20] sm:$0xff]  ;;  %v3112_v51 = vmul.f32 %v5803_v32, %v2529_v12  ;;  %v3113_v23 = vmul.f32 %v5803_v32, %v2530_v46 }
 0x20c   : > { %v2527_v25 = vld [vmem:[#allocation2 + $0x1a] sm:$0xff]  ;;  %v2773_v39 = vmul.f32 %v5774_v61, %v2456_v9  ;;  %v2872_v4 = vadd.f32 %v2840_v58, %v2804_v53  ;;  %v2528_v37 = vld [vmem:[#allocation2 + $0x22] sm:$0xff]  ;;  %v2571_v27 = vmul.f32 %v5751_v57, %v2456_v9 }
 0x20d   : > { %v2908_v19 = vmul.f32 %v5782_v26, %v2527_v25  ;;  %v2909_v16 = vmul.f32 %v5782_v26, %v2528_v37  ;;  %v2706_v60 = vmul.f32 %v5765_v6, %v2527_v25  ;;  %v2707_v7 = vmul.f32 %v5765_v6, %v2528_v37 }
 0x20e   : > { %v2805_v43 = vadd.f32 %v2773_v39, %v2737_v18  ;;  %v2671_v63 = vadd.f32 %v2639_v45, %v2571_v27  ;;  %v2775_v39 = vmul.f32 %v5774_v61, %v2458_v3 }
 0x20f   : > { %v2940_v52 = vadd.f32 %v2908_v19, %v2872_v4  ;;  %v2738_v42 = vadd.f32 %v2706_v60, %v2670_v5  ;;  %v2842_v4 = vmul.f32 %v5779_v14, %v5753_v22 }
 0x210   : > { %v2873_v59 = vadd.f32 %v2841_v48, %v2805_v43  ;;  %v2739_v25 = vadd.f32 %v2707_v7, %v2671_v63  ;;  %v2572_v43 = vmul.f32 %v5751_v57, %v2457_v29  ;;  %v2843_v48 = vmul.f32 %v5779_v14, %v5767_v24 }
 0x211   : > { %v3008_v35 = vadd.f32 %v2976_v11, %v2940_v52  ;;  %v2806_v18 = vadd.f32 %v2774_v56, %v2738_v42  ;;  %v2910_v52 = vmul.f32 %v5782_v26, %v2529_v12  ;;  %v2573_v11 = vmul.f32 %v5751_v57, %v2458_v3 }
 0x212   : > { %v2941_v38 = vadd.f32 %v2909_v16, %v2873_v59  ;;  %v2807_v37 = vadd.f32 %v2775_v39, %v2739_v25  ;;  %v2640_v59 = vmul.f32 %v5757_v31, %v5753_v22  ;;  %v2708_v16 = vmul.f32 %v5765_v6, %v2529_v12 }
 0x213   : > { %v3076_v55 = vadd.f32 %v3044_v17, %v3008_v35  ;;  %v2874_v50 = vadd.f32 %v2842_v4, %v2806_v18  ;;  %v2641_v29 = vmul.f32 %v5757_v31, %v5767_v24  ;;  %v2911_v17 = vmul.f32 %v5782_v26, %v2530_v46 }
 0x214   : > { %v3009_v33 = vadd.f32 %v2977_v13, %v2941_v38  ;;  %v2875_v35 = vadd.f32 %v2843_v48, %v2807_v37  ;;  %v2672_v13 = vadd.f32 %v2640_v59, %v2572_v43  ;;  %v2709_v12 = vmul.f32 %v5765_v6, %v2530_v46 }
 0x215   : > { %v3144_v62 = vadd.f32 %v3112_v51, %v3076_v55  ;;  %v2942_v15 = vadd.f32 %v2910_v52, %v2874_v50  ;;  %v2673_v60 = vadd.f32 %v2641_v29, %v2573_v11 }
 0x216   : > { %v3077_v41 = vadd.f32 %v3045_v44, %v3009_v33  ;;  %v2740_v3 = vadd.f32 %v2708_v16, %v2672_v13  ;;  %v2943_v33 = vadd.f32 %v2911_v17, %v2875_v35 }
 0x218   : > { %v3145_v49 = vadd.f32 %v3113_v23, %v3077_v41  ;;  %v2741_v23 = vadd.f32 %v2709_v12, %v2673_v60 }
 0x219   : > { %v3990_v1 = vpop.f32.mrf.mxu1 }
 0x21a   : > { %v2287_v0 = vadd.f32 %v3990_v1, %v5744_v54  ;;  %v3176_v20 = vpack.c.bf16 %v3145_v49, %v3144_v62 }
 0x21b   : > { %v2278_v8 = vpop.f32.mrf.mxu1 }
 0x21c   : > { %v5815_v21 = vmax.f32 %v2287_v0, 0.0  ;;  %v2279_v40 = vadd.f32 %v5744_v54, %v2278_v8  ;;  %4032 = vmatprep.mubr.bf16.mxu0 %v3176_v20 }
 0x21d   : > { %v3991_v10 = vpop.f32.mrf.mxu1 }
 0x21e   : > { %2427 = vst [vmem:[#allocation2 + $0x61] sm:$0xff] %v5815_v21  ;;  %v5820_v34 = vmax.f32 %v2279_v40, 0.0  ;;  %v2290_v9 = vadd.f32 %v3991_v10, %v5744_v54  ;;  %v3048_v43 = vmul.f32 %v5791_v47, %v5815_v21 }
 0x21f   : > { %v2281_v53 = vpop.f32.mrf.mxu1 }
 0x220   : > { %2425 = vst [vmem:[#allocation2 + $0x49] sm:$0xff] %v5820_v34  ;;  %v5824_v58 = vmax.f32 %v2290_v9, 0.0  ;;  %v2282_v28 = vadd.f32 %v5744_v54, %v2281_v53  ;;  %v2844_v5 = vmul.f32 %v5779_v14, %v5820_v34  ;;  %v3046_v41 = vmul.f32 %v5791_v47, %v5820_v34 }
 0x221   : > { %v2642_v60 = vmul.f32 %v5757_v31, %v5820_v34 }
 0x222   : > { %2428 = vst [vmem:[#allocation2 + $0x69] sm:$0xff] %v5824_v58  ;;  %v5831_v19 = vmax.f32 %v2282_v28, 0.0  ;;  %v3049_v35 = vmul.f32 %v5791_v47, %v5824_v58 }
 0x224   : > { %2426 = vst [vmem:[#allocation2 + $0x51] sm:$0xff] %v5831_v19  ;;  %v3047_v46 = vmul.f32 %v5791_v47, %v5831_v19  ;;  %v2845_v56 = vmul.f32 %v5779_v14, %v5831_v19  ;;  %v2643_v13 = vmul.f32 %v5757_v31, %v5831_v19 }
 0x225   : > { %v5853_v51 = vld [vmem:[#allocation2 + $0x60] sm:$0xff] }
 0x226   : > { %v2980_v40 = vmul.f32 %v5786_v36, %v5853_v51 }
 0x227   : > { %v2459_v38 = vld [vmem:[#allocation2 + $0x48] sm:$0xff] }
 0x228   : > { %v2978_v27 = vmul.f32 %v5786_v36, %v2459_v38  ;;  %v2776_v2 = vmul.f32 %v5774_v61, %v2459_v38  ;;  %v2574_v29 = vmul.f32 %v5751_v57, %v2459_v38 }
 0x229   : > { %v2462_v9 = vld [vmem:[#allocation2 + $0x68] sm:$0xff] }
 0x22a   : > { %v3010_v44 = vadd.f32 %v2978_v27, %v2942_v15  ;;  %v2808_v45 = vadd.f32 %v2776_v2, %v2740_v3  ;;  %v2981_v50 = vmul.f32 %v5786_v36, %v2462_v9  ;;  %v2533_v52 = vld [vmem:[#allocation2 + $0x62] sm:$0xff]  ;;  %v2534_v11 = vld [vmem:[#allocation2 + $0x6a] sm:$0xff]  ;;  %v2674_v12 = vadd.f32 %v2642_v60, %v2574_v29 }
 0x22b   : > { %v2460_v22 = vld [vmem:[#allocation2 + $0x50] sm:$0xff]  ;;  %v3116_v27 = vmul.f32 %v5803_v32, %v2533_v52  ;;  %v3117_v2 = vmul.f32 %v5803_v32, %v2534_v11  ;;  %v2779_v34 = vmul.f32 %v5774_v61, %v2462_v9  ;;  %v5910_v29 = vmul.f32 %v5718_v30, %v5786_v36 }
 0x22c   : > { %v2531_v55 = vld [vmem:[#allocation2 + $0x4a] sm:$0xff]  ;;  %v2979_v24 = vmul.f32 %v5786_v36, %v2460_v22  ;;  %v2532_v1 = vld [vmem:[#allocation2 + $0x52] sm:$0xff]  ;;  %v2777_v63 = vmul.f32 %v5774_v61, %v2460_v22  ;;  %v2876_v0 = vadd.f32 %v2844_v5, %v2808_v45  ;;  %v3078_v62 = vadd.f32 %v3046_v41, %v3010_v44 }
 0x22d   : > { %v2912_v49 = vmul.f32 %v5782_v26, %v2531_v55  ;;  %v3114_v20 = vmul.f32 %v5803_v32, %v2531_v55  ;;  %v3115_v10 = vmul.f32 %v5803_v32, %v2532_v1  ;;  %v2913_v53 = vmul.f32 %v5782_v26, %v2532_v1 }
 0x22e   : > { %v3011_v42 = vadd.f32 %v2979_v24, %v2943_v33  ;;  %v2809_v8 = vadd.f32 %v2777_v63, %v2741_v23  ;;  %v2575_v59 = vmul.f32 %v5751_v57, %v2460_v22  ;;  %v2710_v33 = vmul.f32 %v5765_v6, %v2531_v55 }
 0x22f   : > { %v2944_v25 = vadd.f32 %v2912_v49, %v2876_v0  ;;  %v3146_v28 = vadd.f32 %v3114_v20, %v3078_v62  ;;  %v2711_v45 = vmul.f32 %v5765_v6, %v2532_v1  ;;  %v2778_v63 = vmul.f32 %v5774_v61, %v5853_v51 }
 0x230   : > { %v3079_v7 = vadd.f32 %v3047_v46, %v3011_v42  ;;  %v2877_v18 = vadd.f32 %v2845_v56, %v2809_v8  ;;  %v2675_v3 = vadd.f32 %v2643_v13, %v2575_v59  ;;  %v2742_v24 = vadd.f32 %v2710_v33, %v2674_v12 }
 0x231   : > { %v3012_v4 = vadd.f32 %v2980_v40, %v2944_v25  ;;  %v2577_v42 = vmul.f32 %v5751_v57, %v2462_v9  ;;  %v2576_v56 = vmul.f32 %v5751_v57, %v5853_v51  ;;  %v2645_v40 = vmul.f32 %v5757_v31, %v5824_v58 }
 0x232   : > { %v3147_v39 = vadd.f32 %v3115_v10, %v3079_v7  ;;  %v2945_v37 = vadd.f32 %v2913_v53, %v2877_v18  ;;  %v2743_v19 = vadd.f32 %v2711_v45, %v2675_v3  ;;  %v2810_v1 = vadd.f32 %v2778_v63, %v2742_v24 }
 0x233   : > { %v3080_v15 = vadd.f32 %v3048_v43, %v3012_v4  ;;  %v2644_v20 = vmul.f32 %v5757_v31, %v5815_v21  ;;  %v2846_v10 = vmul.f32 %v5779_v14, %v5815_v21  ;;  %v2847_v9 = vmul.f32 %v5779_v14, %v5824_v58 }
 0x234   : > { %v3177_v48 = vpack.c.bf16 %v3147_v39, %v3146_v28  ;;  %v3013_v16 = vadd.f32 %v2981_v50, %v2945_v37  ;;  %v2811_v62 = vadd.f32 %v2779_v34, %v2743_v19  ;;  %v2677_v53 = vadd.f32 %v2645_v40, %v2577_v42 }
 0x235   : > { %v3148_v44 = vadd.f32 %v3116_v27, %v3080_v15  ;;  %v2712_v51 = vmul.f32 %v5765_v6, %v2533_v52  ;;  %v2878_v28 = vadd.f32 %v2846_v10, %v2810_v1  ;;  %v2676_v37 = vadd.f32 %v2644_v20, %v2576_v56 }
 0x236   : > { %4033 = vmatmul.mubr.bf16.vlgmr.msra.gmra.mxu0 %v3177_v48  ;;  %v3081_v17 = vadd.f32 %v3049_v35, %v3013_v16  ;;  %v2879_v39 = vadd.f32 %v2847_v9, %v2811_v62  ;;  %v2713_v50 = vmul.f32 %v5765_v6, %v2534_v11  ;;  %v2914_v43 = vmul.f32 %v5782_v26, %v2533_v52 }
 0x237   : > { %v2915_v21 = vmul.f32 %v5782_v26, %v2534_v11  ;;  %v5903_v58 = vadd.f32 %v2712_v51, %v2676_v37 }
 0x238   : > { %v3149_v22 = vadd.f32 %v3117_v2, %v3081_v17  ;;  %v5905_v48 = vadd.f32 %v2713_v50, %v2677_v53  ;;  %v2946_v59 = vadd.f32 %v2914_v43, %v2878_v28 }
 0x239   : > { %v2947_v16 = vadd.f32 %v2915_v21, %v2879_v39 }
 0x23a   : > { %v3178_v38 = vpack.c.bf16 %v3149_v22, %v3148_v44 }
 0x23c   : > { %4036 = vmatprep.mubr.bf16.mxu0 %v3178_v38 }
 0x23d   : > { %v3994_v5 = vpop.f32.mrf.mxu1 }
 0x23e   : > { %v2303_v41 = vadd.f32 %v3994_v5, %v5744_v54 }
 0x23f   : > { %v2294_v23 = vpop.f32.mrf.mxu1 }
 0x240   : > { %v2399_v0 = vmax.f32 %v2303_v41, 0.0  ;;  %v2295_v55 = vadd.f32 %v5744_v54, %v2294_v23 }
 0x241   : > { %v3995_v46 = vpop.f32.mrf.mxu1 }
 0x242   : > { %2431 = vst [vmem:[#allocation2 + $0x91] sm:$0xff] %v2399_v0  ;;  %v2397_v49 = vmax.f32 %v2295_v55, 0.0  ;;  %v2306_v8 = vadd.f32 %v3995_v46, %v5744_v54  ;;  %v2648_v15 = vmul.f32 %v5757_v31, %v2399_v0  ;;  %v5917_v11 = vmul.f32 %v5779_v14, %v2399_v0 }
 0x243   : > { %v2297_v7 = vpop.f32.mrf.mxu1  ;;  %v5920_v27 = vmul.f32 %v5791_v47, %v2399_v0 }
 0x244   : > { %2429 = vst [vmem:[#allocation2 + $0x79] sm:$0xff] %v2397_v49  ;;  %v2400_v25 = vmax.f32 %v2306_v8, 0.0  ;;  %v2298_v18 = vadd.f32 %v5744_v54, %v2297_v7  ;;  %v2646_v17 = vmul.f32 %v5757_v31, %v2397_v49  ;;  %v5914_v52 = vmul.f32 %v5779_v14, %v2397_v49 }
 0x245   : > { %v3050_v3 = vmul.f32 %v5791_v47, %v2397_v49 }
 0x246   : > { %2432 = vst [vmem:[#allocation2 + $0x99] sm:$0xff] %v2400_v25  ;;  %v2398_v4 = vmax.f32 %v2298_v18, 0.0  ;;  %v2649_v33 = vmul.f32 %v5757_v31, %v2400_v25  ;;  %v5929_v45 = vmul.f32 %v5779_v14, %v2400_v25  ;;  %v5932_v38 = vmul.f32 %v5791_v47, %v2400_v25 }
 0x248   : > { %2430 = vst [vmem:[#allocation2 + $0x81] sm:$0xff] %v2398_v4  ;;  %v2647_v12 = vmul.f32 %v5757_v31, %v2398_v4  ;;  %v2849_v19 = vmul.f32 %v5779_v14, %v2398_v4  ;;  %v3051_v41 = vmul.f32 %v5791_v47, %v2398_v4 }
 0x249   : > { %v2465_v35 = vld [vmem:[#allocation2 + $0x90] sm:$0xff]  ;;  %v3998_v13 = vpop.f32.mrf.mxu1 }
 0x24a   : > { %v2319_v2 = vadd.f32 %v3998_v13, %v5744_v54  ;;  %v2580_v30 = vmul.f32 %v5751_v57, %v2465_v35  ;;  %v5948_v46 = vmul.f32 %v5774_v61, %v2465_v35  ;;  %v5951_v1 = vmul.f32 %v5786_v36, %v2465_v35 }
 0x24b   : > { %v2463_v60 = vld [vmem:[#allocation2 + $0x78] sm:$0xff]  ;;  %v2310_v44 = vpop.f32.mrf.mxu1 }
 0x24c   : > { %v2578_v22 = vmul.f32 %v5751_v57, %v2463_v60  ;;  %v5934_v5 = vmax.f32 %v2319_v2, 0.0  ;;  %v2311_v24 = vadd.f32 %v5744_v54, %v2310_v44  ;;  %v2780_v34 = vmul.f32 %v5774_v61, %v2463_v60 }
 0x24d   : > { %v5939_v23 = vld [vmem:[#allocation2 + $0x98] sm:$0xff]  ;;  %v3999_v63 = vpop.f32.mrf.mxu1  ;;  %v2982_v0 = vmul.f32 %v5786_v36, %v2463_v60  ;;  %v2680_v20 = vadd.f32 %v2648_v15, %v2580_v30 }
 0x24e   : > { %v5943_v55 = vld [vmem:[#allocation2 + $0x92] sm:$0xff]  ;;  %v5945_v42 = vld [vmem:[#allocation2 + $0x9a] sm:$0xff]  ;;  %2435 = vst [vmem:[#allocation2 + $0xc1] sm:$0xff] %v5934_v5  ;;  %v5954_v62 = vmax.f32 %v2311_v24, 0.0  ;;  %v2322_v49 = vadd.f32 %v3999_v63, %v5744_v54  ;;  %v2678_v7 = vadd.f32 %v2646_v17, %v2578_v22  ;;  %v2581_v53 = vmul.f32 %v5751_v57, %v5939_v23 }
 0x24f   : > { %v2464_v8 = vld [vmem:[#allocation2 + $0x80] sm:$0xff]  ;;  %v2313_v10 = vpop.f32.mrf.mxu1  ;;  %v3014_v18 = vadd.f32 %v2982_v0, %v2946_v59  ;;  %v2716_v39 = vmul.f32 %v5765_v6, %v5943_v55  ;;  %v2717_v4 = vmul.f32 %v5765_v6, %v5945_v42  ;;  %v2783_v59 = vmul.f32 %v5774_v61, %v5939_v23 }
 0x250   : > { %v2535_v56 = vld [vmem:[#allocation2 + $0x7a] sm:$0xff]  ;;  %v2536_v40 = vld [vmem:[#allocation2 + $0x82] sm:$0xff]  ;;  %v2579_v9 = vmul.f32 %v5751_v57, %v2464_v8  ;;  %2433 = vst [vmem:[#allocation2 + $0xa9] sm:$0xff] %v5954_v62  ;;  %v5962_v51 = vmax.f32 %v2322_v49, 0.0  ;;  %v2314_v28 = vadd.f32 %v5744_v54, %v2313_v10  ;;  %v2781_v43 = vmul.f32 %v5774_v61, %v2464_v8 }
 0x251   : > { %v2714_v25 = vmul.f32 %v5765_v6, %v2535_v56  ;;  %v4002_v37 = vpop.f32.mrf.mxu1  ;;  %v2715_v50 = vmul.f32 %v5765_v6, %v2536_v40  ;;  %v2983_v21 = vmul.f32 %v5786_v36, %v2464_v8  ;;  %v2916_v17 = vmul.f32 %v5782_v26, %v2535_v56 }
 0x252   : > { %2436 = vst [vmem:[#allocation2 + $0xc9] sm:$0xff] %v5962_v51  ;;  %v5975_v35 = vmax.f32 %v2314_v28, 0.0  ;;  %v2335_v15 = vadd.f32 %v4002_v37, %v5744_v54  ;;  %v2679_v13 = vadd.f32 %v2647_v12, %v2579_v9  ;;  %v2917_v30 = vmul.f32 %v5782_v26, %v2536_v40 }
 0x253   : > { %v2326_v2 = vpop.f32.mrf.mxu1  ;;  %v2746_v60 = vadd.f32 %v2714_v25, %v2678_v7  ;;  %v3015_v44 = vadd.f32 %v2983_v21, %v2947_v16  ;;  %v3082_v22 = vadd.f32 %v3050_v3, %v3014_v18  ;;  %v2681_v0 = vadd.f32 %v2649_v33, %v2581_v53 }
 0x254   : > { %2434 = vst [vmem:[#allocation2 + $0xb1] sm:$0xff] %v5975_v35  ;;  %v5981_v24 = vmax.f32 %v2335_v15, 0.0  ;;  %v2327_v63 = vadd.f32 %v5744_v54, %v2326_v2  ;;  %v2812_v49 = vadd.f32 %v2780_v34, %v5903_v58  ;;  %v3118_v12 = vmul.f32 %v5803_v32, %v2535_v56 }
 0x255   : > { %v4003_v8 = vpop.f32.mrf.mxu1  ;;  %v3083_v10 = vadd.f32 %v3051_v41, %v3015_v44  ;;  %v3119_v9 = vmul.f32 %v5803_v32, %v2536_v40  ;;  %v2813_v7 = vadd.f32 %v2781_v43, %v5905_v48  ;;  %v2747_v25 = vadd.f32 %v2715_v50, %v2679_v13 }
 0x256   : > { %2439 = vst [vmem:[#allocation2 + $0xf1] sm:$0xff] %v5981_v24  ;;  %v5989_v16 = vmax.f32 %v2327_v63, 0.0  ;;  %v2338_v3 = vadd.f32 %v4003_v8, %v5744_v54  ;;  %v2880_v18 = vadd.f32 %v5914_v52, %v2812_v49  ;;  %v3150_v53 = vadd.f32 %v3118_v12, %v3082_v22 }
 0x257   : > { %v2329_v33 = vpop.f32.mrf.mxu1  ;;  %v3151_v58 = vadd.f32 %v3119_v9, %v3083_v10  ;;  %v5993_v34 = vadd.f32 %v2716_v39, %v2680_v20  ;;  %v2881_v41 = vadd.f32 %v2849_v19, %v2813_v7  ;;  %v2467_v56 = vld [vmem:[#allocation2 + $0xa8] sm:$0xff]  ;;  %v5999_v28 = vadd.f32 %v2717_v4, %v2681_v0 }
 0x258   : > { %2437 = vst [vmem:[#allocation2 + $0xd9] sm:$0xff] %v5989_v16  ;;  %v5996_v40 = vmax.f32 %v2338_v3, 0.0  ;;  %v2330_v48 = vadd.f32 %v5744_v54, %v2329_v33  ;;  %v2948_v37 = vadd.f32 %v2916_v17, %v2880_v18  ;;  %v2918_v52 = vmul.f32 %v5782_v26, %v5943_v55 }
 0x259   : > { %v3179_v43 = vpack.c.bf16 %v3151_v58, %v3150_v53  ;;  %v2949_v50 = vadd.f32 %v2917_v30, %v2881_v41  ;;  %v2985_v20 = vmul.f32 %v5786_v36, %v5939_v23  ;;  %v2919_v39 = vmul.f32 %v5782_v26, %v5945_v42  ;;  %v2470_v33 = vld [vmem:[#allocation2 + $0xc8] sm:$0xff] }
 0x25a   : > { %2440 = vst [vmem:[#allocation2 + $0xf9] sm:$0xff] %v5996_v40  ;;  %v6006_v19 = vmax.f32 %v2330_v48, 0.0  ;;  %v3016_v21 = vadd.f32 %v5951_v1, %v2948_v37  ;;  %v2582_v4 = vmul.f32 %v5751_v57, %v2467_v56  ;;  %v3120_v13 = vmul.f32 %v5803_v32, %v5943_v55  ;;  %v2469_v48 = vld [vmem:[#allocation2 + $0xc0] sm:$0xff] }
 0x25b   : > { %4037 = vmatmul.mubr.bf16.gmra.mxu0 %v3179_v43  ;;  %v3017_v15 = vadd.f32 %v2985_v20, %v2949_v50  ;;  %v2468_v17 = vld [vmem:[#allocation2 + $0xb0] sm:$0xff]  ;;  %v2814_v23 = vadd.f32 %v5948_v46, %v2746_v60  ;;  %v2815_v44 = vadd.f32 %v2783_v59, %v2747_v25  ;;  %v3121_v1 = vmul.f32 %v5803_v32, %v5945_v42 }
 0x25c   : > { %v2539_v2 = vld [vmem:[#allocation2 + $0xaa] sm:$0xff]  ;;  %v2540_v30 = vld [vmem:[#allocation2 + $0xb2] sm:$0xff]  ;;  %2438 = vst [vmem:[#allocation2 + $0xe1] sm:$0xff] %v6006_v19  ;;  %v3084_v22 = vadd.f32 %v5920_v27, %v3016_v21  ;;  %v2583_v63 = vmul.f32 %v5751_v57, %v2468_v17  ;;  %v2650_v0 = vmul.f32 %v5757_v31, %v5954_v62  ;;  %v2651_v49 = vmul.f32 %v5757_v31, %v5975_v35 }
 0x25d   : > { %v3085_v55 = vadd.f32 %v5932_v38, %v3017_v15  ;;  %v2718_v46 = vmul.f32 %v5765_v6, %v2539_v2  ;;  %v2784_v59 = vmul.f32 %v5774_v61, %v2467_v56  ;;  %v2719_v27 = vmul.f32 %v5765_v6, %v2540_v30 }
 0x25e   : > { %v2682_v60 = vadd.f32 %v2650_v0, %v2582_v4  ;;  %v2785_v8 = vmul.f32 %v5774_v61, %v2468_v17  ;;  %v2882_v42 = vadd.f32 %v5917_v11, %v2814_v23  ;;  %v3152_v10 = vadd.f32 %v3120_v13, %v3084_v22 }
 0x25f   : > { %v3153_v12 = vadd.f32 %v3121_v1, %v3085_v55  ;;  %v2852_v9 = vmul.f32 %v5779_v14, %v5954_v62  ;;  %v2883_v38 = vadd.f32 %v5929_v45, %v2815_v44  ;;  %v2683_v7 = vadd.f32 %v2651_v49, %v2583_v63  ;;  %v2542_v63 = vld [vmem:[#allocation2 + $0xca] sm:$0xff] }
 0x260   : > { %v2853_v3 = vmul.f32 %v5779_v14, %v5975_v35  ;;  %v2950_v25 = vadd.f32 %v2918_v52, %v2882_v42  ;;  %v2986_v18 = vmul.f32 %v5786_v36, %v2467_v56  ;;  %v6036_v58 = vadd.f32 %v2718_v46, %v2682_v60 }
 0x261   : > { %v3180_v53 = vpack.c.bf16 %v3153_v12, %v3152_v10  ;;  %v2951_v41 = vadd.f32 %v2919_v39, %v2883_v38  ;;  %v2987_v11 = vmul.f32 %v5786_v36, %v2468_v17  ;;  %v2920_v43 = vmul.f32 %v5782_v26, %v2539_v2  ;;  %v2541_v39 = vld [vmem:[#allocation2 + $0xc2] sm:$0xff] }
 0x262   : > { %v2921_v45 = vmul.f32 %v5782_v26, %v2540_v30  ;;  %v3018_v50 = vadd.f32 %v2986_v18, %v2950_v25  ;;  %v3054_v20 = vmul.f32 %v5791_v47, %v5954_v62  ;;  %v3055_v21 = vmul.f32 %v5791_v47, %v5975_v35 }
 0x263   : > { %v4006_v37 = vpop.f32.mrf.mxu1  ;;  %4040 = vmatprep.mubr.bf16.mxu0 %v3180_v53  ;;  %v3019_v56 = vadd.f32 %v2987_v11, %v2951_v41  ;;  %v2585_v4 = vmul.f32 %v5751_v57, %v2470_v33  ;;  %v3122_v17 = vmul.f32 %v5803_v32, %v2539_v2  ;;  %v3123_v23 = vmul.f32 %v5803_v32, %v2540_v30 }
 0x264   : > { %v2351_v52 = vadd.f32 %v4006_v37, %v5744_v54  ;;  %v3086_v13 = vadd.f32 %v3054_v20, %v3018_v50  ;;  %v2584_v44 = vmul.f32 %v5751_v57, %v2469_v48  ;;  %v2653_v35 = vmul.f32 %v5757_v31, %v5962_v51 }
 0x265   : > { %v2342_v15 = vpop.f32.mrf.mxu1  ;;  %v3087_v1 = vadd.f32 %v3055_v21, %v3019_v56  ;;  %v2751_v55 = vadd.f32 %v2719_v27, %v2683_v7  ;;  %v2652_v46 = vmul.f32 %v5757_v31, %v5934_v5  ;;  %v2720_v2 = vmul.f32 %v5765_v6, %v2541_v39  ;;  %v2471_v56 = vld [vmem:[#allocation2 + $0xd8] sm:$0xff]  ;;  %v2472_v21 = vld [vmem:[#allocation2 + $0xe0] sm:$0xff] }
 0x266   : > { %v6050_v22 = vmax.f32 %v2351_v52, 0.0  ;;  %v2343_v62 = vadd.f32 %v5744_v54, %v2342_v15  ;;  %v3154_v49 = vadd.f32 %v3122_v17, %v3086_v13  ;;  %v2685_v10 = vadd.f32 %v2653_v35, %v2585_v4  ;;  %v2543_v13 = vld [vmem:[#allocation2 + $0xda] sm:$0xff] }
 0x267   : > { %v4007_v0 = vpop.f32.mrf.mxu1  ;;  %v3155_v42 = vadd.f32 %v3123_v23, %v3087_v1  ;;  %v2684_v38 = vadd.f32 %v2652_v46, %v2584_v44  ;;  %v2721_v25 = vmul.f32 %v5765_v6, %v2542_v63  ;;  %v2816_v27 = vadd.f32 %v2784_v59, %v5993_v34 }
 0x268   : > { %2443 = vst [vmem:[#allocation2 + $0x121] sm:$0xff] %v6050_v22  ;;  %v6059_v30 = vmax.f32 %v2343_v62, 0.0  ;;  %v2354_v60 = vadd.f32 %v4007_v0, %v5744_v54  ;;  %v2817_v7 = vadd.f32 %v2785_v8, %v5999_v28  ;;  %v2786_v11 = vmul.f32 %v5774_v61, %v2469_v48 }
 0x269   : > { %v2345_v12 = vpop.f32.mrf.mxu1  ;;  %v3181_v41 = vpack.c.bf16 %v3155_v42, %v3154_v49  ;;  %v6070_v37 = vadd.f32 %v2720_v2, %v2684_v38  ;;  %v2787_v50 = vmul.f32 %v5774_v61, %v2470_v33  ;;  %v2884_v20 = vadd.f32 %v2852_v9, %v2816_v27 }
 0x26a   : > { %2441 = vst [vmem:[#allocation2 + $0x109] sm:$0xff] %v6059_v30  ;;  %v6066_v18 = vmax.f32 %v2354_v60, 0.0  ;;  %v2346_v53 = vadd.f32 %v5744_v54, %v2345_v12  ;;  %v2885_v52 = vadd.f32 %v2853_v3, %v2817_v7  ;;  %v6076_v28 = vadd.f32 %v2721_v25, %v2685_v10 }
 0x26b   : > { %4041 = vmatmul.mubr.bf16.gmra.mxu0 %v3181_v41  ;;  %v2854_v59 = vmul.f32 %v5779_v14, %v5934_v5  ;;  %v2855_v8 = vmul.f32 %v5779_v14, %v5962_v51  ;;  %v2952_v4 = vadd.f32 %v2920_v43, %v2884_v20  ;;  %v2988_v9 = vmul.f32 %v5786_v36, %v2469_v48 }
 0x26c   : > { %2444 = vst [vmem:[#allocation2 + $0x129] sm:$0xff] %v6066_v18  ;;  %v6074_v34 = vmax.f32 %v2346_v53, 0.0  ;;  %v2953_v15 = vadd.f32 %v2921_v45, %v2885_v52  ;;  %v2989_v3 = vmul.f32 %v5786_v36, %v2470_v33  ;;  %v2922_v17 = vmul.f32 %v5782_v26, %v2541_v39  ;;  %v2544_v33 = vld [vmem:[#allocation2 + $0xe2] sm:$0xff]  ;;  %v6108_v52 = vld [vmem:[#allocation2 + $0xf8] sm:$0xff] }
 0x26d   : > { %v2923_v23 = vmul.f32 %v5782_v26, %v2542_v63  ;;  %v2586_v44 = vmul.f32 %v5751_v57, %v2471_v56  ;;  %v2587_v62 = vmul.f32 %v5751_v57, %v2472_v21  ;;  %v3020_v1 = vadd.f32 %v2988_v9, %v2952_v4  ;;  %v2473_v4 = vld [vmem:[#allocation2 + $0xf0] sm:$0xff] }
 0x26e   : > { %2442 = vst [vmem:[#allocation2 + $0x111] sm:$0xff] %v6074_v34  ;;  %v3021_v35 = vadd.f32 %v2989_v3, %v2953_v15  ;;  %v3056_v43 = vmul.f32 %v5791_v47, %v5934_v5  ;;  %v3057_v48 = vmul.f32 %v5791_v47, %v5962_v51  ;;  %v3124_v45 = vmul.f32 %v5803_v32, %v2541_v39 }
 0x26f   : > { %v2654_v0 = vmul.f32 %v5757_v31, %v5989_v16  ;;  %v2655_v49 = vmul.f32 %v5757_v31, %v6006_v19  ;;  %v2722_v46 = vmul.f32 %v5765_v6, %v2543_v13  ;;  %v3125_v42 = vmul.f32 %v5803_v32, %v2542_v63 }
 0x270   : > { %v3088_v2 = vadd.f32 %v3056_v43, %v3020_v1  ;;  %v3089_v60 = vadd.f32 %v3057_v48, %v3021_v35  ;;  %v2818_v5 = vadd.f32 %v2786_v11, %v6036_v58  ;;  %v2723_v51 = vmul.f32 %v5765_v6, %v2544_v33 }
 0x271   : > { %v2686_v10 = vadd.f32 %v2654_v0, %v2586_v44  ;;  %v2687_v12 = vadd.f32 %v2655_v49, %v2587_v62  ;;  %v2819_v38 = vadd.f32 %v2787_v50, %v2751_v55  ;;  %v2788_v27 = vmul.f32 %v5774_v61, %v2471_v56 }
 0x272   : > { %v3156_v39 = vadd.f32 %v3124_v45, %v3088_v2  ;;  %v3157_v25 = vadd.f32 %v3125_v42, %v3089_v60  ;;  %v2886_v7 = vadd.f32 %v2854_v59, %v2818_v5  ;;  %v2789_v41 = vmul.f32 %v5774_v61, %v2472_v21 }
 0x273   : > { %v6103_v53 = vadd.f32 %v2722_v46, %v2686_v10  ;;  %v2856_v20 = vmul.f32 %v5779_v14, %v5989_v16  ;;  %v2887_v63 = vadd.f32 %v2855_v8, %v2819_v38  ;;  %v2857_v11 = vmul.f32 %v5779_v14, %v6006_v19  ;;  %v2546_v46 = vld [vmem:[#allocation2 + $0xfa] sm:$0xff] }
 0x274   : > { %v3182_v58 = vpack.c.bf16 %v3157_v25, %v3156_v39  ;;  %v2954_v55 = vadd.f32 %v2922_v17, %v2886_v7  ;;  %v2990_v50 = vmul.f32 %v5786_v36, %v2471_v56  ;;  %v6113_v59 = vadd.f32 %v2723_v51, %v2687_v12 }
 0x275   : > { %v4010_v15 = vpop.f32.mrf.mxu1  ;;  %v2924_v9 = vmul.f32 %v5782_v26, %v2543_v13  ;;  %v2955_v3 = vadd.f32 %v2923_v23, %v2887_v63  ;;  %v2991_v44 = vmul.f32 %v5786_v36, %v2472_v21  ;;  %v3058_v1 = vmul.f32 %v5791_v47, %v5989_v16  ;;  %v2545_v23 = vld [vmem:[#allocation2 + $0xf2] sm:$0xff] }
 0x276   : > { %v2367_v8 = vadd.f32 %v4010_v15, %v5744_v54  ;;  %4044 = vmatprep.mubr.bf16.mxu0 %v3182_v58  ;;  %v3022_v62 = vadd.f32 %v2990_v50, %v2954_v55  ;;  %v2589_v17 = vmul.f32 %v5751_v57, %v6108_v52  ;;  %v2925_v35 = vmul.f32 %v5782_v26, %v2544_v33 }
 0x277   : > { %v2358_v56 = vpop.f32.mrf.mxu1  ;;  %v3023_v43 = vadd.f32 %v2991_v44, %v2955_v3  ;;  %v3059_v48 = vmul.f32 %v5791_v47, %v6006_v19  ;;  %v2588_v21 = vmul.f32 %v5751_v57, %v2473_v4  ;;  %v2657_v16 = vmul.f32 %v5757_v31, %v5996_v40 }
 0x278   : > { %v6126_v45 = vmax.f32 %v2367_v8, 0.0  ;;  %v2359_v0 = vadd.f32 %v5744_v54, %v2358_v56  ;;  %v3090_v49 = vadd.f32 %v3058_v1, %v3022_v62  ;;  %v3126_v42 = vmul.f32 %v5803_v32, %v2543_v13 }
 0x279   : > { %v4011_v2 = vpop.f32.mrf.mxu1  ;;  %v3091_v60 = vadd.f32 %v3059_v48, %v3023_v43  ;;  %v3127_v5 = vmul.f32 %v5803_v32, %v2544_v33  ;;  %v2656_v19 = vmul.f32 %v5757_v31, %v5981_v24  ;;  %v2689_v51 = vadd.f32 %v2657_v16, %v2589_v17  ;;  %v2476_v17 = vld [vmem:[#allocation2 + $0x110] sm:$0xff] }
 0x27a   : > { %2447 = vst [vmem:[#allocation2 + $0x151] sm:$0xff] %v6126_v45  ;;  %v6136_v10 = vmax.f32 %v2359_v0, 0.0  ;;  %v2370_v12 = vadd.f32 %v4011_v2, %v5744_v54  ;;  %v2724_v38 = vmul.f32 %v5765_v6, %v2545_v23  ;;  %v3158_v25 = vadd.f32 %v3126_v42, %v3090_v49  ;;  %v6167_v0 = vld [vmem:[#allocation2 + $0x10a] sm:$0xff]  ;;  %v6171_v2 = vld [vmem:[#allocation2 + $0x112] sm:$0xff] }
 0x27b   : > { %v2361_v39 = vpop.f32.mrf.mxu1  ;;  %v3159_v7 = vadd.f32 %v3127_v5, %v3091_v60  ;;  %v2725_v63 = vmul.f32 %v5765_v6, %v2546_v46  ;;  %v2820_v13 = vadd.f32 %v2788_v27, %v6070_v37  ;;  %v2688_v55 = vadd.f32 %v2656_v19, %v2588_v21 }
 0x27c   : > { %2445 = vst [vmem:[#allocation2 + $0x139] sm:$0xff] %v6136_v10  ;;  %v6143_v33 = vmax.f32 %v2370_v12, 0.0  ;;  %v2362_v58 = vadd.f32 %v5744_v54, %v2361_v39  ;;  %v2821_v50 = vadd.f32 %v2789_v41, %v6076_v28  ;;  %v2790_v3 = vmul.f32 %v5774_v61, %v2473_v4  ;;  %v2475_v54 = vld [vmem:[#allocation2 + $0x108] sm:$0xff] }
 0x27d   : > { %v3183_v15 = vpack.c.bf16 %v3159_v7, %v3158_v25  ;;  %v2791_v44 = vmul.f32 %v5774_v61, %v6108_v52  ;;  %v2888_v8 = vadd.f32 %v2856_v20, %v2820_v13  ;;  %v6153_v37 = vadd.f32 %v2724_v38, %v2688_v55 }
 0x27e   : > { %2448 = vst [vmem:[#allocation2 + $0x159] sm:$0xff] %v6143_v33  ;;  %v6151_v62 = vmax.f32 %v2362_v58, 0.0  ;;  %v6155_v27 = vadd.f32 %v2725_v63, %v2689_v51  ;;  %v2889_v1 = vadd.f32 %v2857_v11, %v2821_v50  ;;  %v2858_v28 = vmul.f32 %v5779_v14, %v5981_v24 }
 0x27f   : > { %4045 = vmatmul.mubr.bf16.gmra.mxu0 %v3183_v15  ;;  %v2859_v41 = vmul.f32 %v5779_v14, %v5996_v40  ;;  %v2956_v56 = vadd.f32 %v2924_v9, %v2888_v8  ;;  %v2992_v20 = vmul.f32 %v5786_v36, %v2473_v4  ;;  %v2926_v43 = vmul.f32 %v5782_v26, %v2545_v23 }
 0x280   : > { %2446 = vst [vmem:[#allocation2 + $0x141] sm:$0xff] %v6151_v62  ;;  %v2927_v48 = vmul.f32 %v5782_v26, %v2546_v46  ;;  %v2957_v21 = vadd.f32 %v2925_v35, %v2889_v1  ;;  %v2993_v11 = vmul.f32 %v5786_v36, %v6108_v52  ;;  %v3060_v16 = vmul.f32 %v5791_v47, %v5981_v24 }
 0x281   : > { %v3024_v49 = vadd.f32 %v2992_v20, %v2956_v56  ;;  %v2590_v4 = vmul.f32 %v5751_v57, %v2475_v54  ;;  %v2591_v9 = vmul.f32 %v5751_v57, %v2476_v17  ;;  %v3061_v42 = vmul.f32 %v5791_v47, %v5996_v40 }
 0x282   : > { %v3025_v60 = vadd.f32 %v2993_v11, %v2957_v21  ;;  %v3128_v35 = vmul.f32 %v5803_v32, %v2545_v23  ;;  %v3129_v52 = vmul.f32 %v5803_v32, %v2546_v46  ;;  %v2658_v19 = vmul.f32 %v5757_v31, %v6059_v30 }
 0x283   : > { %v3092_v5 = vadd.f32 %v3060_v16, %v3024_v49  ;;  %v2659_v24 = vmul.f32 %v5757_v31, %v6074_v34  ;;  %v2726_v12 = vmul.f32 %v5765_v6, %v6167_v0  ;;  %v2727_v38 = vmul.f32 %v5765_v6, %v6171_v2 }
 0x284   : > { %v3093_v51 = vadd.f32 %v3061_v42, %v3025_v60  ;;  %v2822_v40 = vadd.f32 %v2790_v3, %v6103_v53  ;;  %v2823_v23 = vadd.f32 %v2791_v44, %v6113_v59  ;;  %v2690_v39 = vadd.f32 %v2658_v19, %v2590_v4  ;;  %v4118_v3 = vld [vmem:[%s6464_s3 + $0x1] ss:$0 sm:$0xff] }
 0x285   : > { %v2691_v46 = vadd.f32 %v2659_v24, %v2591_v9  ;;  %v2792_v25 = vmul.f32 %v5774_v61, %v2475_v54  ;;  %v2793_v7 = vmul.f32 %v5774_v61, %v2476_v17  ;;  %v3160_v63 = vadd.f32 %v3128_v35, %v3092_v5  ;;  %v2549_v9 = vld [vmem:[#allocation2 + $0x122] sm:$0xff] }
 0x286   : > { %v3161_v13 = vadd.f32 %v3129_v52, %v3093_v51  ;;  %v2890_v58 = vadd.f32 %v2858_v28, %v2822_v40  ;;  %v2891_v55 = vadd.f32 %v2859_v41, %v2823_v23  ;;  %v6191_v15 = vadd.f32 %v2726_v12, %v2690_v39  ;;  %v2477_v28 = vld [vmem:[#allocation2 + $0x120] sm:$0xff]  ;;  %v2478_v41 = vld [vmem:[#allocation2 + $0x128] sm:$0xff] }
 0x287   : > { %v4014_v50 = vpop.f32.mrf.mxu1  ;;  %v2860_v8 = vmul.f32 %v5779_v14, %v6059_v30  ;;  %v2994_v53 = vmul.f32 %v5786_v36, %v2475_v54  ;;  %v2995_v59 = vmul.f32 %v5786_v36, %v2476_v17  ;;  %v6200_v11 = vadd.f32 %v2727_v38, %v2691_v46  ;;  %v2550_v51 = vld [vmem:[#allocation2 + $0x12a] sm:$0xff] }
 0x288   : > { %v2383_v44 = vadd.f32 %v4118_v3, %v4014_v50  ;;  %v3184_v1 = vpack.c.bf16 %v3161_v13, %v3160_v63  ;;  %v2958_v56 = vadd.f32 %v2926_v43, %v2890_v58  ;;  %v2959_v20 = vadd.f32 %v2927_v48, %v2891_v55 }
 0x289   : > { %v2374_v21 = vpop.f32.mrf.mxu1  ;;  %v3062_v49 = vmul.f32 %v5791_v47, %v6059_v30  ;;  %v3063_v54 = vmul.f32 %v5791_v47, %v6074_v34  ;;  %v3130_v17 = vmul.f32 %v5803_v32, %v6167_v0  ;;  %v3131_v42 = vmul.f32 %v5803_v32, %v6171_v2 }
 0x28a   : > { %v6208_v16 = vmax.f32 %v2383_v44, 0.0  ;;  %v2375_v4 = vadd.f32 %v4118_v3, %v2374_v21  ;;  %4048 = vmatprep.mubr.bf16.mxu0 %v3184_v1  ;;  %v3026_v43 = vadd.f32 %v2994_v53, %v2958_v56  ;;  %v3027_v48 = vadd.f32 %v2995_v59, %v2959_v20 }
 0x28b   : > { %v4015_v60 = vpop.f32.mrf.mxu1  ;;  %v2592_v35 = vmul.f32 %v5751_v57, %v2477_v28  ;;  %v2593_v30 = vmul.f32 %v5751_v57, %v2478_v41  ;;  %v2661_v52 = vmul.f32 %v5757_v31, %v6066_v18  ;;  %v2861_v40 = vmul.f32 %v5779_v14, %v6074_v34 }
 0x28c   : > { %2451 = vst [vmem:[#allocation2 + $0x181] sm:$0xff] %v6208_v16  ;;  %v6217_v5 = vmax.f32 %v2375_v4, 0.0  ;;  %v2386_v19 = vadd.f32 %v4118_v3, %v4015_v60  ;;  %v3094_v24 = vadd.f32 %v3062_v49, %v3026_v43  ;;  %v3095_v12 = vadd.f32 %v3063_v54, %v3027_v48  ;;  %v2479_v49 = vld [vmem:[#allocation2 + $0x138] sm:$0xff]  ;;  %v2480_v54 = vld [vmem:[#allocation2 + $0x140] sm:$0xff] }
 0x28d   : > { %v2377_v38 = vpop.f32.mrf.mxu1  ;;  %v2660_v32 = vmul.f32 %v5757_v31, %v6050_v22  ;;  %v2693_v23 = vadd.f32 %v2661_v52, %v2593_v30  ;;  %v2728_v39 = vmul.f32 %v5765_v6, %v2549_v9  ;;  %v2928_v55 = vmul.f32 %v5782_v26, %v6167_v0  ;;  %v2551_v43 = vld [vmem:[#allocation2 + $0x13a] sm:$0xff] }
 0x28e   : > { %2449 = vst [vmem:[#allocation2 + $0x169] sm:$0xff] %v6217_v5  ;;  %v6225_v46 = vmax.f32 %v2386_v19, 0.0  ;;  %v2378_v63 = vadd.f32 %v4118_v3, %v2377_v38  ;;  %v3162_v13 = vadd.f32 %v3130_v17, %v3094_v24  ;;  %v3163_v58 = vadd.f32 %v3131_v42, %v3095_v12  ;;  %v6261_v24 = vld [vmem:[%s6462_s1 + $0x28] ss:$0 sm:$0xff] }
 0x28f   : > { %v2692_v50 = vadd.f32 %v2660_v32, %v2592_v35  ;;  %v2729_v53 = vmul.f32 %v5765_v6, %v2550_v51  ;;  %v2824_v34 = vadd.f32 %v2792_v25, %v6153_v37  ;;  %v2929_v44 = vmul.f32 %v5782_v26, %v6171_v2  ;;  %v2552_v12 = vld [vmem:[#allocation2 + $0x142] sm:$0xff] }
 0x290   : > { %2452 = vst [vmem:[#allocation2 + $0x189] sm:$0xff] %v6225_v46  ;;  %v6232_v59 = vmax.f32 %v2378_v63, 0.0  ;;  %v3185_v1 = vpack.c.bf16 %v3163_v58, %v3162_v13  ;;  %v2825_v3 = vadd.f32 %v2793_v7, %v6155_v27  ;;  %v2794_v0 = vmul.f32 %v5774_v61, %v2477_v28 }
 0x291   : > { %v6237_v56 = vadd.f32 %v2728_v39, %v2692_v50  ;;  %v6239_v20 = vadd.f32 %v2729_v53, %v2693_v23  ;;  %v2892_v21 = vadd.f32 %v2860_v8, %v2824_v34  ;;  %v2795_v37 = vmul.f32 %v5774_v61, %v2478_v41 }
 0x292   : > { %2450 = vst [vmem:[#allocation2 + $0x171] sm:$0xff] %v6232_v59  ;;  %4049 = vmatmul.mubr.bf16.gmra.mxu0 %v3185_v1  ;;  %v2862_v2 = vmul.f32 %v5779_v14, %v6050_v22  ;;  %v2863_v27 = vmul.f32 %v5779_v14, %v6066_v18  ;;  %v2893_v25 = vadd.f32 %v2861_v40, %v2825_v3 }
 0x293   : > { %v2930_v7 = vmul.f32 %v5782_v26, %v2549_v9  ;;  %v2931_v17 = vmul.f32 %v5782_v26, %v2550_v51  ;;  %v2960_v4 = vadd.f32 %v2928_v55, %v2892_v21  ;;  %v2996_v8 = vmul.f32 %v5786_v36, %v2477_v28 }
 0x294   : > { %v2961_v48 = vadd.f32 %v2929_v44, %v2893_v25  ;;  %v2997_v60 = vmul.f32 %v5786_v36, %v2478_v41  ;;  %v2594_v42 = vmul.f32 %v5751_v57, %v2479_v49  ;;  %v2595_v35 = vmul.f32 %v5751_v57, %v2480_v54 }
 0x295   : > { %v3028_v30 = vadd.f32 %v2996_v8, %v2960_v4  ;;  %v3064_v52 = vmul.f32 %v5791_v47, %v6050_v22  ;;  %v3065_v19 = vmul.f32 %v5791_v47, %v6066_v18  ;;  %v3132_v28 = vmul.f32 %v6261_v24, %v2549_v9  ;;  %v2481_v8 = vld [vmem:[#allocation2 + $0x150] sm:$0xff] }
 0x296   : > { %v3029_v41 = vadd.f32 %v2997_v60, %v2961_v48  ;;  %v2662_v38 = vmul.f32 %v5757_v31, %v6136_v10  ;;  %v2663_v40 = vmul.f32 %v5757_v31, %v6151_v62  ;;  %v2730_v22 = vmul.f32 %v5765_v6, %v2551_v43 }
 0x297   : > { %v3096_v32 = vadd.f32 %v3064_v52, %v3028_v30  ;;  %v3133_v18 = vmul.f32 %v6261_v24, %v2550_v51  ;;  %v2826_v23 = vadd.f32 %v2794_v0, %v6191_v15  ;;  %v2827_v39 = vadd.f32 %v2795_v37, %v6200_v11  ;;  %v2482_v51 = vld [vmem:[#allocation2 + $0x158] sm:$0xff] }
 0x298   : > { %v3097_v63 = vadd.f32 %v3065_v19, %v3029_v41  ;;  %v2694_v13 = vadd.f32 %v2662_v38, %v2594_v42  ;;  %v2695_v9 = vadd.f32 %v2663_v40, %v2595_v35  ;;  %v2731_v58 = vmul.f32 %v5765_v6, %v2552_v12  ;;  %v2554_v52 = vld [vmem:[#allocation2 + $0x15a] sm:$0xff] }
 0x299   : > { %v2796_v55 = vmul.f32 %v5774_v61, %v2479_v49  ;;  %v2797_v50 = vmul.f32 %v5774_v61, %v2480_v54  ;;  %v2894_v53 = vadd.f32 %v2862_v2, %v2826_v23  ;;  %v2895_v34 = vadd.f32 %v2863_v27, %v2827_v39 }
 0x29a   : > { %v3164_v44 = vadd.f32 %v3132_v28, %v3096_v32  ;;  %v3165_v1 = vadd.f32 %v3133_v18, %v3097_v63  ;;  %v6275_v3 = vadd.f32 %v2730_v22, %v2694_v13  ;;  %v2864_v15 = vmul.f32 %v5779_v14, %v6136_v10 }
 0x29b   : > { %v2962_v11 = vadd.f32 %v2930_v7, %v2894_v53  ;;  %v2963_v0 = vadd.f32 %v2931_v17, %v2895_v34  ;;  %v2998_v21 = vmul.f32 %v5786_v36, %v2479_v49  ;;  %v2999_v37 = vmul.f32 %v5786_v36, %v2480_v54  ;;  %v2553_v17 = vld [vmem:[#allocation2 + $0x152] sm:$0xff] }
 0x29c   : > { %v3186_v25 = vpack.c.bf16 %v3165_v1, %v3164_v44  ;;  %v6281_v4 = vadd.f32 %v2731_v58, %v2695_v9  ;;  %v2865_v2 = vmul.f32 %v5779_v14, %v6151_v62  ;;  %v3066_v27 = vmul.f32 %v5791_v47, %v6136_v10 }
 0x29d   : > { %v3030_v48 = vadd.f32 %v2998_v21, %v2962_v11  ;;  %v3031_v60 = vadd.f32 %v2999_v37, %v2963_v0  ;;  %v3067_v7 = vmul.f32 %v5791_v47, %v6151_v62  ;;  %v2597_v49 = vmul.f32 %v5751_v57, %v2482_v51  ;;  %v2555_v37 = vld [vmem:[#allocation2 + $0x16a] sm:$0xff] }
 0x29e   : > { %4052 = vmatprep.mubr.bf16.mxu0 %v3186_v25  ;;  %v2932_v54 = vmul.f32 %v5782_v26, %v2551_v43  ;;  %v2933_v42 = vmul.f32 %v5782_v26, %v2552_v12  ;;  %v3134_v35 = vmul.f32 %v6261_v24, %v2551_v43  ;;  %v3135_v30 = vmul.f32 %v6261_v24, %v2552_v12 }
 0x29f   : > { %v3098_v10 = vadd.f32 %v3066_v27, %v3030_v48  ;;  %v3099_v19 = vadd.f32 %v3067_v7, %v3031_v60  ;;  %v2596_v28 = vmul.f32 %v5751_v57, %v2481_v8  ;;  %v2665_v62 = vmul.f32 %v5757_v31, %v6143_v33  ;;  %v2556_v27 = vld [vmem:[#allocation2 + $0x172] sm:$0xff] }
 0x2a0   : > { %v2664_v41 = vmul.f32 %v5757_v31, %v6126_v45  ;;  %v2732_v38 = vmul.f32 %v5765_v6, %v2553_v17  ;;  %v2828_v40 = vadd.f32 %v2796_v55, %v6237_v56  ;;  %v2829_v22 = vadd.f32 %v2797_v50, %v6239_v20  ;;  %v2483_v20 = vld [vmem:[#allocation2 + $0x168] sm:$0xff]  ;;  %v2484_v55 = vld [vmem:[#allocation2 + $0x170] sm:$0xff] }
 0x2a1   : > { %v3166_v43 = vadd.f32 %v3134_v35, %v3098_v10  ;;  %v3167_v32 = vadd.f32 %v3135_v30, %v3099_v19  ;;  %v2697_v12 = vadd.f32 %v2665_v62, %v2597_v49  ;;  %v2733_v18 = vmul.f32 %v5765_v6, %v2554_v52 }
 0x2a2   : > { %v2798_v23 = vmul.f32 %v5774_v61, %v2481_v8  ;;  %v2799_v39 = vmul.f32 %v5774_v61, %v2482_v51  ;;  %v2896_v63 = vadd.f32 %v2864_v15, %v2828_v40  ;;  %v2897_v13 = vadd.f32 %v2865_v2, %v2829_v22 }
 0x2a3   : > { %v3187_v9 = vpack.c.bf16 %v3167_v32, %v3166_v43  ;;  %v2696_v58 = vadd.f32 %v2664_v41, %v2596_v28  ;;  %v2866_v53 = vmul.f32 %v5779_v14, %v6126_v45  ;;  %v2867_v56 = vmul.f32 %v5779_v14, %v6143_v33 }
 0x2a4   : > { %v2964_v50 = vadd.f32 %v2932_v54, %v2896_v63  ;;  %v2965_v34 = vadd.f32 %v2933_v42, %v2897_v13  ;;  %v3000_v44 = vmul.f32 %v5786_v36, %v2481_v8  ;;  %v3001_v1 = vmul.f32 %v5786_v36, %v2482_v51 }
 0x2a5   : > { %4053 = vmatmul.mubr.bf16.gmra.mxu0 %v3187_v9  ;;  %v2764_v11 = vadd.f32 %v2732_v38, %v2696_v58  ;;  %v2765_v15 = vadd.f32 %v2733_v18, %v2697_v12  ;;  %v3068_v0 = vmul.f32 %v5791_v47, %v6126_v45  ;;  %v3069_v21 = vmul.f32 %v5791_v47, %v6143_v33  ;;  %v2485_v18 = vld [vmem:[#allocation2 + $0x180] sm:$0xff] }
 0x2a6   : > { %v3032_v25 = vadd.f32 %v3000_v44, %v2964_v50  ;;  %v3033_v2 = vadd.f32 %v3001_v1, %v2965_v34  ;;  %v2598_v48 = vmul.f32 %v5751_v57, %v2483_v20  ;;  %v2599_v60 = vmul.f32 %v5751_v57, %v2484_v55 }
 0x2a7   : > { %v2934_v8 = vmul.f32 %v5782_v26, %v2553_v17  ;;  %v3136_v51 = vmul.f32 %v6261_v24, %v2553_v17  ;;  %v3137_v7 = vmul.f32 %v6261_v24, %v2554_v52  ;;  %v2666_v45 = vmul.f32 %v5757_v31, %v6217_v5 }
 0x2a8   : > { %v3100_v49 = vadd.f32 %v3068_v0, %v3032_v25  ;;  %v3101_v54 = vadd.f32 %v3069_v21, %v3033_v2  ;;  %v2667_v33 = vmul.f32 %v5757_v31, %v6232_v59  ;;  %v2734_v42 = vmul.f32 %v5765_v6, %v2555_v37 }
 0x2a9   : > { %v2935_v35 = vmul.f32 %v5782_v26, %v2554_v52  ;;  %v2735_v57 = vmul.f32 %v5765_v6, %v2556_v27  ;;  %v2830_v30 = vadd.f32 %v2798_v23, %v6275_v3  ;;  %v2831_v17 = vadd.f32 %v2799_v39, %v6281_v4 }
 0x2aa   : > { %v3168_v10 = vadd.f32 %v3136_v51, %v3100_v49  ;;  %v3169_v19 = vadd.f32 %v3137_v7, %v3101_v54  ;;  %v2698_v28 = vadd.f32 %v2666_v45, %v2598_v48  ;;  %v2699_v62 = vadd.f32 %v2667_v33, %v2599_v60  ;;  %v2558_v60 = vld [vmem:[#allocation2 + $0x18a] sm:$0xff] }
 0x2ab   : > { %v2800_v41 = vmul.f32 %v5774_v61, %v2483_v20  ;;  %v2801_v38 = vmul.f32 %v5774_v61, %v2484_v55  ;;  %v2898_v40 = vadd.f32 %v2866_v53, %v2830_v30  ;;  %v2899_v31 = vadd.f32 %v2867_v56, %v2831_v17  ;;  %v2486_v53 = vld [vmem:[#allocation2 + $0x188] sm:$0xff] }
 0x2ac   : > { %v3188_v22 = vpack.c.bf16 %v3169_v19, %v3168_v10  ;;  %v2766_v43 = vadd.f32 %v2734_v42, %v2698_v28  ;;  %v2868_v52 = vmul.f32 %v5779_v14, %v6217_v5  ;;  %v2869_v6 = vmul.f32 %v5779_v14, %v6232_v59  ;;  %v2523_v42 = vld [vmem:[#allocation2 + $0x199] sm:$0xff] }
 0x2ad   : > { %v2966_v3 = vadd.f32 %v2934_v8, %v2898_v40  ;;  %v2967_v4 = vadd.f32 %v2935_v35, %v2899_v31  ;;  %v3002_v32 = vmul.f32 %v5786_v36, %v2483_v20  ;;  %v3003_v12 = vmul.f32 %v5786_v36, %v2484_v55  ;;  %v2524_v35 = vld [vmem:[#allocation2 + $0x1a1] sm:$0xff] }
 0x2ae   : > { %4056 = vmatprep.mubr.bf16.mxu0 %v3188_v22  ;;  %v2767_v23 = vadd.f32 %v2735_v57, %v2699_v62  ;;  %v2936_v39 = vmul.f32 %v5782_v26, %v2555_v37  ;;  %v3070_v63 = vmul.f32 %v5791_v47, %v6217_v5  ;;  %v3071_v13 = vmul.f32 %v5791_v47, %v6232_v59  ;;  %v2559_v62 = vld [vmem:[#allocation2 + $0x19a] sm:$0xff] }
 0x2af   : > { %v3034_v9 = vadd.f32 %v3002_v32, %v2966_v3  ;;  %v3035_v58 = vadd.f32 %v3003_v12, %v2967_v4  ;;  %v2832_v56 = vadd.f32 %v2800_v41, %v2764_v11  ;;  %v2833_v50 = vadd.f32 %v2801_v38, %v2765_v15  ;;  %v2560_v41 = vld [vmem:[#allocation2 + $0x1a2] sm:$0xff] }
 0x2b0   : > { %v2937_v20 = vmul.f32 %v5782_v26, %v2556_v27  ;;  %v3138_v55 = vmul.f32 %v6261_v24, %v2555_v37  ;;  %v3139_v34 = vmul.f32 %v6261_v24, %v2556_v27  ;;  %v2802_v44 = vmul.f32 %v5774_v61, %v2485_v18  ;;  %v2557_v37 = vld [vmem:[#allocation2 + $0x182] sm:$0xff] }
 0x2b1   : > { %v3102_v1 = vadd.f32 %v3070_v63, %v3034_v9  ;;  %v3103_v0 = vadd.f32 %v3071_v13, %v3035_v58  ;;  %v2900_v21 = vadd.f32 %v2868_v52, %v2832_v56  ;;  %v2901_v5 = vadd.f32 %v2869_v6, %v2833_v50  ;;  %v6371_v63 = vld [vmem:[%s6464_s3 + $0x2] ss:$0 sm:$0xff] }
 0x2b2   : > { %v2803_v25 = vmul.f32 %v5774_v61, %v2486_v53  ;;  %v2870_v59 = vmul.f32 %v5779_v14, %v6208_v16  ;;  %v3004_v11 = vmul.f32 %v5786_v36, %v2485_v18  ;;  %v3005_v15 = vmul.f32 %v5786_v36, %v2486_v53  ;;  %v3755_v13 = vld [vmem:[%s4183_s26] sm:$0xff]  }
 0x2b3   : > { %v3170_v2 = vadd.f32 %v3138_v55, %v3102_v1  ;;  %v3171_v48 = vadd.f32 %v3139_v34, %v3103_v0  ;;  %v2968_v27 = vadd.f32 %v2936_v39, %v2900_v21  ;;  %v2969_v8 = vadd.f32 %v2937_v20, %v2901_v5 }
 0x2b4   : > { %v2871_v51 = vmul.f32 %v5779_v14, %v6225_v46  ;;  %v3072_v7 = vmul.f32 %v5791_v47, %v6208_v16  ;;  %v2834_v61 = vadd.f32 %v2802_v44, %v2766_v43  ;;  %v2835_v45 = vadd.f32 %v2803_v25, %v2767_v23 }
 0x2b5   : > { %v3189_v49 = vpack.c.bf16 %v3171_v48, %v3170_v2  ;;  %v3036_v54 = vadd.f32 %v3004_v11, %v2968_v27  ;;  %v3037_v33 = vadd.f32 %v3005_v15, %v2969_v8  ;;  %v3073_v36 = vmul.f32 %v5791_v47, %v6225_v46  ;;  %v3834_v11 = vld [vmem:[%s4183_s26 + $0x10] sm:$0xff]  }
 0x2b6   : > { %v2938_v57 = vmul.f32 %v5782_v26, %v2557_v37  ;;  %v2939_v30 = vmul.f32 %v5782_v26, %v2558_v60  ;;  %v2902_v17 = vadd.f32 %v2870_v59, %v2834_v61  ;;  %v2903_v10 = vadd.f32 %v2871_v51, %v2835_v45  ;;  %v3835_v59 = vld [vmem:[%s4183_s26 + $0x18] sm:$0xff]  }
 0x2b7   : > { %4057 = vmatmul.mubr.bf16.gmra.mxu0 %v3189_v49  ;;  %v3104_v14 = vadd.f32 %v3072_v7, %v3036_v54  ;;  %v3105_v19 = vadd.f32 %v3073_v36, %v3037_v33  ;;  %v3140_v16 = vmul.f32 %v6261_v24, %v2557_v37  ;;  %v3141_v28 = vmul.f32 %v6261_v24, %v2558_v60 }
 0x2b8   : > { %v2970_v38 = vadd.f32 %v2938_v57, %v2902_v17  ;;  %v2971_v40 = vadd.f32 %v2939_v30, %v2903_v10  ;;  %v3074_v46 = vmul.f32 %v5791_v47, %v2523_v42  ;;  %v3075_v31 = vmul.f32 %v5791_v47, %v2524_v35  ;;  %v3833_v47 = vld [vmem:[%s4183_s26 + $0x8] sm:$0xff]   ;;  %v3836_v57 = vld [vmem:[%s4183_s26 + $0x20] sm:$0xff]  }
 0x2b9   : > { %v3172_v22 = vadd.f32 %v3140_v16, %v3104_v14  ;;  %v3173_v26 = vadd.f32 %v3141_v28, %v3105_v19  ;;  %v3142_v6 = vmul.f32 %v6261_v24, %v2559_v62  ;;  %v3143_v3 = vmul.f32 %v6261_v24, %v2560_v41  ;;  %v3837_v35 = vld [vmem:[%s4183_s26 + $0x28] sm:$0xff]  }
 0x2ba   : > { %v3038_v43 = vadd.f32 %v5910_v29, %v2970_v38  ;;  %v3039_v52 = vadd.f32 %v5910_v29, %v2971_v40  ;;  %v3760_v29 = vunpack.c.l.bf16 %v3833_v47  ;;  %v3756_v58 = vunpack.c.l.bf16 %v3755_v13 }
 0x2bb   : > { %v3190_v4 = vpack.c.bf16 %v3173_v26, %v3172_v22  ;;  %v3761_v20 = vunpack.c.h.bf16 %v3833_v47  ;;  %v3757_v1 = vunpack.c.h.bf16 %v3755_v13  ;;  %v3768_v15 = vunpack.c.l.bf16 %v3835_v59 }
 0x2bc   : > { %v3106_v32 = vadd.f32 %v3074_v46, %v3038_v43  ;;  %v3107_v12 = vadd.f32 %v3075_v31, %v3039_v52  ;;  %v3764_v37 = vunpack.c.l.bf16 %v3834_v11  ;;  %v3769_v51 = vunpack.c.h.bf16 %v3835_v59  ;;  %v3839_v52 = vld [vmem:[%s4183_s26 + $0x38] sm:$0xff]  }
 0x2bd   : > { %4060 = vmatprep.mubr.bf16.mxu0 %v3190_v4  ;;  %v3765_v49 = vunpack.c.h.bf16 %v3834_v11  ;;  %v3776_v30 = vunpack.c.l.bf16 %v3837_v35  ;;  %v3772_v14 = vunpack.c.l.bf16 %v3836_v57  ;;  %v3777_v62 = vunpack.c.h.bf16 %v3837_v35 }
 0x2be   : > { %v3174_v18 = vadd.f32 %v3142_v6, %v3106_v32  ;;  %v3175_v23 = vadd.f32 %v3143_v3, %v3107_v12  ;;  %v3773_v46 = vunpack.c.h.bf16 %v3836_v57  ;;  %v3838_v6 = vld [vmem:[%s4183_s26 + $0x30] sm:$0xff]   ;;  %v3784_v3 = vunpack.c.l.bf16 %v3839_v52 }
 0x2bf   : > { %v3780_v12 = vunpack.c.l.bf16 %v3838_v6  ;;  %v3785_v47 = vunpack.c.h.bf16 %v3839_v52 }
 0x2c0   : > { %v3191_v39 = vpack.c.bf16 %v3175_v23, %v3174_v18 }
 0x2c2   : > { %4061 = vmatmul.mubr.bf16.gmra.mxu0 %v3191_v39 }
 0x2f6   : > { %v4034_v9 = vpop.f32.mrf.mxu0 }
 0x2f7   : > { %v3308_v24 = vadd.f32 %v4034_v9, %v6371_v63 }
 0x2f8   : > { %v3299_v53 = vpop.f32.mrf.mxu0 }
 0x2f9   : > { %v3492_v56 = vadd.f32 %v3760_v29, %v3308_v24  ;;  %v3300_v50 = vadd.f32 %v6371_v63, %v3299_v53  ;;  %v3781_v24 = vunpack.c.h.bf16 %v3838_v6 }
 0x2fa   : > { %v4035_v55 = vpop.f32.mrf.mxu0 }
 0x2fb   : > { %3524 = vst [vmem:[%s6379_s5 + $0x10] sm:$0xff] %v3492_v56  ;;  %v3490_v34 = vadd.f32 %v3756_v58, %v3300_v50  ;;  %v3311_v44 = vadd.f32 %v4035_v55, %v6371_v63  ;;  %v3840_v55 = vld [vmem:[%s4183_s26 + $0x40] sm:$0xff]  }
 0x2fc   : > { %v3302_v0 = vpop.f32.mrf.mxu0 }
 0x2fd   : > { %3522 = vst [vmem:[%s6379_s5] sm:$0xff] %v3490_v34  ;;  %v3493_v21 = vadd.f32 %v3761_v20, %v3311_v44  ;;  %v3303_v5 = vadd.f32 %v6371_v63, %v3302_v0  ;;  %v3841_v20 = vld [vmem:[%s4183_s26 + $0x48] sm:$0xff]   ;;  %v3788_v0 = vunpack.c.l.bf16 %v3840_v55 }
 0x2fe   : > { %v3792_v34 = vunpack.c.l.bf16 %v3841_v20  ;;  %v3793_v59 = vunpack.c.h.bf16 %v3841_v20 }
 0x2ff   : > { %3525 = vst [vmem:[%s6379_s5 + $0x18] sm:$0xff] %v3493_v21  ;;  %v3491_v25 = vadd.f32 %v3757_v1, %v3303_v5 }
 0x301   : > { %3523 = vst [vmem:[%s6379_s5 + $0x8] sm:$0xff] %v3491_v25 }
 0x31b   : > { %v4038_v2 = vpop.f32.mrf.mxu0 }
 0x31c   : > { %v3324_v48 = vadd.f32 %v4038_v2, %v6371_v63 }
 0x31d   : > { %v3315_v60 = vpop.f32.mrf.mxu0 }
 0x31e   : > { %v3496_v27 = vadd.f32 %v3768_v15, %v3324_v48  ;;  %v3316_v8 = vadd.f32 %v6371_v63, %v3315_v60  ;;  %v3789_v48 = vunpack.c.h.bf16 %v3840_v55 }
 0x31f   : > { %v4039_v7 = vpop.f32.mrf.mxu0 }
 0x320   : > { %3528 = vst [vmem:[%s6379_s5 + $0x30] sm:$0xff] %v3496_v27  ;;  %v3494_v61 = vadd.f32 %v3764_v37, %v3316_v8  ;;  %v3327_v45 = vadd.f32 %v4039_v7, %v6371_v63  ;;  %v3842_v7 = vld [vmem:[%s4183_s26 + $0x50] sm:$0xff]  }
 0x321   : > { %v3318_v54 = vpop.f32.mrf.mxu0 }
 0x322   : > { %3526 = vst [vmem:[%s6379_s5 + $0x20] sm:$0xff] %v3494_v61  ;;  %v3497_v33 = vadd.f32 %v3769_v51, %v3327_v45  ;;  %v3319_v36 = vadd.f32 %v6371_v63, %v3318_v54  ;;  %v3843_v51 = vld [vmem:[%s4183_s26 + $0x58] sm:$0xff]   ;;  %v3796_v54 = vunpack.c.l.bf16 %v3842_v7 }
 0x323   : > { %v3800_v61 = vunpack.c.l.bf16 %v3843_v51  ;;  %v3801_v35 = vunpack.c.h.bf16 %v3843_v51 }
 0x324   : > { %3529 = vst [vmem:[%s6379_s5 + $0x38] sm:$0xff] %v3497_v33  ;;  %v3495_v42 = vadd.f32 %v3765_v49, %v3319_v36 }
 0x326   : > { %3527 = vst [vmem:[%s6379_s5 + $0x28] sm:$0xff] %v3495_v42 }
 0x32b   : > { %v4042_v17 = vpop.f32.mrf.mxu0 }
 0x32c   : > { %v3340_v10 = vadd.f32 %v4042_v17, %v6371_v63 }
 0x32d   : > { %v3331_v19 = vpop.f32.mrf.mxu0 }
 0x32e   : > { %v3500_v16 = vadd.f32 %v3776_v30, %v3340_v10  ;;  %v3332_v28 = vadd.f32 %v6371_v63, %v3331_v19  ;;  %v3797_v10 = vunpack.c.h.bf16 %v3842_v7 }
 0x32f   : > { %v4043_v41 = vpop.f32.mrf.mxu0 }
 0x330   : > { %3532 = vst [vmem:[%s6379_s5 + $0x50] sm:$0xff] %v3500_v16  ;;  %v3498_v38 = vadd.f32 %v3772_v14, %v3332_v28  ;;  %v3343_v40 = vadd.f32 %v4043_v41, %v6371_v63  ;;  %v3844_v41 = vld [vmem:[%s4183_s26 + $0x60] sm:$0xff]  }
 0x331   : > { %v3334_v31 = vpop.f32.mrf.mxu0 }
 0x332   : > { %3530 = vst [vmem:[%s6379_s5 + $0x40] sm:$0xff] %v3498_v38  ;;  %v3501_v22 = vadd.f32 %v3777_v62, %v3343_v40  ;;  %v3335_v26 = vadd.f32 %v6371_v63, %v3334_v31  ;;  %v3845_v62 = vld [vmem:[%s4183_s26 + $0x68] sm:$0xff]   ;;  %v3804_v31 = vunpack.c.l.bf16 %v3844_v41 }
 0x333   : > { %v3808_v38 = vunpack.c.l.bf16 %v3845_v62  ;;  %v3809_v52 = vunpack.c.h.bf16 %v3845_v62 }
 0x334   : > { %3533 = vst [vmem:[%s6379_s5 + $0x58] sm:$0xff] %v3501_v22  ;;  %v3499_v43 = vadd.f32 %v3773_v46, %v3335_v26 }
 0x336   : > { %3531 = vst [vmem:[%s6379_s5 + $0x48] sm:$0xff] %v3499_v43 }
 0x33f   : > { %v4046_v4 = vpop.f32.mrf.mxu0 }
 0x340   : > { %v3356_v32 = vadd.f32 %v4046_v4, %v6371_v63 }
 0x341   : > { %v3347_v18 = vpop.f32.mrf.mxu0 }
 0x342   : > { %v3504_v23 = vadd.f32 %v3784_v3, %v3356_v32  ;;  %v3348_v39 = vadd.f32 %v6371_v63, %v3347_v18  ;;  %v3805_v32 = vunpack.c.h.bf16 %v3844_v41 }
 0x343   : > { %v4047_v13 = vpop.f32.mrf.mxu0 }
 0x344   : > { %3536 = vst [vmem:[%s6379_s5 + $0x70] sm:$0xff] %v3504_v23  ;;  %v3502_v29 = vadd.f32 %v3780_v12, %v3348_v39  ;;  %v3359_v9 = vadd.f32 %v4047_v13, %v6371_v63  ;;  %v3847_v39 = vld [vmem:[%s4183_s26 + $0x78] sm:$0xff]   ;;  %v3846_v13 = vld [vmem:[%s4183_s26 + $0x70] sm:$0xff]  }
 0x345   : > { %v3350_v58 = vpop.f32.mrf.mxu0  ;;  %v3817_v20 = vunpack.c.h.bf16 %v3847_v39 }
 0x346   : > { %3534 = vst [vmem:[%s6379_s5 + $0x60] sm:$0xff] %v3502_v29  ;;  %v3505_v53 = vadd.f32 %v3785_v47, %v3359_v9  ;;  %v3351_v56 = vadd.f32 %v6371_v63, %v3350_v58  ;;  %v3816_v29 = vunpack.c.l.bf16 %v3847_v39  ;;  %v3812_v58 = vunpack.c.l.bf16 %v3846_v13 }
 0x348   : > { %3537 = vst [vmem:[%s6379_s5 + $0x78] sm:$0xff] %v3505_v53  ;;  %v3503_v50 = vadd.f32 %v3781_v24, %v3351_v56 }
 0x34a   : > { %3535 = vst [vmem:[%s6379_s5 + $0x68] sm:$0xff] %v3503_v50 }
 0x352   : > { %v4050_v44 = vpop.f32.mrf.mxu0 }
 0x353   : > { %v3372_v1 = vadd.f32 %v4050_v44, %v6371_v63 }
 0x354   : > { %v3363_v21 = vpop.f32.mrf.mxu0 }
 0x355   : > { %v3508_v5 = vadd.f32 %v3792_v34, %v3372_v1  ;;  %v3364_v25 = vadd.f32 %v6371_v63, %v3363_v21  ;;  %v3813_v1 = vunpack.c.h.bf16 %v3846_v13 }
 0x356   : > { %v4051_v11 = vpop.f32.mrf.mxu0 }
 0x357   : > { %3540 = vst [vmem:[%s6379_s5 + $0x90] sm:$0xff] %v3508_v5  ;;  %v3506_v15 = vadd.f32 %v3788_v0, %v3364_v25  ;;  %v3375_v2 = vadd.f32 %v4051_v11, %v6371_v63 }
 0x358   : > { %v3366_v37 = vpop.f32.mrf.mxu0 }
 0x359   : > { %3538 = vst [vmem:[%s6379_s5 + $0x80] sm:$0xff] %v3506_v15  ;;  %v3509_v60 = vadd.f32 %v3793_v59, %v3375_v2  ;;  %v3367_v27 = vadd.f32 %v6371_v63, %v3366_v37 }
 0x35b   : > { %3541 = vst [vmem:[%s6379_s5 + $0x98] sm:$0xff] %v3509_v60  ;;  %v3507_v8 = vadd.f32 %v3789_v48, %v3367_v27 }
 0x35d   : > { %3539 = vst [vmem:[%s6379_s5 + $0x88] sm:$0xff] %v3507_v8 }
 0x365   : > { %v4054_v45 = vpop.f32.mrf.mxu0 }
 0x366   : > { %v3388_v49 = vadd.f32 %v4054_v45, %v6371_v63 }
 0x367   : > { %v3379_v33 = vpop.f32.mrf.mxu0 }
 0x368   : > { %v3512_v36 = vadd.f32 %v3800_v61, %v3388_v49  ;;  %v3380_v42 = vadd.f32 %v6371_v63, %v3379_v33 }
 0x369   : > { %v4055_v57 = vpop.f32.mrf.mxu0 }
 0x36a   : > { %3544 = vst [vmem:[%s6379_s5 + $0xb0] sm:$0xff] %v3512_v36  ;;  %v3510_v30 = vadd.f32 %v3796_v54, %v3380_v42  ;;  %v3391_v17 = vadd.f32 %v4055_v57, %v6371_v63 }
 0x36b   : > { %v3382_v14 = vpop.f32.mrf.mxu0 }
 0x36c   : > { %3542 = vst [vmem:[%s6379_s5 + $0xa0] sm:$0xff] %v3510_v30  ;;  %v3513_v19 = vadd.f32 %v3801_v35, %v3391_v17  ;;  %v3383_v16 = vadd.f32 %v6371_v63, %v3382_v14 }
 0x36e   : > { %3545 = vst [vmem:[%s6379_s5 + $0xb8] sm:$0xff] %v3513_v19  ;;  %v3511_v28 = vadd.f32 %v3797_v10, %v3383_v16 }
 0x370   : > { %3543 = vst [vmem:[%s6379_s5 + $0xa8] sm:$0xff] %v3511_v28 }
 0x377   : > { %v4058_v40 = vpop.f32.mrf.mxu0 }
 0x378   : > { %v3404_v46 = vadd.f32 %v4058_v40, %v6371_v63 }
 0x379   : > { %v3395_v22 = vpop.f32.mrf.mxu0 }
 0x37a   : > { %v3516_v26 = vadd.f32 %v3808_v38, %v3404_v46  ;;  %v3396_v43 = vadd.f32 %v6371_v63, %v3395_v22 }
 0x37b   : > { %v4059_v6 = vpop.f32.mrf.mxu0 }
 0x37c   : > { %3548 = vst [vmem:[%s6379_s5 + $0xd0] sm:$0xff] %v3516_v26  ;;  %v3514_v3 = vadd.f32 %v3804_v31, %v3396_v43  ;;  %v3407_v4 = vadd.f32 %v4059_v6, %v6371_v63 }
 0x37d   : > { %v3398_v12 = vpop.f32.mrf.mxu0 }
 0x37e   : > { %3546 = vst [vmem:[%s6379_s5 + $0xc0] sm:$0xff] %v3514_v3  ;;  %v3517_v18 = vadd.f32 %v3809_v52, %v3407_v4  ;;  %v3399_v23 = vadd.f32 %v6371_v63, %v3398_v12 }
 0x380   : > { %3549 = vst [vmem:[%s6379_s5 + $0xd8] sm:$0xff] %v3517_v18  ;;  %v3515_v47 = vadd.f32 %v3805_v32, %v3399_v23 }
 0x382   : > { %3547 = vst [vmem:[%s6379_s5 + $0xc8] sm:$0xff] %v3515_v47  ;;  %v4062_v9 = vpop.f32.mrf.mxu0 }
 0x383   : > { %v3420_v24 = vadd.f32 %v4062_v9, %v6371_v63 }
 0x384   : > { %v3411_v53 = vpop.f32.mrf.mxu0 }
 0x385   : > { %v3520_v56 = vadd.f32 %v3816_v29, %v3420_v24  ;;  %v3412_v50 = vadd.f32 %v6371_v63, %v3411_v53 }
 0x386   : > { %v4063_v55 = vpop.f32.mrf.mxu0 }
 0x387   : > { %3552 = vst [vmem:[%s6379_s5 + $0xf0] sm:$0xff] %v3520_v56  ;;  %v3518_v34 = vadd.f32 %v3812_v58, %v3412_v50  ;;  %v3423_v44 = vadd.f32 %v4063_v55, %v6371_v63 }
 0x388   : > { %v3414_v0 = vpop.f32.mrf.mxu0 }
 0x389   : > { %3550 = vst [vmem:[%s6379_s5 + $0xe0] sm:$0xff] %v3518_v34  ;;  %v3521_v21 = vadd.f32 %v3817_v20, %v3423_v44  ;;  %v3415_v5 = vadd.f32 %v6371_v63, %v3414_v0 }
 0x38b   : > { %3553 = vst [vmem:[%s6379_s5 + $0xf8] sm:$0xff] %v3521_v21  ;;  %v3519_v25 = vadd.f32 %v3813_v1, %v3415_v5 }
 0x38d   : > { %3551 = vst [vmem:[%s6379_s5 + $0xe8] sm:$0xff] %v3519_v25 }
 0x38e PF: > { %s14_s15 = sadd.s32 1, %s4126_s15  }
 0x38f   : > { %p11_p4 = scmp.ge.s32.totalorder %s14_s15, 4  }
 0x391   :  { %13 = sbr.rel (!%p11_p4) target bundleno = 1 (0x1), region = 73 }

</bundles_post_ra>
